<compile_context>
chip_gen: v7x
topology: tpu7x:2x2x1
jax: 0.10.0
libtpu: 0.0.40
codegen_flags: <defaults>
</compile_context>

<pallas_src>
import functools

import jax
import jax.numpy as jnp
from jax.experimental import pallas as pl
from jax.experimental.pallas import tpu as pltpu

EPS = 1e-5                      # nn.LayerNorm default
NEG_INF = -1e30


def _round_up(x, m):
    return ((x + m - 1) // m) * m


@functools.lru_cache(maxsize=None)
def _vmem_limit_bytes():
    # v5e/v6e: 128 MiB physical VMEM per core; v7x: 64 MiB.  Stay comfortably below.
    try:
        cap = int(pltpu.get_tpu_info().vmem_capacity_bytes)
    except Exception:
        cap = 128 * 1024 * 1024
    return min(64 * 1024 * 1024, (3 * cap) // 4)


def _cparams(*sem):
    return pltpu.CompilerParams(dimension_semantics=sem,
                                vmem_limit_bytes=_vmem_limit_bytes())


def _const_spec(shape):
    # Grid-invariant (weight / bias) operand: single-buffered to halve its VMEM cost.
    zeros = (0,) * len(shape)
    return pl.BlockSpec(shape, lambda *_: zeros, pipeline_mode=pl.Buffered(1))


def _layer_norm(x, g, b):
    # x: (R, E) f32; g, b: (1, E)  -- biased variance like torch.nn.LayerNorm
    mu = jnp.mean(x, axis=-1, keepdims=True)
    var = jnp.mean(jnp.square(x - mu), axis=-1, keepdims=True)
    return (x - mu) * jax.lax.rsqrt(var + EPS) * g + b


# ---------------------------------------------------------------------------
# Pallas kernels
# ---------------------------------------------------------------------------

def _patch_proj_kernel(p_ref, w_ref, b_ref, o_ref):
    # (tm, P) bf16 @ (P, E) bf16 + (1, E) f32 -> (tm, E) bf16; f32 accumulation.
    o_ref[...] = (
        jnp.dot(p_ref[...], w_ref[...], preferred_element_type=jnp.float32)
        + b_ref[...]
    ).astype(o_ref.dtype)


def _qkv_kernel(x_ref, g_ref, b_ref, w_ref, bias_ref, q_ref, k_ref, v_ref):
    # pre-LN + fused Q/K/V projection (one (E,3E) MXU pass) for one (tr, E) row tile.
    # 1/sqrt(dh) is pre-folded into the Q columns of w_ref/bias_ref.
    E = q_ref.shape[-1]
    x = x_ref[...].astype(jnp.float32)
    h = _layer_norm(x, g_ref[...], b_ref[...]).astype(jnp.bfloat16)
    y = jnp.dot(h, w_ref[...], preferred_element_type=jnp.float32) + bias_ref[...]
    q_ref[...] = y[:, :E].astype(jnp.bfloat16)
    k_ref[...] = y[:, E:2 * E].astype(jnp.bfloat16)
    v_ref[...] = y[:, 2 * E:].astype(jnp.bfloat16)


def _flash_attn_kernel(num_heads, q_ref, k_ref, v_ref, bias_ref, o_ref,
                       m_sc, l_sc, acc_sc):
    # q block (1, tq, E), k/v blocks (1, tk, E) bf16; heads split in-register with
    # static lane slices (no HBM relayout).  Online softmax over the kv grid axis;
    # the full (S, S) score matrix is never materialized.
    ki = pl.program_id(2)
    E = q_ref.shape[-1]
    dh = E // num_heads

    @pl.when(ki == 0)
    def _():
        m_sc[...] = jnp.full_like(m_sc, NEG_INF)
        l_sc[...] = jnp.zeros_like(l_sc)
        acc_sc[...] = jnp.zeros_like(acc_sc)

    q = q_ref[0]                 # (tq, E) bf16, softmax scale already folded in
    k = k_ref[0]                 # (tk, E) bf16
    v = v_ref[0]                 # (tk, E) bf16
    bias = bias_ref[...]         # (1, tk) f32: 0 for valid keys, NEG_INF for padding

    for h in range(num_heads):   # static unroll; per-head 2D MXU matmuls
        sl = slice(h * dh, (h + 1) * dh)
        # (tq, dh) x (tk, dh)^T -> (tq, tk), f32 accumulation
        s = jax.lax.dot_general(q[:, sl], k[:, sl], (((1,), (1,)), ((), ())),
                                preferred_element_type=jnp.float32)
        s = s + bias
        m_prev = m_sc[h]                                          # (tq, 1)
        m_new = jnp.maximum(m_prev, jnp.max(s, axis=-1, keepdims=True))
        alpha = jnp.exp(m_prev - m_new)
        p = jnp.exp(s - m_new)
        l_sc[h] = alpha * l_sc[h] + jnp.sum(p, axis=-1, keepdims=True)
        acc_sc[:, sl] = alpha * acc_sc[:, sl] + jnp.dot(
            p.astype(jnp.bfloat16), v[:, sl], preferred_element_type=jnp.float32)
        m_sc[h] = m_new

    @pl.when(ki == pl.num_programs(2) - 1)
    def _():
        out = jnp.concatenate(
            [acc_sc[:, h * dh:(h + 1) * dh] / l_sc[h] for h in range(num_heads)],
            axis=-1)                                              # (tq, E) f32
        o_ref[0] = out.astype(o_ref.dtype)


def _out_ffn_kernel(x_ref, a_ref, wo, bo, ln2_g, ln2_b, w1, b1, w2, b2, o_ref):
    # attention out-proj + residual + pre-LN FFN + residual for one (tr, E) row tile.
    x = x_ref[...].astype(jnp.float32)                            # bf16 residual -> f32
    attn = jnp.dot(a_ref[...], wo[...], preferred_element_type=jnp.float32) + bo[...]
    x = x + attn
    h = _layer_norm(x, ln2_g[...], ln2_b[...]).astype(jnp.bfloat16)
    y = jnp.dot(h, w1[...], preferred_element_type=jnp.float32) + b1[...]
    y = jax.nn.gelu(y, approximate=True).astype(jnp.bfloat16)
    y = jnp.dot(y, w2[...], preferred_element_type=jnp.float32) + b2[...]
    o_ref[...] = (x + y).astype(o_ref.dtype)


# ---------------------------------------------------------------------------
# Wrappers (glue + pallas_call)
# ---------------------------------------------------------------------------

def patch_embed(x, w_flat, b, patch_size):
    """Conv3d(kernel=stride=patch_size) -> flatten(2) -> transpose(1,2), M-tiled."""
    B, C, D, H, W = x.shape
    pd, ph, pw = patch_size
    Dp, Hp, Wp = D // pd, H // ph, W // pw
    N = Dp * Hp * Wp
    P = C * pd * ph * pw
    E = w_flat.shape[1]

    # patch extraction (pure reshape/transpose glue); bf16-cast before the kernel
    # so the (tm, P) tile DMA is half the bytes.
    xp = x.reshape(B, C, Dp, pd, Hp, ph, Wp, pw)
    xp = xp.transpose(0, 2, 4, 6, 1, 3, 5, 7).reshape(B * N, P).astype(jnp.bfloat16)

    M = B * N
    tm = min(256, _round_up(M, 16))
    Mpad = _round_up(M, tm)
    if Mpad != M:
        xp = jnp.pad(xp, ((0, Mpad - M), (0, 0)))

    out = pl.pallas_call(
        _patch_proj_kernel,
        out_shape=jax.ShapeDtypeStruct((Mpad, E), jnp.bfloat16),
        grid=(Mpad // tm,),
        in_specs=[pl.BlockSpec((tm, P), lambda i: (i, 0)),
                  _const_spec((P, E)),
                  _const_spec((1, E))],
        out_specs=pl.BlockSpec((tm, E), lambda i: (i, 0)),
        compiler_params=_cparams("parallel"),
    )(xp, w_flat, b)
    return out[:M].reshape(B, N, E)


def qkv_project(x2d, lp, row_tile):
    # x2d: (B*S_pad, E) bf16 -> q/k/v each (B*S_pad, E) bf16
    M, E = x2d.shape
    spec = pl.BlockSpec((row_tile, E), lambda r: (r, 0))
    out_sd = jax.ShapeDtypeStruct((M, E), jnp.bfloat16)
    return pl.pallas_call(
        _qkv_kernel,
        out_shape=(out_sd, out_sd, out_sd),
        grid=(M // row_tile,),
        in_specs=[spec,
                  _const_spec((1, E)), _const_spec((1, E)),        # ln1 gamma/beta
                  _const_spec((E, 3 * E)), _const_spec((1, 3 * E))],
        out_specs=(spec, spec, spec),
        compiler_params=_cparams("parallel"),
    )(x2d, lp["ln1_g"], lp["ln1_b"], lp["w_qkv"], lp["b_qkv"])


def flash_attention(q, k, v, kv_bias, num_heads, q_tile, kv_tile):
    # q/k/v: (B, S_pad, E) bf16; kv_bias: (1, S_pad) f32 additive key-padding mask.
    B, S_pad, E = q.shape
    nq = S_pad // q_tile
    nkv = S_pad // kv_tile
    kern = functools.partial(_flash_attn_kernel, num_heads)
    q_spec = pl.BlockSpec((1, q_tile, E), lambda b, qi, ki: (b, qi, 0))
    kv_spec = pl.BlockSpec((1, kv_tile, E), lambda b, qi, ki: (b, ki, 0))
    bias_spec = pl.BlockSpec((1, kv_tile), lambda b, qi, ki: (0, ki))
    return pl.pallas_call(
        kern,
        out_shape=jax.ShapeDtypeStruct((B, S_pad, E), jnp.bfloat16),
        grid=(B, nq, nkv),
        in_specs=[q_spec, kv_spec, kv_spec, bias_spec],
        out_specs=q_spec,
        scratch_shapes=[pltpu.VMEM((num_heads, q_tile, 1), jnp.float32),   # m
                        pltpu.VMEM((num_heads, q_tile, 1), jnp.float32),   # l
                        pltpu.VMEM((q_tile, E), jnp.float32)],             # acc (lane-dense E)
        compiler_params=_cparams("parallel", "parallel", "arbitrary"),
    )(q, k, v, kv_bias)


def out_proj_ffn(x2d, attn2d, lp, row_tile):
    M, E = x2d.shape
    F = lp["w1"].shape[1]
    spec = pl.BlockSpec((row_tile, E), lambda r: (r, 0))
    return pl.pallas_call(
        _out_ffn_kernel,
        out_shape=jax.ShapeDtypeStruct((M, E), jnp.bfloat16),
        grid=(M // row_tile,),
        in_specs=[spec, spec,
                  _const_spec((E, E)), _const_spec((1, E)),        # out proj
                  _const_spec((1, E)), _const_spec((1, E)),        # ln2 gamma/beta
                  _const_spec((E, F)), _const_spec((1, F)),        # fc1
                  _const_spec((F, E)), _const_spec((1, E))],       # fc2
        out_specs=spec,
        compiler_params=_cparams("parallel"),
    )(x2d, attn2d, lp["wo"], lp["bo"], lp["ln2_g"], lp["ln2_b"],
      lp["w1"], lp["b1"], lp["w2"], lp["b2"])


def encoder_layer(x, lp, num_heads, kv_bias, q_tile, kv_tile, row_tile):
    B, S_pad, E = x.shape
    x2d = x.reshape(B * S_pad, E)                       # free view; lane-dense rows
    q2d, k2d, v2d = qkv_project(x2d, lp, row_tile)
    q = q2d.reshape(B, S_pad, E)
    k = k2d.reshape(B, S_pad, E)
    v = v2d.reshape(B, S_pad, E)
    attn = flash_attention(q, k, v, kv_bias, num_heads, q_tile, kv_tile)
    out2d = out_proj_ffn(x2d, attn.reshape(B * S_pad, E), lp, row_tile)
    return out2d.reshape(B, S_pad, E)


def vision_transformer_forward(x, params, patch_size, num_heads):
    """prepare_tokens -> encoder (depth layers) -> norm -> CLS token."""
    B = x.shape[0]
    tokens = patch_embed(x, params["patch_w"], params["patch_b"], patch_size)  # (B,N,E) bf16
    E = tokens.shape[-1]
    cls = jnp.broadcast_to(params["cls_token"], (B, 1, E)).astype(jnp.float32)
    x_tok = jnp.concatenate([cls, tokens.astype(jnp.float32)], axis=1)          # (B,1+N,E)
    # pos_embed add is pure mem-bound elementwise -> plain JAX (no dedicated kernel).
    # TODO(synk): no pos-embed interpolation path; assumes img_size matches the grid.
    x_tok = (x_tok + params["pos_embed"]).astype(jnp.bfloat16)
    # pos_drop / dropouts: p = 0.0 -> identity

    S = x_tok.shape[1]
    # bf16 tokens -> tiles multiples of 16; decoupled q/kv tiles for long sequences.
    S16 = _round_up(S, 16)
    if S16 <= 512:
        S_pad, q_tile, kv_tile = S16, S16, S16
    else:
        S_pad = _round_up(S, 512)
        q_tile, kv_tile = 256, 512
    if S_pad != S:
        x_tok = jnp.pad(x_tok, ((0, 0), (0, S_pad - S), (0, 0)))

    # Row tile for the (B*S_pad, E) token-stream kernels (single fused parallel axis).
    M = B * S_pad
    if M % 512 == 0:
        row_tile = 512
    elif M % 256 == 0 and M > 256:
        row_tile = 256
    else:
        row_tile = q_tile        # q_tile always divides S_pad, hence M

    # Additive key-padding mask (padding is strictly right-aligned; the last kv tile
    # always contains at least one valid key since S_pad - S < kv_tile).
    kv_bias = jnp.where(jnp.arange(S_pad) < S, 0.0, NEG_INF).astype(
        jnp.float32).reshape(1, S_pad)

    for lp in params["layers"]:
        x_tok = encoder_layer(x_tok, lp, num_heads, kv_bias, q_tile, kv_tile, row_tile)

    # head = nn.Identity() (num_classes=0); only the CLS row is consumed, so the final
    # LayerNorm is done on the (B, E) CLS rows in plain JAX (kernel launch overhead
    # would dominate a (B, E) workload).
    cls_x = x_tok[:, 0, :].astype(jnp.float32)
    mu = jnp.mean(cls_x, axis=-1, keepdims=True)
    var = jnp.mean(jnp.square(cls_x - mu), axis=-1, keepdims=True)
    return (cls_x - mu) * jax.lax.rsqrt(var + EPS) * params["norm_g"] + params["norm_b"]


# ---------------------------------------------------------------------------
# Deterministic parameter init (synthetic; mirrors module __init__ shapes)
# ---------------------------------------------------------------------------

def init_params(key, *, in_chans, patch_size, num_patches, embed_dim, depth,
                num_heads, mlp_ratio):
    P = in_chans * patch_size[0] * patch_size[1] * patch_size[2]
    F = int(embed_dim * mlp_ratio)
    S = num_patches + 1
    scale = (embed_dim // num_heads) ** -0.5
    keys = jax.random.split(key, 4 + depth)
    bf = jnp.bfloat16

    def tn(k, shape, std=0.02, dtype=jnp.float32):   # trunc_normal_(std=0.02)
        return (std * jax.random.truncated_normal(k, -2.0, 2.0, shape)).astype(dtype)

    params = {
        # Conv3d weight (E, C, pd, ph, pw) flattened over (C,pd,ph,pw), transposed -> (P, E)
        "patch_w": tn(keys[0], (P, embed_dim), dtype=bf),
        "patch_b": jnp.zeros((1, embed_dim), jnp.float32),
        "cls_token": tn(keys[1], (1, 1, embed_dim)),
        "pos_embed": tn(keys[2], (1, S, embed_dim)),
        "norm_g": jnp.ones((1, embed_dim), jnp.float32),
        "norm_b": jnp.zeros((1, embed_dim), jnp.float32),
        "layers": [],
    }
    for d in range(depth):
        lk = jax.random.split(keys[4 + d], 6)
        wq = tn(lk[0], (embed_dim, embed_dim))
        wk = tn(lk[1], (embed_dim, embed_dim))
        wv = tn(lk[2], (embed_dim, embed_dim))
        # Fused Q/K/V weight with the 1/sqrt(dh) softmax scale folded into the Q
        # columns (and its bias); equivalent to scaling q after the projection.
        w_qkv = jnp.concatenate([wq * scale, wk, wv], axis=1).astype(bf)
        b_qkv = jnp.zeros((1, 3 * embed_dim), jnp.float32)
        params["layers"].append({
            "ln1_g": jnp.ones((1, embed_dim), jnp.float32),
            "ln1_b": jnp.zeros((1, embed_dim), jnp.float32),
            "w_qkv": w_qkv,
            "b_qkv": b_qkv,
            "wo": tn(lk[3], (embed_dim, embed_dim), dtype=bf),
            "bo": jnp.zeros((1, embed_dim), jnp.float32),
            "ln2_g": jnp.ones((1, embed_dim), jnp.float32),
            "ln2_b": jnp.zeros((1, embed_dim), jnp.float32),
            "w1": tn(lk[4], (embed_dim, F), dtype=bf),
            "b1": jnp.zeros((1, F), jnp.float32),
            "w2": tn(lk[5], (F, embed_dim), dtype=bf),
            "b2": jnp.zeros((1, embed_dim), jnp.float32),
        })
    return params


if __name__ == "__main__":
    # Small shapes consistent with the module's forward semantics
    # (embed_dim kept a multiple of 128 for lane-dense layouts).
    B, C = 2, 1
    img_size = (8, 16, 16)       # (D, H, W)
    patch_size = (2, 8, 8)
    embed_dim, depth, num_heads, mlp_ratio = 128, 2, 4, 4.0

    Dp, Hp, Wp = (i // p for i, p in zip(img_size, patch_size))
    num_patches = Dp * Hp * Wp   # 16 patches -> seq = 17 with CLS token

    key = jax.random.PRNGKey(0)
    kx, kp = jax.random.split(key)
    x = jax.random.normal(kx, (B, C) + img_size, dtype=jnp.float32)

    params = init_params(kp, in_chans=C, patch_size=patch_size,
                         num_patches=num_patches, embed_dim=embed_dim,
                         depth=depth, num_heads=num_heads, mlp_ratio=mlp_ratio)

    fwd = jax.jit(functools.partial(vision_transformer_forward,
                                    patch_size=patch_size, num_heads=num_heads))
    out = jax.block_until_ready(fwd(x, params))
    assert out.shape == (B, embed_dim)
    print("KERNEL_OK")
</pallas_src>

<mosaic_0001>
module attributes {stable_mosaic.version = 11 : i64} {
  func.func @_patch_proj_kernel(%arg0: i32, %arg1: memref<32x128xbf16, #tpu.memory_space<vmem>>, %arg2: memref<128x128xbf16, #tpu.memory_space<vmem>>, %arg3: memref<1x128xf32, #tpu.memory_space<vmem>>, %arg4: memref<32x128xbf16, #tpu.memory_space<vmem>>) attributes {dimension_semantics = [#tpu.dimension_semantics<parallel>], iteration_bounds = array<i64: 1>, scalar_prefetch = 0 : i64, scratch_operands = 0 : i64, tpu.core_type = #tpu.core_type<tc>, window_params = [{transform_indices = @transform_0, window_bounds = array<i64: 32, 128>}, {pipeline_mode = #tpu.pipeline_mode<synchronous>, transform_indices = @transform_1, window_bounds = array<i64: 128, 128>}, {pipeline_mode = #tpu.pipeline_mode<synchronous>, transform_indices = @transform_2, window_bounds = array<i64: 1, 128>}, {transform_indices = @transform_3, window_bounds = array<i64: 32, 128>}]} {
    %c0 = arith.constant 0 : index
    %c0_0 = arith.constant 0 : index
    %0 = vector.load %arg1[%c0, %c0_0] : memref<32x128xbf16, #tpu.memory_space<vmem>>, vector<32x128xbf16>
    %c0_1 = arith.constant 0 : index
    %c0_2 = arith.constant 0 : index
    %1 = vector.load %arg2[%c0_1, %c0_2] : memref<128x128xbf16, #tpu.memory_space<vmem>>, vector<128x128xbf16>
    %cst = arith.constant dense<0.000000e+00> : vector<32x128xf32>
    %2 = tpu.matmul %0, %1, %cst {dimension_numbers = #tpu.dot_dimension_numbers<[1], [0], [0], [1], [0, 0, 1, 1], [], []>} : vector<32x128xbf16>, vector<128x128xbf16>, vector<32x128xf32> -> vector<32x128xf32>
    %c0_3 = arith.constant 0 : index
    %c0_4 = arith.constant 0 : index
    %3 = vector.load %arg3[%c0_3, %c0_4] : memref<1x128xf32, #tpu.memory_space<vmem>>, vector<1x128xf32>
    %4 = vector.broadcast %3 : vector<1x128xf32> to vector<32x128xf32>
    %5 = arith.addf %2, %4 : vector<32x128xf32>
    %6 = arith.truncf %5 : vector<32x128xf32> to vector<32x128xbf16>
    %c0_5 = arith.constant 0 : index
    %c0_6 = arith.constant 0 : index
    %7 = vector.load %arg4[%c0_5, %c0_6] : memref<32x128xbf16, #tpu.memory_space<vmem>>, vector<32x128xbf16>
    tpu.vector_store %arg4[%c0_5, %c0_6], %6 {strides = array<i32>} : memref<32x128xbf16, #tpu.memory_space<vmem>>, vector<32x128xbf16>,
    return
  }
  func.func @transform_0(%arg0: i32) -> (i32, i32) {
    %c0_i32 = arith.constant 0 : i32
    %c0_i32_0 = arith.constant 0 : i32
    return %arg0, %c0_i32 : i32, i32
  }
  func.func @transform_1(%arg0: i32) -> (i32, i32) {
    %c0_i32 = arith.constant 0 : i32
    %c0_i32_0 = arith.constant 0 : i32
    %c0_i32_1 = arith.constant 0 : i32
    return %c0_i32, %c0_i32_0 : i32, i32
  }
  func.func @transform_2(%arg0: i32) -> (i32, i32) {
    %c0_i32 = arith.constant 0 : i32
    %c0_i32_0 = arith.constant 0 : i32
    %c0_i32_1 = arith.constant 0 : i32
    return %c0_i32, %c0_i32_0 : i32, i32
  }
  func.func @transform_3(%arg0: i32) -> (i32, i32) {
    %c0_i32 = arith.constant 0 : i32
    %c0_i32_0 = arith.constant 0 : i32
    return %arg0, %c0_i32 : i32, i32
  }
}

module attributes {stable_mosaic.version = 11 : i64} {
  func.func @_flash_attn_kernel(%arg0: i32, %arg1: i32, %arg2: i32, %arg3: memref<1x32x128xbf16, #tpu.memory_space<vmem>>, %arg4: memref<1x32x128xbf16, #tpu.memory_space<vmem>>, %arg5: memref<1x32x128xbf16, #tpu.memory_space<vmem>>, %arg6: memref<1x32xf32, #tpu.memory_space<vmem>>, %arg7: memref<1x32x128xbf16, #tpu.memory_space<vmem>>, %arg8: memref<4x32x1xf32, #tpu.memory_space<vmem>>, %arg9: memref<4x32x1xf32, #tpu.memory_space<vmem>>, %arg10: memref<32x128xf32, #tpu.memory_space<vmem>>) attributes {dimension_semantics = [#tpu.dimension_semantics<parallel>, #tpu.dimension_semantics<parallel>, #tpu.dimension_semantics<arbitrary>], iteration_bounds = array<i64: 2, 1, 1>, scalar_prefetch = 0 : i64, scratch_operands = 3 : i64, tpu.core_type = #tpu.core_type<tc>, window_params = [{transform_indices = @transform_0, window_bounds = array<i64: 1, 32, 128>}, {transform_indices = @transform_1, window_bounds = array<i64: 1, 32, 128>}, {transform_indices = @transform_2, window_bounds = array<i64: 1, 32, 128>}, {transform_indices = @transform_3, window_bounds = array<i64: 1, 32>}, {transform_indices = @transform_4, window_bounds = array<i64: 1, 32, 128>}]} {
    %c0_i32 = arith.constant 0 : i32
    %0 = arith.cmpi eq, %arg2, %c0_i32 : i32
    %1 = arith.extui %0 : i1 to i32
    %c0_i32_0 = arith.constant 0 : i32
    %2 = arith.cmpi ne, %1, %c0_i32_0 : i32
    scf.if %2 {
      %cst_86 = arith.constant -1.000000e+30 : f32
      %153 = vector.broadcast %cst_86 : f32 to vector<4x32x1xf32>
      %c0_87 = arith.constant 0 : index
      %c0_88 = arith.constant 0 : index
      %c0_89 = arith.constant 0 : index
      %154 = vector.load %arg8[%c0_87, %c0_88, %c0_89] : memref<4x32x1xf32, #tpu.memory_space<vmem>>, vector<4x32x1xf32>
      tpu.vector_store %arg8[%c0_87, %c0_88, %c0_89], %153 {strides = array<i32>} : memref<4x32x1xf32, #tpu.memory_space<vmem>>, vector<4x32x1xf32>,
      %cst_90 = arith.constant 0.000000e+00 : f32
      %155 = vector.broadcast %cst_90 : f32 to vector<4x32x1xf32>
      %c0_91 = arith.constant 0 : index
      %c0_92 = arith.constant 0 : index
      %c0_93 = arith.constant 0 : index
      %156 = vector.load %arg9[%c0_91, %c0_92, %c0_93] : memref<4x32x1xf32, #tpu.memory_space<vmem>>, vector<4x32x1xf32>
      tpu.vector_store %arg9[%c0_91, %c0_92, %c0_93], %155 {strides = array<i32>} : memref<4x32x1xf32, #tpu.memory_space<vmem>>, vector<4x32x1xf32>,
      %cst_94 = arith.constant 0.000000e+00 : f32
      %157 = vector.broadcast %cst_94 : f32 to vector<32x128xf32>
      %c0_95 = arith.constant 0 : index
      %c0_96 = arith.constant 0 : index
      %158 = vector.load %arg10[%c0_95, %c0_96] : memref<32x128xf32, #tpu.memory_space<vmem>>, vector<32x128xf32>
      tpu.vector_store %arg10[%c0_95, %c0_96], %157 {strides = array<i32>} : memref<32x128xf32, #tpu.memory_space<vmem>>, vector<32x128xf32>,
    } else {
    }
    %c0 = arith.constant 0 : index
    %c0_1 = arith.constant 0 : index
    %c0_2 = arith.constant 0 : index
    %3 = vector.load %arg3[%c0, %c0_1, %c0_2] : memref<1x32x128xbf16, #tpu.memory_space<vmem>>, vector<1x32x128xbf16>
    %4 = vector.shape_cast %3 : vector<1x32x128xbf16> to vector<32x128xbf16>
    %c0_3 = arith.constant 0 : index
    %c0_4 = arith.constant 0 : index
    %c0_5 = arith.constant 0 : index
    %5 = vector.load %arg4[%c0_3, %c0_4, %c0_5] : memref<1x32x128xbf16, #tpu.memory_space<vmem>>, vector<1x32x128xbf16>
    %6 = vector.shape_cast %5 : vector<1x32x128xbf16> to vector<32x128xbf16>
    %c0_6 = arith.constant 0 : index
    %c0_7 = arith.constant 0 : index
    %c0_8 = arith.constant 0 : index
    %7 = vector.load %arg5[%c0_6, %c0_7, %c0_8] : memref<1x32x128xbf16, #tpu.memory_space<vmem>>, vector<1x32x128xbf16>
    %8 = vector.shape_cast %7 : vector<1x32x128xbf16> to vector<32x128xbf16>
    %c0_9 = arith.constant 0 : index
    %c0_10 = arith.constant 0 : index
    %9 = vector.load %arg6[%c0_9, %c0_10] : memref<1x32xf32, #tpu.memory_space<vmem>>, vector<1x32xf32>
    %10 = vector.extract_strided_slice %4 {offsets = [0, 0], sizes = [32, 32], strides = [1, 1]} : vector<32x128xbf16> to vector<32x32xbf16>
    %11 = vector.extract_strided_slice %6 {offsets = [0, 0], sizes = [32, 32], strides = [1, 1]} : vector<32x128xbf16> to vector<32x32xbf16>
    %cst = arith.constant dense<0.000000e+00> : vector<32x32xf32>
    %12 = tpu.matmul %10, %11, %cst {dimension_numbers = #tpu.dot_dimension_numbers<[1], [1], [0], [0], [0, 0, 1, 0], [], []>} : vector<32x32xbf16>, vector<32x32xbf16>, vector<32x32xf32> -> vector<32x32xf32>
    %13 = vector.broadcast %9 : vector<1x32xf32> to vector<32x32xf32>
    %14 = arith.addf %12, %13 : vector<32x32xf32>
    %c0_11 = arith.constant 0 : index
    %c0_12 = arith.constant 0 : index
    %c0_13 = arith.constant 0 : index
    %15 = vector.load %arg8[%c0_11, %c0_12, %c0_13] : memref<4x32x1xf32, #tpu.memory_space<vmem>>, vector<1x32x1xf32>
    %16 = vector.shape_cast %15 : vector<1x32x1xf32> to vector<32x1xf32>
    %cst_14 = arith.constant dense<0xFF800000> : vector<32xf32>
    %17 = vector.multi_reduction <maximumf>, %14, %cst_14 [1] : vector<32x32xf32> to vector<32xf32>
    %18 = vector.shape_cast %17 : vector<32xf32> to vector<32x1xf32>
    %19 = arith.maximumf %16, %18 : vector<32x1xf32>
    %20 = arith.subf %16, %19 : vector<32x1xf32>
    %21 = math.exp %20 : vector<32x1xf32>
    %22 = vector.broadcast %19 : vector<32x1xf32> to vector<32x32xf32>
    %23 = arith.subf %14, %22 : vector<32x32xf32>
    %24 = math.exp %23 : vector<32x32xf32>
    %c0_15 = arith.constant 0 : index
    %c0_16 = arith.constant 0 : index
    %c0_17 = arith.constant 0 : index
    %25 = vector.load %arg9[%c0_15, %c0_16, %c0_17] : memref<4x32x1xf32, #tpu.memory_space<vmem>>, vector<1x32x1xf32>
    %26 = vector.shape_cast %25 : vector<1x32x1xf32> to vector<32x1xf32>
    %27 = arith.mulf %21, %26 : vector<32x1xf32>
    %cst_18 = arith.constant dense<0.000000e+00> : vector<32xf32>
    %28 = vector.multi_reduction <add>, %24, %cst_18 [1] : vector<32x32xf32> to vector<32xf32>
    %29 = vector.shape_cast %28 : vector<32xf32> to vector<32x1xf32>
    %30 = arith.addf %27, %29 : vector<32x1xf32>
    %c0_19 = arith.constant 0 : index
    %c0_20 = arith.constant 0 : index
    %c0_21 = arith.constant 0 : index
    %31 = vector.load %arg9[%c0_19, %c0_20, %c0_21] : memref<4x32x1xf32, #tpu.memory_space<vmem>>, vector<1x32x1xf32>
    %32 = vector.shape_cast %31 : vector<1x32x1xf32> to vector<32x1xf32>
    %33 = vector.shape_cast %30 : vector<32x1xf32> to vector<1x32x1xf32>
    tpu.vector_store %arg9[%c0_19, %c0_20, %c0_21], %33 {strides = array<i32>} : memref<4x32x1xf32, #tpu.memory_space<vmem>>, vector<1x32x1xf32>,
    %c0_22 = arith.constant 0 : index
    %c0_23 = arith.constant 0 : index
    %34 = vector.load %arg10[%c0_22, %c0_23] : memref<32x128xf32, #tpu.memory_space<vmem>>, vector<32x32xf32>
    %35 = vector.broadcast %21 : vector<32x1xf32> to vector<32x32xf32>
    %36 = arith.mulf %35, %34 : vector<32x32xf32>
    %37 = arith.truncf %24 : vector<32x32xf32> to vector<32x32xbf16>
    %38 = vector.extract_strided_slice %8 {offsets = [0, 0], sizes = [32, 32], strides = [1, 1]} : vector<32x128xbf16> to vector<32x32xbf16>
    %cst_24 = arith.constant dense<0.000000e+00> : vector<32x32xf32>
    %39 = tpu.matmul %37, %38, %cst_24 {dimension_numbers = #tpu.dot_dimension_numbers<[1], [0], [0], [1], [0, 0, 1, 1], [], []>} : vector<32x32xbf16>, vector<32x32xbf16>, vector<32x32xf32> -> vector<32x32xf32>
    %40 = arith.addf %36, %39 : vector<32x32xf32>
    %c0_25 = arith.constant 0 : index
    %c0_26 = arith.constant 0 : index
    %41 = vector.load %arg10[%c0_25, %c0_26] : memref<32x128xf32, #tpu.memory_space<vmem>>, vector<32x32xf32>
    tpu.vector_store %arg10[%c0_25, %c0_26], %40 {strides = array<i32>} : memref<32x128xf32, #tpu.memory_space<vmem>>, vector<32x32xf32>,
    %c0_27 = arith.constant 0 : index
    %c0_28 = arith.constant 0 : index
    %c0_29 = arith.constant 0 : index
    %42 = vector.load %arg8[%c0_27, %c0_28, %c0_29] : memref<4x32x1xf32, #tpu.memory_space<vmem>>, vector<1x32x1xf32>
    %43 = vector.shape_cast %42 : vector<1x32x1xf32> to vector<32x1xf32>
    %44 = vector.shape_cast %19 : vector<32x1xf32> to vector<1x32x1xf32>
    tpu.vector_store %arg8[%c0_27, %c0_28, %c0_29], %44 {strides = array<i32>} : memref<4x32x1xf32, #tpu.memory_space<vmem>>, vector<1x32x1xf32>,
    %45 = vector.extract_strided_slice %4 {offsets = [0, 32], sizes = [32, 32], strides = [1, 1]} : vector<32x128xbf16> to vector<32x32xbf16>
    %46 = vector.extract_strided_slice %6 {offsets = [0, 32], sizes = [32, 32], strides = [1, 1]} : vector<32x128xbf16> to vector<32x32xbf16>
    %cst_30 = arith.constant dense<0.000000e+00> : vector<32x32xf32>
    %47 = tpu.matmul %45, %46, %cst_30 {dimension_numbers = #tpu.dot_dimension_numbers<[1], [1], [0], [0], [0, 0, 1, 0], [], []>} : vector<32x32xbf16>, vector<32x32xbf16>, vector<32x32xf32> -> vector<32x32xf32>
    %48 = vector.broadcast %9 : vector<1x32xf32> to vector<32x32xf32>
    %49 = arith.addf %47, %48 : vector<32x32xf32>
    %c1 = arith.constant 1 : index
    %c0_31 = arith.constant 0 : index
    %c0_32 = arith.constant 0 : index
    %50 = vector.load %arg8[%c1, %c0_31, %c0_32] : memref<4x32x1xf32, #tpu.memory_space<vmem>>, vector<1x32x1xf32>
    %51 = vector.shape_cast %50 : vector<1x32x1xf32> to vector<32x1xf32>
    %cst_33 = arith.constant dense<0xFF800000> : vector<32xf32>
    %52 = vector.multi_reduction <maximumf>, %49, %cst_33 [1] : vector<32x32xf32> to vector<32xf32>
    %53 = vector.shape_cast %52 : vector<32xf32> to vector<32x1xf32>
    %54 = arith.maximumf %51, %53 : vector<32x1xf32>
    %55 = arith.subf %51, %54 : vector<32x1xf32>
    %56 = math.exp %55 : vector<32x1xf32>
    %57 = vector.broadcast %54 : vector<32x1xf32> to vector<32x32xf32>
    %58 = arith.subf %49, %57 : vector<32x32xf32>
    %59 = math.exp %58 : vector<32x32xf32>
    %c1_34 = arith.constant 1 : index
    %c0_35 = arith.constant 0 : index
    %c0_36 = arith.constant 0 : index
    %60 = vector.load %arg9[%c1_34, %c0_35, %c0_36] : memref<4x32x1xf32, #tpu.memory_space<vmem>>, vector<1x32x1xf32>
    %61 = vector.shape_cast %60 : vector<1x32x1xf32> to vector<32x1xf32>
    %62 = arith.mulf %56, %61 : vector<32x1xf32>
    %cst_37 = arith.constant dense<0.000000e+00> : vector<32xf32>
    %63 = vector.multi_reduction <add>, %59, %cst_37 [1] : vector<32x32xf32> to vector<32xf32>
    %64 = vector.shape_cast %63 : vector<32xf32> to vector<32x1xf32>
    %65 = arith.addf %62, %64 : vector<32x1xf32>
    %c1_38 = arith.constant 1 : index
    %c0_39 = arith.constant 0 : index
    %c0_40 = arith.constant 0 : index
    %66 = vector.load %arg9[%c1_38, %c0_39, %c0_40] : memref<4x32x1xf32, #tpu.memory_space<vmem>>, vector<1x32x1xf32>
    %67 = vector.shape_cast %66 : vector<1x32x1xf32> to vector<32x1xf32>
    %68 = vector.shape_cast %65 : vector<32x1xf32> to vector<1x32x1xf32>
    tpu.vector_store %arg9[%c1_38, %c0_39, %c0_40], %68 {strides = array<i32>} : memref<4x32x1xf32, #tpu.memory_space<vmem>>, vector<1x32x1xf32>,
    %c0_41 = arith.constant 0 : index
    %c32 = arith.constant 32 : index
    %69 = vector.load %arg10[%c0_41, %c32] : memref<32x128xf32, #tpu.memory_space<vmem>>, vector<32x32xf32>
    %70 = vector.broadcast %56 : vector<32x1xf32> to vector<32x32xf32>
    %71 = arith.mulf %70, %69 : vector<32x32xf32>
    %72 = arith.truncf %59 : vector<32x32xf32> to vector<32x32xbf16>
    %73 = vector.extract_strided_slice %8 {offsets = [0, 32], sizes = [32, 32], strides = [1, 1]} : vector<32x128xbf16> to vector<32x32xbf16>
    %cst_42 = arith.constant dense<0.000000e+00> : vector<32x32xf32>
    %74 = tpu.matmul %72, %73, %cst_42 {dimension_numbers = #tpu.dot_dimension_numbers<[1], [0], [0], [1], [0, 0, 1, 1], [], []>} : vector<32x32xbf16>, vector<32x32xbf16>, vector<32x32xf32> -> vector<32x32xf32>
    %75 = arith.addf %71, %74 : vector<32x32xf32>
    %c0_43 = arith.constant 0 : index
    %c32_44 = arith.constant 32 : index
    %76 = vector.load %arg10[%c0_43, %c32_44] : memref<32x128xf32, #tpu.memory_space<vmem>>, vector<32x32xf32>
    tpu.vector_store %arg10[%c0_43, %c32_44], %75 {strides = array<i32>} : memref<32x128xf32, #tpu.memory_space<vmem>>, vector<32x32xf32>,
    %c1_45 = arith.constant 1 : index
    %c0_46 = arith.constant 0 : index
    %c0_47 = arith.constant 0 : index
    %77 = vector.load %arg8[%c1_45, %c0_46, %c0_47] : memref<4x32x1xf32, #tpu.memory_space<vmem>>, vector<1x32x1xf32>
    %78 = vector.shape_cast %77 : vector<1x32x1xf32> to vector<32x1xf32>
    %79 = vector.shape_cast %54 : vector<32x1xf32> to vector<1x32x1xf32>
    tpu.vector_store %arg8[%c1_45, %c0_46, %c0_47], %79 {strides = array<i32>} : memref<4x32x1xf32, #tpu.memory_space<vmem>>, vector<1x32x1xf32>,
    %80 = vector.extract_strided_slice %4 {offsets = [0, 64], sizes = [32, 32], strides = [1, 1]} : vector<32x128xbf16> to vector<32x32xbf16>
    %81 = vector.extract_strided_slice %6 {offsets = [0, 64], sizes = [32, 32], strides = [1, 1]} : vector<32x128xbf16> to vector<32x32xbf16>
    %cst_48 = arith.constant dense<0.000000e+00> : vector<32x32xf32>
    %82 = tpu.matmul %80, %81, %cst_48 {dimension_numbers = #tpu.dot_dimension_numbers<[1], [1], [0], [0], [0, 0, 1, 0], [], []>} : vector<32x32xbf16>, vector<32x32xbf16>, vector<32x32xf32> -> vector<32x32xf32>
    %83 = vector.broadcast %9 : vector<1x32xf32> to vector<32x32xf32>
    %84 = arith.addf %82, %83 : vector<32x32xf32>
    %c2 = arith.constant 2 : index
    %c0_49 = arith.constant 0 : index
    %c0_50 = arith.constant 0 : index
    %85 = vector.load %arg8[%c2, %c0_49, %c0_50] : memref<4x32x1xf32, #tpu.memory_space<vmem>>, vector<1x32x1xf32>
    %86 = vector.shape_cast %85 : vector<1x32x1xf32> to vector<32x1xf32>
    %cst_51 = arith.constant dense<0xFF800000> : vector<32xf32>
    %87 = vector.multi_reduction <maximumf>, %84, %cst_51 [1] : vector<32x32xf32> to vector<32xf32>
    %88 = vector.shape_cast %87 : vector<32xf32> to vector<32x1xf32>
    %89 = arith.maximumf %86, %88 : vector<32x1xf32>
    %90 = arith.subf %86, %89 : vector<32x1xf32>
    %91 = math.exp %90 : vector<32x1xf32>
    %92 = vector.broadcast %89 : vector<32x1xf32> to vector<32x32xf32>
    %93 = arith.subf %84, %92 : vector<32x32xf32>
    %94 = math.exp %93 : vector<32x32xf32>
    %c2_52 = arith.constant 2 : index
    %c0_53 = arith.constant 0 : index
    %c0_54 = arith.constant 0 : index
    %95 = vector.load %arg9[%c2_52, %c0_53, %c0_54] : memref<4x32x1xf32, #tpu.memory_space<vmem>>, vector<1x32x1xf32>
    %96 = vector.shape_cast %95 : vector<1x32x1xf32> to vector<32x1xf32>
    %97 = arith.mulf %91, %96 : vector<32x1xf32>
    %cst_55 = arith.constant dense<0.000000e+00> : vector<32xf32>
    %98 = vector.multi_reduction <add>, %94, %cst_55 [1] : vector<32x32xf32> to vector<32xf32>
    %99 = vector.shape_cast %98 : vector<32xf32> to vector<32x1xf32>
    %100 = arith.addf %97, %99 : vector<32x1xf32>
    %c2_56 = arith.constant 2 : index
    %c0_57 = arith.constant 0 : index
    %c0_58 = arith.constant 0 : index
    %101 = vector.load %arg9[%c2_56, %c0_57, %c0_58] : memref<4x32x1xf32, #tpu.memory_space<vmem>>, vector<1x32x1xf32>
    %102 = vector.shape_cast %101 : vector<1x32x1xf32> to vector<32x1xf32>
    %103 = vector.shape_cast %100 : vector<32x1xf32> to vector<1x32x1xf32>
    tpu.vector_store %arg9[%c2_56, %c0_57, %c0_58], %103 {strides = array<i32>} : memref<4x32x1xf32, #tpu.memory_space<vmem>>, vector<1x32x1xf32>,
    %c0_59 = arith.constant 0 : index
    %c64 = arith.constant 64 : index
    %104 = vector.load %arg10[%c0_59, %c64] : memref<32x128xf32, #tpu.memory_space<vmem>>, vector<32x32xf32>
    %105 = vector.broadcast %91 : vector<32x1xf32> to vector<32x32xf32>
    %106 = arith.mulf %105, %104 : vector<32x32xf32>
    %107 = arith.truncf %94 : vector<32x32xf32> to vector<32x32xbf16>
    %108 = vector.extract_strided_slice %8 {offsets = [0, 64], sizes = [32, 32], strides = [1, 1]} : vector<32x128xbf16> to vector<32x32xbf16>
    %cst_60 = arith.constant dense<0.000000e+00> : vector<32x32xf32>
    %109 = tpu.matmul %107, %108, %cst_60 {dimension_numbers = #tpu.dot_dimension_numbers<[1], [0], [0], [1], [0, 0, 1, 1], [], []>} : vector<32x32xbf16>, vector<32x32xbf16>, vector<32x32xf32> -> vector<32x32xf32>
    %110 = arith.addf %106, %109 : vector<32x32xf32>
    %c0_61 = arith.constant 0 : index
    %c64_62 = arith.constant 64 : index
    %111 = vector.load %arg10[%c0_61, %c64_62] : memref<32x128xf32, #tpu.memory_space<vmem>>, vector<32x32xf32>
    tpu.vector_store %arg10[%c0_61, %c64_62], %110 {strides = array<i32>} : memref<32x128xf32, #tpu.memory_space<vmem>>, vector<32x32xf32>,
    %c2_63 = arith.constant 2 : index
    %c0_64 = arith.constant 0 : index
    %c0_65 = arith.constant 0 : index
    %112 = vector.load %arg8[%c2_63, %c0_64, %c0_65] : memref<4x32x1xf32, #tpu.memory_space<vmem>>, vector<1x32x1xf32>
    %113 = vector.shape_cast %112 : vector<1x32x1xf32> to vector<32x1xf32>
    %114 = vector.shape_cast %89 : vector<32x1xf32> to vector<1x32x1xf32>
    tpu.vector_store %arg8[%c2_63, %c0_64, %c0_65], %114 {strides = array<i32>} : memref<4x32x1xf32, #tpu.memory_space<vmem>>, vector<1x32x1xf32>,
    %115 = vector.extract_strided_slice %4 {offsets = [0, 96], sizes = [32, 32], strides = [1, 1]} : vector<32x128xbf16> to vector<32x32xbf16>
    %116 = vector.extract_strided_slice %6 {offsets = [0, 96], sizes = [32, 32], strides = [1, 1]} : vector<32x128xbf16> to vector<32x32xbf16>
    %cst_66 = arith.constant dense<0.000000e+00> : vector<32x32xf32>
    %117 = tpu.matmul %115, %116, %cst_66 {dimension_numbers = #tpu.dot_dimension_numbers<[1], [1], [0], [0], [0, 0, 1, 0], [], []>} : vector<32x32xbf16>, vector<32x32xbf16>, vector<32x32xf32> -> vector<32x32xf32>
    %118 = vector.broadcast %9 : vector<1x32xf32> to vector<32x32xf32>
    %119 = arith.addf %117, %118 : vector<32x32xf32>
    %c3 = arith.constant 3 : index
    %c0_67 = arith.constant 0 : index
    %c0_68 = arith.constant 0 : index
    %120 = vector.load %arg8[%c3, %c0_67, %c0_68] : memref<4x32x1xf32, #tpu.memory_space<vmem>>, vector<1x32x1xf32>
    %121 = vector.shape_cast %120 : vector<1x32x1xf32> to vector<32x1xf32>
    %cst_69 = arith.constant dense<0xFF800000> : vector<32xf32>
    %122 = vector.multi_reduction <maximumf>, %119, %cst_69 [1] : vector<32x32xf32> to vector<32xf32>
    %123 = vector.shape_cast %122 : vector<32xf32> to vector<32x1xf32>
    %124 = arith.maximumf %121, %123 : vector<32x1xf32>
    %125 = arith.subf %121, %124 : vector<32x1xf32>
    %126 = math.exp %125 : vector<32x1xf32>
    %127 = vector.broadcast %124 : vector<32x1xf32> to vector<32x32xf32>
    %128 = arith.subf %119, %127 : vector<32x32xf32>
    %129 = math.exp %128 : vector<32x32xf32>
    %c3_70 = arith.constant 3 : index
    %c0_71 = arith.constant 0 : index
    %c0_72 = arith.constant 0 : index
    %130 = vector.load %arg9[%c3_70, %c0_71, %c0_72] : memref<4x32x1xf32, #tpu.memory_space<vmem>>, vector<1x32x1xf32>
    %131 = vector.shape_cast %130 : vector<1x32x1xf32> to vector<32x1xf32>
    %132 = arith.mulf %126, %131 : vector<32x1xf32>
    %cst_73 = arith.constant dense<0.000000e+00> : vector<32xf32>
    %133 = vector.multi_reduction <add>, %129, %cst_73 [1] : vector<32x32xf32> to vector<32xf32>
    %134 = vector.shape_cast %133 : vector<32xf32> to vector<32x1xf32>
    %135 = arith.addf %132, %134 : vector<32x1xf32>
    %c3_74 = arith.constant 3 : index
    %c0_75 = arith.constant 0 : index
    %c0_76 = arith.constant 0 : index
    %136 = vector.load %arg9[%c3_74, %c0_75, %c0_76] : memref<4x32x1xf32, #tpu.memory_space<vmem>>, vector<1x32x1xf32>
    %137 = vector.shape_cast %136 : vector<1x32x1xf32> to vector<32x1xf32>
    %138 = vector.shape_cast %135 : vector<32x1xf32> to vector<1x32x1xf32>
    tpu.vector_store %arg9[%c3_74, %c0_75, %c0_76], %138 {strides = array<i32>} : memref<4x32x1xf32, #tpu.memory_space<vmem>>, vector<1x32x1xf32>,
    %c0_77 = arith.constant 0 : index
    %c96 = arith.constant 96 : index
    %139 = vector.load %arg10[%c0_77, %c96] : memref<32x128xf32, #tpu.memory_space<vmem>>, vector<32x32xf32>
    %140 = vector.broadcast %126 : vector<32x1xf32> to vector<32x32xf32>
    %141 = arith.mulf %140, %139 : vector<32x32xf32>
    %142 = arith.truncf %129 : vector<32x32xf32> to vector<32x32xbf16>
    %143 = vector.extract_strided_slice %8 {offsets = [0, 96], sizes = [32, 32], strides = [1, 1]} : vector<32x128xbf16> to vector<32x32xbf16>
    %cst_78 = arith.constant dense<0.000000e+00> : vector<32x32xf32>
    %144 = tpu.matmul %142, %143, %cst_78 {dimension_numbers = #tpu.dot_dimension_numbers<[1], [0], [0], [1], [0, 0, 1, 1], [], []>} : vector<32x32xbf16>, vector<32x32xbf16>, vector<32x32xf32> -> vector<32x32xf32>
    %145 = arith.addf %141, %144 : vector<32x32xf32>
    %c0_79 = arith.constant 0 : index
    %c96_80 = arith.constant 96 : index
    %146 = vector.load %arg10[%c0_79, %c96_80] : memref<32x128xf32, #tpu.memory_space<vmem>>, vector<32x32xf32>
    tpu.vector_store %arg10[%c0_79, %c96_80], %145 {strides = array<i32>} : memref<32x128xf32, #tpu.memory_space<vmem>>, vector<32x32xf32>,
    %c3_81 = arith.constant 3 : index
    %c0_82 = arith.constant 0 : index
    %c0_83 = arith.constant 0 : index
    %147 = vector.load %arg8[%c3_81, %c0_82, %c0_83] : memref<4x32x1xf32, #tpu.memory_space<vmem>>, vector<1x32x1xf32>
    %148 = vector.shape_cast %147 : vector<1x32x1xf32> to vector<32x1xf32>
    %149 = vector.shape_cast %124 : vector<32x1xf32> to vector<1x32x1xf32>
    tpu.vector_store %arg8[%c3_81, %c0_82, %c0_83], %149 {strides = array<i32>} : memref<4x32x1xf32, #tpu.memory_space<vmem>>, vector<1x32x1xf32>,
    %c0_i32_84 = arith.constant 0 : i32
    %150 = arith.cmpi eq, %arg2, %c0_i32_84 : i32
    %151 = arith.extui %150 : i1 to i32
    %c0_i32_85 = arith.constant 0 : i32
    %152 = arith.cmpi ne, %151, %c0_i32_85 : i32
    scf.if %152 {
      %c0_86 = arith.constant 0 : index
      %c0_87 = arith.constant 0 : index
      %153 = vector.load %arg10[%c0_86, %c0_87] : memref<32x128xf32, #tpu.memory_space<vmem>>, vector<32x32xf32>
      %c0_88 = arith.constant 0 : index
      %c0_89 = arith.constant 0 : index
      %c0_90 = arith.constant 0 : index
      %154 = vector.load %arg9[%c0_88, %c0_89, %c0_90] : memref<4x32x1xf32, #tpu.memory_space<vmem>>, vector<1x32x1xf32>
      %155 = vector.shape_cast %154 : vector<1x32x1xf32> to vector<32x1xf32>
      %156 = vector.broadcast %155 : vector<32x1xf32> to vector<32x32xf32>
      %157 = arith.divf %153, %156 : vector<32x32xf32>
      %c0_91 = arith.constant 0 : index
      %c32_92 = arith.constant 32 : index
      %158 = vector.load %arg10[%c0_91, %c32_92] : memref<32x128xf32, #tpu.memory_space<vmem>>, vector<32x32xf32>
      %c1_93 = arith.constant 1 : index
      %c0_94 = arith.constant 0 : index
      %c0_95 = arith.constant 0 : index
      %159 = vector.load %arg9[%c1_93, %c0_94, %c0_95] : memref<4x32x1xf32, #tpu.memory_space<vmem>>, vector<1x32x1xf32>
      %160 = vector.shape_cast %159 : vector<1x32x1xf32> to vector<32x1xf32>
      %161 = vector.broadcast %160 : vector<32x1xf32> to vector<32x32xf32>
      %162 = arith.divf %158, %161 : vector<32x32xf32>
      %c0_96 = arith.constant 0 : index
      %c64_97 = arith.constant 64 : index
      %163 = vector.load %arg10[%c0_96, %c64_97] : memref<32x128xf32, #tpu.memory_space<vmem>>, vector<32x32xf32>
      %c2_98 = arith.constant 2 : index
      %c0_99 = arith.constant 0 : index
      %c0_100 = arith.constant 0 : index
      %164 = vector.load %arg9[%c2_98, %c0_99, %c0_100] : memref<4x32x1xf32, #tpu.memory_space<vmem>>, vector<1x32x1xf32>
      %165 = vector.shape_cast %164 : vector<1x32x1xf32> to vector<32x1xf32>
      %166 = vector.broadcast %165 : vector<32x1xf32> to vector<32x32xf32>
      %167 = arith.divf %163, %166 : vector<32x32xf32>
      %c0_101 = arith.constant 0 : index
      %c96_102 = arith.constant 96 : index
      %168 = vector.load %arg10[%c0_101, %c96_102] : memref<32x128xf32, #tpu.memory_space<vmem>>, vector<32x32xf32>
      %c3_103 = arith.constant 3 : index
      %c0_104 = arith.constant 0 : index
      %c0_105 = arith.constant 0 : index
      %169 = vector.load %arg9[%c3_103, %c0_104, %c0_105] : memref<4x32x1xf32, #tpu.memory_space<vmem>>, vector<1x32x1xf32>
      %170 = vector.shape_cast %169 : vector<1x32x1xf32> to vector<32x1xf32>
      %171 = vector.broadcast %170 : vector<32x1xf32> to vector<32x32xf32>
      %172 = arith.divf %168, %171 : vector<32x32xf32>
      %173 = tpu.concatenate %157, %162, %167, %172 in 1 : vector<32x32xf32>, vector<32x32xf32>, vector<32x32xf32>, vector<32x32xf32> -> vector<32x128xf32>
      %174 = arith.truncf %173 : vector<32x128xf32> to vector<32x128xbf16>
      %c0_106 = arith.constant 0 : index
      %c0_107 = arith.constant 0 : index
      %c0_108 = arith.constant 0 : index
      %175 = vector.load %arg7[%c0_106, %c0_107, %c0_108] : memref<1x32x128xbf16, #tpu.memory_space<vmem>>, vector<1x32x128xbf16>
      %176 = vector.shape_cast %175 : vector<1x32x128xbf16> to vector<32x128xbf16>
      %177 = vector.shape_cast %174 : vector<32x128xbf16> to vector<1x32x128xbf16>
      tpu.vector_store %arg7[%c0_106, %c0_107, %c0_108], %177 {strides = array<i32>} : memref<1x32x128xbf16, #tpu.memory_space<vmem>>, vector<1x32x128xbf16>,
    } else {
    }
    return
  }
  func.func @transform_0(%arg0: i32, %arg1: i32, %arg2: i32) -> (i32, i32, i32) {
    %c0_i32 = arith.constant 0 : i32
    %c0_i32_0 = arith.constant 0 : i32
    return %arg0, %arg1, %c0_i32 : i32, i32, i32
  }
  func.func @transform_1(%arg0: i32, %arg1: i32, %arg2: i32) -> (i32, i32, i32) {
    %c0_i32 = arith.constant 0 : i32
    %c0_i32_0 = arith.constant 0 : i32
    return %arg0, %arg2, %c0_i32 : i32, i32, i32
  }
  func.func @transform_2(%arg0: i32, %arg1: i32, %arg2: i32) -> (i32, i32, i32) {
    %c0_i32 = arith.constant 0 : i32
    %c0_i32_0 = arith.constant 0 : i32
    return %arg0, %arg2, %c0_i32 : i32, i32, i32
  }
  func.func @transform_3(%arg0: i32, %arg1: i32, %arg2: i32) -> (i32, i32) {
    %c0_i32 = arith.constant 0 : i32
    %c0_i32_0 = arith.constant 0 : i32
    return %c0_i32, %arg2 : i32, i32
  }
  func.func @transform_4(%arg0: i32, %arg1: i32, %arg2: i32) -> (i32, i32, i32) {
    %c0_i32 = arith.constant 0 : i32
    %c0_i32_0 = arith.constant 0 : i32
    return %arg0, %arg1, %c0_i32 : i32, i32, i32
  }
}

module attributes {stable_mosaic.version = 11 : i64} {
  func.func @_out_ffn_kernel(%arg0: i32, %arg1: memref<32x128xbf16, #tpu.memory_space<vmem>>, %arg2: memref<32x128xbf16, #tpu.memory_space<vmem>>, %arg3: memref<128x128xbf16, #tpu.memory_space<vmem>>, %arg4: memref<1x128xf32, #tpu.memory_space<vmem>>, %arg5: memref<1x128xf32, #tpu.memory_space<vmem>>, %arg6: memref<1x128xf32, #tpu.memory_space<vmem>>, %arg7: memref<128x512xbf16, #tpu.memory_space<vmem>>, %arg8: memref<1x512xf32, #tpu.memory_space<vmem>>, %arg9: memref<512x128xbf16, #tpu.memory_space<vmem>>, %arg10: memref<1x128xf32, #tpu.memory_space<vmem>>, %arg11: memref<32x128xbf16, #tpu.memory_space<vmem>>) attributes {dimension_semantics = [#tpu.dimension_semantics<parallel>], iteration_bounds = array<i64: 2>, scalar_prefetch = 0 : i64, scratch_operands = 0 : i64, tpu.core_type = #tpu.core_type<tc>, window_params = [{transform_indices = @transform_0, window_bounds = array<i64: 32, 128>}, {transform_indices = @transform_1, window_bounds = array<i64: 32, 128>}, {pipeline_mode = #tpu.pipeline_mode<synchronous>, transform_indices = @transform_2, window_bounds = array<i64: 128, 128>}, {pipeline_mode = #tpu.pipeline_mode<synchronous>, transform_indices = @transform_3, window_bounds = array<i64: 1, 128>}, {pipeline_mode = #tpu.pipeline_mode<synchronous>, transform_indices = @transform_4, window_bounds = array<i64: 1, 128>}, {pipeline_mode = #tpu.pipeline_mode<synchronous>, transform_indices = @transform_5, window_bounds = array<i64: 1, 128>}, {pipeline_mode = #tpu.pipeline_mode<synchronous>, transform_indices = @transform_6, window_bounds = array<i64: 128, 512>}, {pipeline_mode = #tpu.pipeline_mode<synchronous>, transform_indices = @transform_7, window_bounds = array<i64: 1, 512>}, {pipeline_mode = #tpu.pipeline_mode<synchronous>, transform_indices = @transform_8, window_bounds = array<i64: 512, 128>}, {pipeline_mode = #tpu.pipeline_mode<synchronous>, transform_indices = @transform_9, window_bounds = array<i64: 1, 128>}, {transform_indices = @transform_10, window_bounds = array<i64: 32, 128>}]} {
    %c0 = arith.constant 0 : index
    %c0_0 = arith.constant 0 : index
    %0 = vector.load %arg1[%c0, %c0_0] : memref<32x128xbf16, #tpu.memory_space<vmem>>, vector<32x128xbf16>
    %1 = arith.extf %0 : vector<32x128xbf16> to vector<32x128xf32>
    %c0_1 = arith.constant 0 : index
    %c0_2 = arith.constant 0 : index
    %2 = vector.load %arg2[%c0_1, %c0_2] : memref<32x128xbf16, #tpu.memory_space<vmem>>, vector<32x128xbf16>
    %c0_3 = arith.constant 0 : index
    %c0_4 = arith.constant 0 : index
    %3 = vector.load %arg3[%c0_3, %c0_4] : memref<128x128xbf16, #tpu.memory_space<vmem>>, vector<128x128xbf16>
    %cst = arith.constant dense<0.000000e+00> : vector<32x128xf32>
    %4 = tpu.matmul %2, %3, %cst {dimension_numbers = #tpu.dot_dimension_numbers<[1], [0], [0], [1], [0, 0, 1, 1], [], []>} : vector<32x128xbf16>, vector<128x128xbf16>, vector<32x128xf32> -> vector<32x128xf32>
    %c0_5 = arith.constant 0 : index
    %c0_6 = arith.constant 0 : index
    %5 = vector.load %arg4[%c0_5, %c0_6] : memref<1x128xf32, #tpu.memory_space<vmem>>, vector<1x128xf32>
    %6 = vector.broadcast %5 : vector<1x128xf32> to vector<32x128xf32>
    %7 = arith.addf %4, %6 : vector<32x128xf32>
    %8 = arith.addf %1, %7 : vector<32x128xf32>
    %c0_7 = arith.constant 0 : index
    %c0_8 = arith.constant 0 : index
    %9 = vector.load %arg5[%c0_7, %c0_8] : memref<1x128xf32, #tpu.memory_space<vmem>>, vector<1x128xf32>
    %c0_9 = arith.constant 0 : index
    %c0_10 = arith.constant 0 : index
    %10 = vector.load %arg6[%c0_9, %c0_10] : memref<1x128xf32, #tpu.memory_space<vmem>>, vector<1x128xf32>
    %cst_11 = arith.constant dense<0.000000e+00> : vector<32xf32>
    %11 = vector.multi_reduction <add>, %8, %cst_11 [1] : vector<32x128xf32> to vector<32xf32>
    %12 = vector.shape_cast %11 : vector<32xf32> to vector<32x1xf32>
    %cst_12 = arith.constant 1.280000e+02 : f32
    %13 = vector.broadcast %cst_12 : f32 to vector<32x1xf32>
    %14 = arith.divf %12, %13 : vector<32x1xf32>
    %15 = vector.broadcast %14 : vector<32x1xf32> to vector<32x128xf32>
    %16 = arith.subf %8, %15 : vector<32x128xf32>
    %17 = arith.mulf %16, %16 : vector<32x128xf32>
    %cst_13 = arith.constant dense<0.000000e+00> : vector<32xf32>
    %18 = vector.multi_reduction <add>, %17, %cst_13 [1] : vector<32x128xf32> to vector<32xf32>
    %19 = vector.shape_cast %18 : vector<32xf32> to vector<32x1xf32>
    %cst_14 = arith.constant 1.280000e+02 : f32
    %20 = vector.broadcast %cst_14 : f32 to vector<32x1xf32>
    %21 = arith.divf %19, %20 : vector<32x1xf32>
    %22 = vector.broadcast %14 : vector<32x1xf32> to vector<32x128xf32>
    %23 = arith.subf %8, %22 : vector<32x128xf32>
    %cst_15 = arith.constant 9.99999974E-6 : f32
    %24 = vector.broadcast %cst_15 : f32 to vector<32x1xf32>
    %25 = arith.addf %21, %24 : vector<32x1xf32>
    %26 = math.rsqrt %25 : vector<32x1xf32>
    %27 = vector.broadcast %26 : vector<32x1xf32> to vector<32x128xf32>
    %28 = arith.mulf %23, %27 : vector<32x128xf32>
    %29 = vector.broadcast %9 : vector<1x128xf32> to vector<32x128xf32>
    %30 = arith.mulf %28, %29 : vector<32x128xf32>
    %31 = vector.broadcast %10 : vector<1x128xf32> to vector<32x128xf32>
    %32 = arith.addf %30, %31 : vector<32x128xf32>
    %33 = arith.truncf %32 : vector<32x128xf32> to vector<32x128xbf16>
    %c0_16 = arith.constant 0 : index
    %c0_17 = arith.constant 0 : index
    %34 = vector.load %arg7[%c0_16, %c0_17] : memref<128x512xbf16, #tpu.memory_space<vmem>>, vector<128x512xbf16>
    %cst_18 = arith.constant dense<0.000000e+00> : vector<32x512xf32>
    %35 = tpu.matmul %33, %34, %cst_18 {dimension_numbers = #tpu.dot_dimension_numbers<[1], [0], [0], [1], [0, 0, 1, 1], [], []>} : vector<32x128xbf16>, vector<128x512xbf16>, vector<32x512xf32> -> vector<32x512xf32>
    %c0_19 = arith.constant 0 : index
    %c0_20 = arith.constant 0 : index
    %36 = vector.load %arg8[%c0_19, %c0_20] : memref<1x512xf32, #tpu.memory_space<vmem>>, vector<1x512xf32>
    %37 = vector.broadcast %36 : vector<1x512xf32> to vector<32x512xf32>
    %38 = arith.addf %35, %37 : vector<32x512xf32>
    %39 = arith.mulf %38, %38 : vector<32x512xf32>
    %40 = arith.mulf %38, %39 : vector<32x512xf32>
    %cst_21 = arith.constant 4.471500e-02 : f32
    %41 = vector.broadcast %cst_21 : f32 to vector<32x512xf32>
    %42 = arith.mulf %41, %40 : vector<32x512xf32>
    %43 = arith.addf %38, %42 : vector<32x512xf32>
    %cst_22 = arith.constant 0.797884583 : f32
    %44 = vector.broadcast %cst_22 : f32 to vector<32x512xf32>
    %45 = arith.mulf %44, %43 : vector<32x512xf32>
    %46 = math.tanh %45 : vector<32x512xf32>
    %cst_23 = arith.constant 1.000000e+00 : f32
    %47 = vector.broadcast %cst_23 : f32 to vector<32x512xf32>
    %48 = arith.addf %47, %46 : vector<32x512xf32>
    %cst_24 = arith.constant 5.000000e-01 : f32
    %49 = vector.broadcast %cst_24 : f32 to vector<32x512xf32>
    %50 = arith.mulf %49, %48 : vector<32x512xf32>
    %51 = arith.mulf %38, %50 : vector<32x512xf32>
    %52 = arith.truncf %51 : vector<32x512xf32> to vector<32x512xbf16>
    %c0_25 = arith.constant 0 : index
    %c0_26 = arith.constant 0 : index
    %53 = vector.load %arg9[%c0_25, %c0_26] : memref<512x128xbf16, #tpu.memory_space<vmem>>, vector<512x128xbf16>
    %cst_27 = arith.constant dense<0.000000e+00> : vector<32x128xf32>
    %54 = tpu.matmul %52, %53, %cst_27 {dimension_numbers = #tpu.dot_dimension_numbers<[1], [0], [0], [1], [0, 0, 1, 1], [], []>} : vector<32x512xbf16>, vector<512x128xbf16>, vector<32x128xf32> -> vector<32x128xf32>
    %c0_28 = arith.constant 0 : index
    %c0_29 = arith.constant 0 : index
    %55 = vector.load %arg10[%c0_28, %c0_29] : memref<1x128xf32, #tpu.memory_space<vmem>>, vector<1x128xf32>
    %56 = vector.broadcast %55 : vector<1x128xf32> to vector<32x128xf32>
    %57 = arith.addf %54, %56 : vector<32x128xf32>
    %58 = arith.addf %8, %57 : vector<32x128xf32>
    %59 = arith.truncf %58 : vector<32x128xf32> to vector<32x128xbf16>
    %c0_30 = arith.constant 0 : index
    %c0_31 = arith.constant 0 : index
    %60 = vector.load %arg11[%c0_30, %c0_31] : memref<32x128xbf16, #tpu.memory_space<vmem>>, vector<32x128xbf16>
    tpu.vector_store %arg11[%c0_30, %c0_31], %59 {strides = array<i32>} : memref<32x128xbf16, #tpu.memory_space<vmem>>, vector<32x128xbf16>,
    return
  }
  func.func @transform_0(%arg0: i32) -> (i32, i32) {
    %c0_i32 = arith.constant 0 : i32
    %c0_i32_0 = arith.constant 0 : i32
    return %arg0, %c0_i32 : i32, i32
  }
  func.func @transform_1(%arg0: i32) -> (i32, i32) {
    %c0_i32 = arith.constant 0 : i32
    %c0_i32_0 = arith.constant 0 : i32
    return %arg0, %c0_i32 : i32, i32
  }
  func.func @transform_2(%arg0: i32) -> (i32, i32) {
    %c0_i32 = arith.constant 0 : i32
    %c0_i32_0 = arith.constant 0 : i32
    %c0_i32_1 = arith.constant 0 : i32
    return %c0_i32, %c0_i32_0 : i32, i32
  }
  func.func @transform_3(%arg0: i32) -> (i32, i32) {
    %c0_i32 = arith.constant 0 : i32
    %c0_i32_0 = arith.constant 0 : i32
    %c0_i32_1 = arith.constant 0 : i32
    return %c0_i32, %c0_i32_0 : i32, i32
  }
  func.func @transform_4(%arg0: i32) -> (i32, i32) {
    %c0_i32 = arith.constant 0 : i32
    %c0_i32_0 = arith.constant 0 : i32
    %c0_i32_1 = arith.constant 0 : i32
    return %c0_i32, %c0_i32_0 : i32, i32
  }
  func.func @transform_5(%arg0: i32) -> (i32, i32) {
    %c0_i32 = arith.constant 0 : i32
    %c0_i32_0 = arith.constant 0 : i32
    %c0_i32_1 = arith.constant 0 : i32
    return %c0_i32, %c0_i32_0 : i32, i32
  }
  func.func @transform_6(%arg0: i32) -> (i32, i32) {
    %c0_i32 = arith.constant 0 : i32
    %c0_i32_0 = arith.constant 0 : i32
    %c0_i32_1 = arith.constant 0 : i32
    return %c0_i32, %c0_i32_0 : i32, i32
  }
  func.func @transform_7(%arg0: i32) -> (i32, i32) {
    %c0_i32 = arith.constant 0 : i32
    %c0_i32_0 = arith.constant 0 : i32
    %c0_i32_1 = arith.constant 0 : i32
    return %c0_i32, %c0_i32_0 : i32, i32
  }
  func.func @transform_8(%arg0: i32) -> (i32, i32) {
    %c0_i32 = arith.constant 0 : i32
    %c0_i32_0 = arith.constant 0 : i32
    %c0_i32_1 = arith.constant 0 : i32
    return %c0_i32, %c0_i32_0 : i32, i32
  }
  func.func @transform_9(%arg0: i32) -> (i32, i32) {
    %c0_i32 = arith.constant 0 : i32
    %c0_i32_0 = arith.constant 0 : i32
    %c0_i32_1 = arith.constant 0 : i32
    return %c0_i32, %c0_i32_0 : i32, i32
  }
  func.func @transform_10(%arg0: i32) -> (i32, i32) {
    %c0_i32 = arith.constant 0 : i32
    %c0_i32_0 = arith.constant 0 : i32
    return %arg0, %c0_i32 : i32, i32
  }
}

module attributes {stable_mosaic.version = 11 : i64} {
  func.func @_qkv_kernel(%arg0: i32, %arg1: memref<32x128xbf16, #tpu.memory_space<vmem>>, %arg2: memref<1x128xf32, #tpu.memory_space<vmem>>, %arg3: memref<1x128xf32, #tpu.memory_space<vmem>>, %arg4: memref<128x384xbf16, #tpu.memory_space<vmem>>, %arg5: memref<1x384xf32, #tpu.memory_space<vmem>>, %arg6: memref<32x128xbf16, #tpu.memory_space<vmem>>, %arg7: memref<32x128xbf16, #tpu.memory_space<vmem>>, %arg8: memref<32x128xbf16, #tpu.memory_space<vmem>>) attributes {dimension_semantics = [#tpu.dimension_semantics<parallel>], iteration_bounds = array<i64: 2>, scalar_prefetch = 0 : i64, scratch_operands = 0 : i64, tpu.core_type = #tpu.core_type<tc>, window_params = [{transform_indices = @transform_0, window_bounds = array<i64: 32, 128>}, {pipeline_mode = #tpu.pipeline_mode<synchronous>, transform_indices = @transform_1, window_bounds = array<i64: 1, 128>}, {pipeline_mode = #tpu.pipeline_mode<synchronous>, transform_indices = @transform_2, window_bounds = array<i64: 1, 128>}, {pipeline_mode = #tpu.pipeline_mode<synchronous>, transform_indices = @transform_3, window_bounds = array<i64: 128, 384>}, {pipeline_mode = #tpu.pipeline_mode<synchronous>, transform_indices = @transform_4, window_bounds = array<i64: 1, 384>}, {transform_indices = @transform_5, window_bounds = array<i64: 32, 128>}, {transform_indices = @transform_6, window_bounds = array<i64: 32, 128>}, {transform_indices = @transform_7, window_bounds = array<i64: 32, 128>}]} {
    %c0 = arith.constant 0 : index
    %c0_0 = arith.constant 0 : index
    %0 = vector.load %arg1[%c0, %c0_0] : memref<32x128xbf16, #tpu.memory_space<vmem>>, vector<32x128xbf16>
    %1 = arith.extf %0 : vector<32x128xbf16> to vector<32x128xf32>
    %c0_1 = arith.constant 0 : index
    %c0_2 = arith.constant 0 : index
    %2 = vector.load %arg2[%c0_1, %c0_2] : memref<1x128xf32, #tpu.memory_space<vmem>>, vector<1x128xf32>
    %c0_3 = arith.constant 0 : index
    %c0_4 = arith.constant 0 : index
    %3 = vector.load %arg3[%c0_3, %c0_4] : memref<1x128xf32, #tpu.memory_space<vmem>>, vector<1x128xf32>
    %cst = arith.constant dense<0.000000e+00> : vector<32xf32>
    %4 = vector.multi_reduction <add>, %1, %cst [1] : vector<32x128xf32> to vector<32xf32>
    %5 = vector.shape_cast %4 : vector<32xf32> to vector<32x1xf32>
    %cst_5 = arith.constant 1.280000e+02 : f32
    %6 = vector.broadcast %cst_5 : f32 to vector<32x1xf32>
    %7 = arith.divf %5, %6 : vector<32x1xf32>
    %8 = vector.broadcast %7 : vector<32x1xf32> to vector<32x128xf32>
    %9 = arith.subf %1, %8 : vector<32x128xf32>
    %10 = arith.mulf %9, %9 : vector<32x128xf32>
    %cst_6 = arith.constant dense<0.000000e+00> : vector<32xf32>
    %11 = vector.multi_reduction <add>, %10, %cst_6 [1] : vector<32x128xf32> to vector<32xf32>
    %12 = vector.shape_cast %11 : vector<32xf32> to vector<32x1xf32>
    %cst_7 = arith.constant 1.280000e+02 : f32
    %13 = vector.broadcast %cst_7 : f32 to vector<32x1xf32>
    %14 = arith.divf %12, %13 : vector<32x1xf32>
    %15 = vector.broadcast %7 : vector<32x1xf32> to vector<32x128xf32>
    %16 = arith.subf %1, %15 : vector<32x128xf32>
    %cst_8 = arith.constant 9.99999974E-6 : f32
    %17 = vector.broadcast %cst_8 : f32 to vector<32x1xf32>
    %18 = arith.addf %14, %17 : vector<32x1xf32>
    %19 = math.rsqrt %18 : vector<32x1xf32>
    %20 = vector.broadcast %19 : vector<32x1xf32> to vector<32x128xf32>
    %21 = arith.mulf %16, %20 : vector<32x128xf32>
    %22 = vector.broadcast %2 : vector<1x128xf32> to vector<32x128xf32>
    %23 = arith.mulf %21, %22 : vector<32x128xf32>
    %24 = vector.broadcast %3 : vector<1x128xf32> to vector<32x128xf32>
    %25 = arith.addf %23, %24 : vector<32x128xf32>
    %26 = arith.truncf %25 : vector<32x128xf32> to vector<32x128xbf16>
    %c0_9 = arith.constant 0 : index
    %c0_10 = arith.constant 0 : index
    %27 = vector.load %arg4[%c0_9, %c0_10] : memref<128x384xbf16, #tpu.memory_space<vmem>>, vector<128x384xbf16>
    %cst_11 = arith.constant dense<0.000000e+00> : vector<32x384xf32>
    %28 = tpu.matmul %26, %27, %cst_11 {dimension_numbers = #tpu.dot_dimension_numbers<[1], [0], [0], [1], [0, 0, 1, 1], [], []>} : vector<32x128xbf16>, vector<128x384xbf16>, vector<32x384xf32> -> vector<32x384xf32>
    %c0_12 = arith.constant 0 : index
    %c0_13 = arith.constant 0 : index
    %29 = vector.load %arg5[%c0_12, %c0_13] : memref<1x384xf32, #tpu.memory_space<vmem>>, vector<1x384xf32>
    %30 = vector.broadcast %29 : vector<1x384xf32> to vector<32x384xf32>
    %31 = arith.addf %28, %30 : vector<32x384xf32>
    %32 = vector.extract_strided_slice %31 {offsets = [0, 0], sizes = [32, 128], strides = [1, 1]} : vector<32x384xf32> to vector<32x128xf32>
    %33 = arith.truncf %32 : vector<32x128xf32> to vector<32x128xbf16>
    %c0_14 = arith.constant 0 : index
    %c0_15 = arith.constant 0 : index
    %34 = vector.load %arg6[%c0_14, %c0_15] : memref<32x128xbf16, #tpu.memory_space<vmem>>, vector<32x128xbf16>
    tpu.vector_store %arg6[%c0_14, %c0_15], %33 {strides = array<i32>} : memref<32x128xbf16, #tpu.memory_space<vmem>>, vector<32x128xbf16>,
    %35 = vector.extract_strided_slice %31 {offsets = [0, 128], sizes = [32, 128], strides = [1, 1]} : vector<32x384xf32> to vector<32x128xf32>
    %36 = arith.truncf %35 : vector<32x128xf32> to vector<32x128xbf16>
    %c0_16 = arith.constant 0 : index
    %c0_17 = arith.constant 0 : index
    %37 = vector.load %arg7[%c0_16, %c0_17] : memref<32x128xbf16, #tpu.memory_space<vmem>>, vector<32x128xbf16>
    tpu.vector_store %arg7[%c0_16, %c0_17], %36 {strides = array<i32>} : memref<32x128xbf16, #tpu.memory_space<vmem>>, vector<32x128xbf16>,
    %38 = vector.extract_strided_slice %31 {offsets = [0, 256], sizes = [32, 128], strides = [1, 1]} : vector<32x384xf32> to vector<32x128xf32>
    %39 = arith.truncf %38 : vector<32x128xf32> to vector<32x128xbf16>
    %c0_18 = arith.constant 0 : index
    %c0_19 = arith.constant 0 : index
    %40 = vector.load %arg8[%c0_18, %c0_19] : memref<32x128xbf16, #tpu.memory_space<vmem>>, vector<32x128xbf16>
    tpu.vector_store %arg8[%c0_18, %c0_19], %39 {strides = array<i32>} : memref<32x128xbf16, #tpu.memory_space<vmem>>, vector<32x128xbf16>,
    return
  }
  func.func @transform_0(%arg0: i32) -> (i32, i32) {
    %c0_i32 = arith.constant 0 : i32
    %c0_i32_0 = arith.constant 0 : i32
    return %arg0, %c0_i32 : i32, i32
  }
  func.func @transform_1(%arg0: i32) -> (i32, i32) {
    %c0_i32 = arith.constant 0 : i32
    %c0_i32_0 = arith.constant 0 : i32
    %c0_i32_1 = arith.constant 0 : i32
    return %c0_i32, %c0_i32_0 : i32, i32
  }
  func.func @transform_2(%arg0: i32) -> (i32, i32) {
    %c0_i32 = arith.constant 0 : i32
    %c0_i32_0 = arith.constant 0 : i32
    %c0_i32_1 = arith.constant 0 : i32
    return %c0_i32, %c0_i32_0 : i32, i32
  }
  func.func @transform_3(%arg0: i32) -> (i32, i32) {
    %c0_i32 = arith.constant 0 : i32
    %c0_i32_0 = arith.constant 0 : i32
    %c0_i32_1 = arith.constant 0 : i32
    return %c0_i32, %c0_i32_0 : i32, i32
  }
  func.func @transform_4(%arg0: i32) -> (i32, i32) {
    %c0_i32 = arith.constant 0 : i32
    %c0_i32_0 = arith.constant 0 : i32
    %c0_i32_1 = arith.constant 0 : i32
    return %c0_i32, %c0_i32_0 : i32, i32
  }
  func.func @transform_5(%arg0: i32) -> (i32, i32) {
    %c0_i32 = arith.constant 0 : i32
    %c0_i32_0 = arith.constant 0 : i32
    return %arg0, %c0_i32 : i32, i32
  }
  func.func @transform_6(%arg0: i32) -> (i32, i32) {
    %c0_i32 = arith.constant 0 : i32
    %c0_i32_0 = arith.constant 0 : i32
    return %arg0, %c0_i32 : i32, i32
  }
  func.func @transform_7(%arg0: i32) -> (i32, i32) {
    %c0_i32 = arith.constant 0 : i32
    %c0_i32_0 = arith.constant 0 : i32
    return %arg0, %c0_i32 : i32, i32
  }
}

</mosaic_0001>

<bundles_post_ra>
// kernel: vision_transformer_forward.7
= control target key start
LH: loop header
LB: loop body
LE: loop exit
PB: predicated region body
PF: predicated region fallthrough
CT: control target
= control target key end

     0   :  { %8 = vsyncpa [#allocation3], 0  ;;  %s489_s0 = inlined_call_operand.hbm [shape: bf16[32,128], index: 0, kind: input, shape index: {}]   ;;  %s490_s1 = inlined_call_operand.hbm [shape: bf16[128,128], index: 1, kind: input, shape index: {}]   ;;  %s491_s2 = inlined_call_operand.hbm [shape: f32[1,128], index: 2, kind: input, shape index: {}]   ;;  %s492_s3 = inlined_call_operand.hbm [shape: bf16[32,128], index: 3, kind: output, shape index: {}]  }
   0x1   :  { %9 = vsyncpa [#allocation6], 0 }
   0x2   :  { %10 = vsyncpa [#allocation4], 0  ;;  %s399_s12 = smov [#allocation5]   ;;  %s400_s14 = smov [#allocation2]  }
   0x3   :  { %s28_s13 = sshll.u32 %s399_s12, 4  ;;  %s16_s15 = sshll.u32 %s400_s14, 4  ;;  %s29_s13 = int_to_ptr.vmem [resolvable:$true] %s28_s13  ;;  %s425_s15 = int_to_ptr.vmem [resolvable:$true] %s16_s15 }
   0x4   :  { %s305_s18 = scalar_lea.hbm %s490_s1, 1024 }
   0x5   :  { %p306_p0 = scmp.ne.s32.totalorder %s490_s1, %s305_s18  ;;  %p309_p1 = scmp.lt.u32.totalorder %s305_s18, %s490_s1 }
   0x7   :  { %p311_p2 = pnand %p309_p1, %p306_p0 }
   0x9   :  { %314 = shalt.err (!%p311_p2)
}
   0xa   :  { %s315_s23 = scalar_lea.vmem %s29_s13, 1024  ;;  %p320_p4 = scmp.lt.s32.totalorder %s29_s13, %s29_s13 }
   0xb   :  { %p316_p3 = scmp.ne.s32.totalorder %s29_s13, %s315_s23  ;;  %p321_p5 = scmp.lt.s32.totalorder %s315_s23, %s315_s23 }
   0xd   :  { %p322_p6 = por %p321_p5, %p320_p4 }
   0xf   :  { %p323_p7 = pnand %p322_p6, %p316_p3 }
  0x11   :  { %326 = shalt.err (!%p323_p7)
}
  0x12   :  { %s401_s24 = smov 64   ;;  %s402_s25 = smov 4  }
  0x13   :  { %34 = dma.hbm_to_vmem [thread:$0]  %s490_s1, 1024, %s29_s13, [#allocation6], %s401_s24, %s401_s24, %s402_s25  }
  0x14   :  { %s327_s30 = scalar_lea.hbm %s489_s0, 256 }
  0x15   :  { %p328_p8 = scmp.ne.s32.totalorder %s489_s0, %s327_s30  ;;  %p331_p9 = scmp.lt.u32.totalorder %s327_s30, %s489_s0 }
  0x17   :  { %p333_p10 = pnand %p331_p9, %p328_p8 }
  0x19   :  { %336 = shalt.err (!%p333_p10)
}
  0x1a   :  { %s337_s8 = scalar_lea.vmem %s425_s15, 256  ;;  %p342_p12 = scmp.lt.s32.totalorder %s425_s15, %s425_s15 }
  0x1b   :  { %p338_p11 = scmp.ne.s32.totalorder %s425_s15, %s337_s8  ;;  %p343_p13 = scmp.lt.s32.totalorder %s337_s8, %s337_s8 }
  0x1d   :  { %p344_p0 = por %p343_p13, %p342_p12 }
  0x1f   :  { %p345_p1 = pnand %p344_p0, %p338_p11 }
  0x21   :  { %348 = shalt.err (!%p345_p1)
}
  0x22   :  { %22 = dma.hbm_to_vmem [thread:$0]  %s489_s0, 256, %s425_s15, [#allocation3], %s401_s24, %s401_s24, %s402_s25  }
  0x23   :  { %s403_s10 = smov [#allocation7]   ;;  %s349_s14 = scalar_lea.hbm %s491_s2, 16 }
  0x24   :  { %s41_s11 = sshll.u32 %s403_s10, 4  ;;  %p350_p2 = scmp.ne.s32.totalorder %s491_s2, %s349_s14  ;;  %s42_s11 = int_to_ptr.vmem [resolvable:$true] %s41_s11 }
  0x25   :  { %p353_p3 = scmp.lt.u32.totalorder %s349_s14, %s491_s2 }
  0x27   :  { %p355_p4 = pnand %p353_p3, %p350_p2 }
  0x29   :  { %358 = shalt.err (!%p355_p4)
}
  0x2a   :  { %s359_s20 = scalar_lea.vmem %s42_s11, 16  ;;  %s363_s0 = scalar_lea.vmem %s42_s11, 32 }
  0x2b   :  { %p360_p5 = scmp.ne.s32.totalorder %s42_s11, %s359_s20  ;;  %p364_p6 = scmp.lt.s32.totalorder %s42_s11, %s42_s11 }
  0x2c   :  { %p365_p7 = scmp.lt.s32.totalorder %s363_s0, %s359_s20 }
  0x2e   :  { %p366_p8 = por %p365_p7, %p364_p6 }
  0x30   :  { %p367_p9 = pnand %p366_p8, %p360_p5 }
  0x32   :  { %370 = shalt.err (!%p367_p9)
}
  0x33   :  { %44 = dma.hbm_to_vmem [thread:$0]  %s491_s2, 16, %s42_s11, [#allocation6]  }
  0x34   :  { %393 = dma.done.wait [#allocation3], 256  }
  0x35   :  { %394 = vsyncadd [#allocation3], 4294967040 }
  0x36   :  { %395 = dma.done.wait [#allocation6], 1040  }
  0x37   :  { %396 = vsyncadd [#allocation6], 4294966256  ;;  %v295_v0 = vld [vmem:[#allocation5] sm:$0xff]   ;;  %v296_v1 = vld [vmem:[#allocation5 + $0x8] sm:$0xff]   ;;  %s404_s2 = smov [#allocation8]  }
  0x38   :  { %269 = vmatprep.subr.bf16.mxu0 %v295_v0  ;;  %v297_v2 = vld [vmem:[#allocation5 + $0x10] sm:$0xff]   ;;  %v298_v3 = vld [vmem:[#allocation5 + $0x18] sm:$0xff]   ;;  %v299_v5 = vld [vmem:[#allocation5 + $0x20] sm:$0xff]   ;;  %s216_s22 = sshll.u32 %s404_s2, 4  ;;  %s217_s22 = int_to_ptr.vmem [resolvable:$true] %s216_s22 }
  0x39   :  { %270 = vmatpush3.bf16.msra.mxu0 %v295_v0  ;;  %v303_v4 = vld [vmem:[#allocation2] sm:$0xff]   ;;  %v300_v6 = vld [vmem:[#allocation5 + $0x28] sm:$0xff]   ;;  %v302_v8 = vld [vmem:[#allocation5 + $0x38] sm:$0xff]   ;;  %s371_s23 = scalar_lea.vmem %s217_s22, 256  ;;  %p376_p11 = scmp.lt.s32.totalorder %s217_s22, %s217_s22 }
  0x3a   :  { %271 = vmatprep.subr.bf16.mxu0 %v296_v1  ;;  %285 = vmatprep.mubr.bf16.mxu0 %v303_v4  ;;  %v301_v7 = vld [vmem:[#allocation5 + $0x30] sm:$0xff]   ;;  %v304_v9 = vld [vmem:[#allocation2 + $0x8] sm:$0xff]   ;;  %v229_v11 = vld [vmem:[#allocation7] ss:$0 sm:$0xff]  ;;  %p372_p10 = scmp.ne.s32.totalorder %s217_s22, %s371_s23  ;;  %p377_p12 = scmp.lt.s32.totalorder %s371_s23, %s371_s23 }
  0x3c   :  { %p378_p13 = por %p377_p12, %p376_p11 }
  0x3d   :  { %272 = vmatpush3.bf16.msra.mxu0 %v296_v1 }
  0x3e   :  { %273 = vmatprep.subr.bf16.mxu0 %v297_v2  ;;  %p379_p0 = pnand %p378_p13, %p372_p10 }
  0x41   :  { %274 = vmatpush3.bf16.msra.mxu0 %v297_v2 }
  0x42   :  { %275 = vmatprep.subr.bf16.mxu0 %v298_v3 }
  0x45   :  { %276 = vmatpush3.bf16.msra.mxu0 %v298_v3 }
  0x46   :  { %277 = vmatprep.subr.bf16.mxu0 %v299_v5 }
  0x49   :  { %278 = vmatpush3.bf16.msra.mxu0 %v299_v5 }
  0x4a   :  { %279 = vmatprep.subr.bf16.mxu0 %v300_v6 }
  0x4d   :  { %280 = vmatpush3.bf16.msra.mxu0 %v300_v6 }
  0x4e   :  { %281 = vmatprep.subr.bf16.mxu0 %v301_v7 }
  0x51   :  { %282 = vmatpush3.bf16.msra.mxu0 %v301_v7 }
  0x52   :  { %283 = vmatprep.subr.bf16.mxu0 %v302_v8 }
  0x55   :  { %284 = vmatpush3.bf16.msra.mxu0 %v302_v8 }
  0x58   :  { %286 = vmatmul.mubr.bf16.vlgmr.msra.gmra.mrb[0].mxu0 %v304_v9 }
 0x12b   :  { %v287_v10 = vpop.f32.mrb[0].mxu0 }
 0x12c   :  { %v176_v12 = vpop.f32.mrb[1].mxu0  ;;  %v185_v14 = vadd.f32 %v287_v10, %v229_v11 }
 0x12d   :  { %v288_v13 = vpop.f32.mrb[2].mxu0  ;;  %v177_v17 = vadd.f32 %v229_v11, %v176_v12 }
 0x12e   :  { %v188_v15 = vadd.f32 %v288_v13, %v229_v11  ;;  %v179_v16 = vpop.f32.mrb[3].mxu0 }
 0x12f   :  { %v180_v18 = vadd.f32 %v229_v11, %v179_v16 }
 0x130   :  { %v256_v19 = vpack.c.bf16 %v188_v15, %v185_v14 }
 0x131   :  { %v251_v20 = vpack.c.bf16 %v180_v18, %v177_v17 }
 0x132   :  { %258 = vst [vmem:[#allocation8 + $0x8] sm:$0xff] %v256_v19  }
 0x133   :  { %252 = vst [vmem:[#allocation8] sm:$0xff] %v251_v20  }
 0x134   :  { %382 = shalt.err (!%p379_p0)
}
 0x135   :  { %s383_s28 = scalar_lea.hbm %s492_s3, 256 }
 0x136   :  { %p384_p1 = scmp.ne.s32.totalorder %s492_s3, %s383_s28  ;;  %p387_p2 = scmp.lt.u32.totalorder %s383_s28, %s492_s3 }
 0x138   :  { %p389_p3 = pnand %p387_p2, %p384_p1 }
 0x13a   :  { %392 = shalt.err (!%p389_p3)
}
 0x13b   :  { %222 = dma.vmem_to_hbm [thread:$0]  %s217_s22, 256, %s492_s3, [#allocation4], %s401_s24, %s401_s24, %s402_s25  }
 0x13c   :  { %397 = dma.done.wait [#allocation4], 256  }
 0x13d   :  { %398 = vsyncadd [#allocation4], 4294967040 }
 0x13e   :  { %226 = vsyncpa [#allocation3], 1 }
 0x13f   :  { %227 = vsyncpa [#allocation6], 1 }
 0x140   :  { %228 = vsyncpa [#allocation4], 1 }

// kernel: vision_transformer_forward.8
= control target key start
LH: loop header
LB: loop body
LE: loop exit
PB: predicated region body
PF: predicated region fallthrough
CT: control target
= control target key end

     0   :  { %s2031_s0 = inlined_call_operand.hbm [shape: bf16[64,128], index: 0, kind: input, shape index: {}]   ;;  %s2032_s1 = inlined_call_operand.hbm [shape: f32[1,128], index: 1, kind: input, shape index: {}]   ;;  %s2033_s2 = inlined_call_operand.hbm [shape: f32[1,128], index: 2, kind: input, shape index: {}]   ;;  %s2034_s3 = inlined_call_operand.hbm [shape: bf16[128,384], index: 3, kind: input, shape index: {}]   ;;  %s2035_s4 = inlined_call_operand.hbm [shape: f32[1,384], index: 4, kind: input, shape index: {}]   ;;  %s2036_s5 = inlined_call_operand.hbm [shape: bf16[64,128], index: 5, kind: output, shape index: {0}]   ;;  %s2037_s6 = inlined_call_operand.hbm [shape: bf16[64,128], index: 6, kind: output, shape index: {1}]   ;;  %s2038_s7 = inlined_call_operand.hbm [shape: bf16[64,128], index: 7, kind: output, shape index: {2}]  }
   0x1   :  { %2043 = sst [smem:[#allocation20_spill]] %s2031_s0 }
   0x2   :  { %2044 = sst [smem:[#allocation21_spill]] %s2032_s1 }
   0x3   :  { %2045 = sst [smem:[#allocation22_spill]] %s2033_s2 }
   0x4   :  { %2046 = sst [smem:[#allocation23_spill]] %s2034_s3 }
   0x5   :  { %13 = vsyncpa [#allocation3], 0 }
   0x6   :  { %15 = vsyncpa [#allocation3 + $0x1], 0 }
   0x7   :  { %16 = vsyncpa [#allocation6], 0 }
   0x8   :  { %17 = vsyncpa [#allocation9], 0 }
   0x9   :  { %18 = vsyncpa [#allocation4], 0 }
   0xa   :  { %20 = vsyncpa [#allocation4 + $0x1], 0 }
   0xb   :  { %21 = vsyncpa [#allocation13], 0 }
   0xc   :  { %23 = vsyncpa [#allocation13 + $0x1], 0  ;;  %s1649_s24 = smov 0   ;;  %s1651_s25 = smov 0  }
   0xd   :  { %s1653_s26 = smov 0   ;;  %s1655_s27 = smov 0  }
   0xe LB: > { %s1670_s28 = sadd.s32 4294967295, %s1592_s27   ;;  %s2042_s29 = sadd.s32 4294967294, %s1592_s27   ;;  %s1592_s27 = sphi %s1655_s27, %s2072_s27   ;;  %s1588_s26 = sphi %s1653_s26, %s2071_s26   ;;  %s1584_s25 = sphi %s1651_s25, %s2070_s25   ;;  %s1580_s24 = sphi %s1649_s24, %s2069_s24  }
   0xf   : > { %p49_p0 = scmp.ne.s32.totalorder %s1584_s25, %s1580_s24  ;;  %p2039_p1 = scmp.eq.s32.totalorder %s1670_s28, 0 }
  0x10   : > { %p163_p3 = scmp.eq.s32.totalorder %s2042_s29, 1  ;;  %p1017_p5 = scmp.ge.s32.totalorder %s1592_s27, 1 }
  0x11   : > { %p1681_p4 = por %p2039_p1, %p49_p0  ;;  %p222_p7 = scmp.lt.s32.totalorder %s1592_s27, 3 }
  0x12   : > { %p1686_p6 = por %p163_p3, %p49_p0  ;;  %s1594_s10 = smov [#allocation5]  }
  0x13   : > { %s2047_s30 = scalar_select %p1681_p4, 1, 0 }
  0x14   : > { %s2048_s8 = scalar_select %p1686_p6, 1, 0 }
  0x15   : > { %p1691_p8 = pnand %p1017_p5, %p222_p7  ;;  %s235_s11 = sshll.u32 %s1594_s10, 4  ;;  %s236_s11 = int_to_ptr.vmem [resolvable:$true] %s235_s11 }
  0x16   : > { %s1595_s12 = smov [#allocation8]   ;;  %s1596_s15 = smov [#allocation7]  }
  0x17   : > { %s2049_s9 = scalar_select %p1691_p8, 1, 0 }
  0x18   : > { %p1196_p10 = pneg %p1691_p8  ;;  %s256_s13 = sshll.u32 %s1595_s12, 4  ;;  %s1704_s13 = int_to_ptr.vmem [resolvable:$true] %s256_s13 }
  0x19   : > { %s1706_s16 = sshll.u32 %s1596_s15, 4  ;;  %s2051_s1 = sld [smem:[#allocation21_spill]]  ;;  %s247_s16 = int_to_ptr.vmem [resolvable:$true] %s1706_s16 }
  0x1a   : > { %p1700_p11 = pnand %p1196_p10, %p2039_p1 }
  0x1c   : > { %p1716_p13 = pneg %p1700_p11 }
  0x1f   : > { %s1316_s19 = scalar_lea.hbm %s2051_s1, 16 }
  0x20   : > { %p1317_p12 = scmp.ne.s32.totalorder %s2051_s1, %s1316_s19  ;;  %p1323_p5 = scmp.lt.u32.totalorder %s1316_s19, %s2051_s1 }
  0x22   : > { %p1319_p0 = pnand %p1716_p13, %p1317_p12 }
  0x24   : > { %p1320_p3 = pneg %p1319_p0 }
  0x26   : > { %p1325_p7 = pnand %p1323_p5, %p1320_p3 }
  0x28   : > { %1328 = shalt.err (!%p1325_p7)
}
  0x29   : > { %s1329_s12 = scalar_lea.vmem %s236_s11, 16  ;;  %s1336_s15 = scalar_lea.vmem %s236_s11, 32 }
  0x2a   : > { %p1330_p10 = scmp.ne.s32.totalorder %s236_s11, %s1329_s12  ;;  %p1337_p2 = scmp.lt.s32.totalorder %s236_s11, %s236_s11 }
  0x2b   : > { %p1338_p6 = scmp.lt.s32.totalorder %s1336_s15, %s1329_s12 }
  0x2c   : > { %p1332_p9 = pnand %p1330_p10, %p1716_p13 }
  0x2d   : > { %p1339_p4 = por %p1338_p6, %p1337_p2 }
  0x2e   : > { %p1333_p1 = pneg %p1332_p9 }
  0x30   : > { %p1340_p8 = pnand %p1339_p4, %p1333_p1 }
  0x32   : > { %1343 = shalt.err (!%p1340_p8)
}
  0x33   : > { %1199 = dma.hbm_to_vmem [thread:$0]  (!%p1700_p11), %s2051_s1, 16, %s236_s11, [#allocation6]  }
  0x34   : > { %s2053_s3 = sld [smem:[#allocation23_spill]] }
  0x3a   : > { %s1344_s21 = scalar_lea.hbm %s2053_s3, 3072 }
  0x3b   : > { %p1345_p9 = scmp.ne.s32.totalorder %s2053_s3, %s1344_s21  ;;  %p1351_p1 = scmp.lt.u32.totalorder %s1344_s21, %s2053_s3 }
  0x3d   : > { %p1347_p12 = pnand %p1345_p9, %p1716_p13 }
  0x3f   : > { %p1348_p2 = pneg %p1347_p12 }
  0x41   : > { %p1353_p4 = pnand %p1351_p1, %p1348_p2 }
  0x43   : > { %1356 = shalt.err (!%p1353_p4)
}
  0x44   : > { %s1357_s11 = scalar_lea.vmem %s1704_s13, 3072  ;;  %p1365_p3 = scmp.lt.s32.totalorder %s1704_s13, %s1704_s13 }
  0x45   : > { %p1358_p6 = scmp.ne.s32.totalorder %s1704_s13, %s1357_s11  ;;  %p1366_p5 = scmp.lt.s32.totalorder %s1357_s11, %s1357_s11 }
  0x47   : > { %p1360_p8 = pnand %p1358_p6, %p1716_p13  ;;  %p1367_p7 = por %p1366_p5, %p1365_p3 }
  0x49   : > { %p1361_p0 = pneg %p1360_p8 }
  0x4b   : > { %p1368_p10 = pnand %p1367_p7, %p1361_p0 }
  0x4d   : > { %1371 = shalt.err (!%p1368_p10)
}
  0x4e   : > { %s1597_s17 = smov 192   ;;  %s1598_s18 = smov 12  }
  0x4f   : > { %1205 = dma.hbm_to_vmem [thread:$0]  (!%p1700_p11), %s2053_s3, 3072, %s1704_s13, [#allocation9], %s1597_s17, %s1597_s17, %s1598_s18  }
  0x50   : > { %s2054_s2 = sld [smem:[#allocation22_spill]] }
  0x56   : > { %s1372_s10 = scalar_lea.hbm %s2054_s2, 16 }
  0x57   : > { %p1373_p9 = scmp.ne.s32.totalorder %s2054_s2, %s1372_s10  ;;  %p1379_p1 = scmp.lt.u32.totalorder %s1372_s10, %s2054_s2 }
  0x59   : > { %p1375_p12 = pnand %p1373_p9, %p1716_p13 }
  0x5b   : > { %p1376_p2 = pneg %p1375_p12 }
  0x5d   : > { %p1381_p4 = pnand %p1379_p1, %p1376_p2 }
  0x5f   : > { %1384 = shalt.err (!%p1381_p4)
}
  0x60   : > { %s1385_s19 = scalar_lea.vmem %s247_s16, 16  ;;  %s1392_s13 = scalar_lea.vmem %s247_s16, 32 }
  0x61   : > { %p1386_p6 = scmp.ne.s32.totalorder %s247_s16, %s1385_s19  ;;  %p1393_p3 = scmp.lt.s32.totalorder %s247_s16, %s247_s16 }
  0x62   : > { %p1394_p5 = scmp.lt.s32.totalorder %s1392_s13, %s1385_s19 }
  0x63   : > { %p1388_p8 = pnand %p1386_p6, %p1716_p13 }
  0x64   : > { %p1395_p7 = por %p1394_p5, %p1393_p3 }
  0x65   : > { %p1389_p0 = pneg %p1388_p8 }
  0x67   : > { %p1396_p10 = pnand %p1395_p7, %p1389_p0 }
  0x69   : > { %1399 = shalt.err (!%p1396_p10)
}
  0x6a   : > { %1202 = dma.hbm_to_vmem [thread:$0]  (!%p1700_p11), %s2054_s2, 16, %s247_s16, [#allocation6]  }
  0x6b   : > { %s1599_s29 = smov [#allocation10]   ;;  %s1400_s10 = scalar_lea.hbm %s2035_s4, 48 }
  0x6c   : > { %s270_s20 = sshll.u32 %s1599_s29, 4  ;;  %p1401_p9 = scmp.ne.s32.totalorder %s2035_s4, %s1400_s10  ;;  %s271_s20 = int_to_ptr.vmem [resolvable:$true] %s270_s20 }
  0x6d   : > { %p1407_p1 = scmp.lt.u32.totalorder %s1400_s10, %s2035_s4 }
  0x6e   : > { %p1403_p12 = pnand %p1401_p9, %p1716_p13 }
  0x70   : > { %p1404_p2 = pneg %p1403_p12 }
  0x72   : > { %p1409_p4 = pnand %p1407_p1, %p1404_p2 }
  0x74   : > { %1412 = shalt.err (!%p1409_p4)
}
  0x75   : > { %s1413_s16 = scalar_lea.vmem %s271_s20, 48  ;;  %s1420_s13 = scalar_lea.vmem %s271_s20, 64 }
  0x76   : > { %p1414_p6 = scmp.ne.s32.totalorder %s271_s20, %s1413_s16  ;;  %p1421_p3 = scmp.lt.s32.totalorder %s271_s20, %s271_s20 }
  0x77   : > { %p1422_p5 = scmp.lt.s32.totalorder %s1420_s13, %s1413_s16 }
  0x78   : > { %p1416_p8 = pnand %p1414_p6, %p1716_p13 }
  0x79   : > { %p1423_p7 = por %p1422_p5, %p1421_p3 }
  0x7a   : > { %p1417_p0 = pneg %p1416_p8 }
  0x7c   : > { %p1424_p10 = pnand %p1423_p7, %p1417_p0 }
  0x7e   : > { %1427 = shalt.err (!%p1424_p10)
}
  0x7f   : > { %1208 = dma.hbm_to_vmem [thread:$0]  (!%p1700_p11), %s2035_s4, 48, %s271_s20, [#allocation9]  }
  0x80   : > { %s1793_s22 = sadd.s32 1, %s1592_s27   ;;  %s36_s29 = sadd.s32 1, %s1588_s26 }
  0x81   : > { %s33_s14 = ssub.s32 %s1592_s27, %s1793_s22  ;;  %p43_p13 = scmp.ne.s32.totalorder %s1588_s26, %s1584_s25 }
  0x82   : > { %p34_p9 = scmp.eq.s32.totalorder %s33_s14, 0  ;;  %p44_p12 = scmp.eq.s32.totalorder %s1592_s27, 0 }
  0x83   : > { %p2055_p2 = scmp.eq.s32.totalorder %s1670_s28, 1  ;;  %p1227_p4 = scmp.lt.s32.totalorder %s1592_s27, 2 }
  0x84   : > { %s1809_s23 = scalar_select %p34_p9, %s1588_s26, %s36_s29  }
  0x85   : > { %p1803_p1 = por %p2055_p2, %p43_p13  ;;  %p45_p6 = por %p44_p12, %p43_p13 }
  0x86   : > { %s281_s10 = sand.u32 1, %s1588_s26   ;;  %s1084_s20 = sshll.u32 %s1592_s27, 8 }
  0x87   : > { %s1023_s12 = sshll.u32 %s281_s10, 4  ;;  %s2057_s0 = sld [smem:[#allocation20_spill]] }
  0x88   : > { %s285_s16 = scalar_lea.vmem [#allocation2], %s1023_s12  ;;  %p1820_p11 = pnand %p1227_p4, %p45_p6 }
  0x89   : > { %s292_s13 = sshll.u32 %s285_s16, 4  ;;  %s1824_s18 = scalar_lea.sflag [#allocation3], %s281_s10  ;;  %s1818_s13 = int_to_ptr.vmem [resolvable:$true] %s292_s13 }
  0x8a   : > { %p1430_p0 = pneg %p1820_p11 }
  0x8d   : > { %s1816_s19 = scalar_lea.hbm %s2057_s0, %s1084_s20  ;;  %s1433_s20 = scalar_lea.hbm %s2057_s0, 512 }
  0x8e   : > { %s1428_s29 = scalar_lea.hbm %s1816_s19, 256  ;;  %p1434_p7 = scmp.lt.u32.totalorder %s1816_s19, %s2057_s0 }
  0x8f   : > { %p1429_p8 = scmp.ne.s32.totalorder %s1816_s19, %s1428_s29  ;;  %p1435_p10 = scmp.lt.u32.totalorder %s1433_s20, %s1428_s29 }
  0x90   : > { %p1437_p9 = scmp.lt.u32.totalorder %s1428_s29, %s1816_s19 }
  0x91   : > { %p1431_p3 = pnand %p1430_p0, %p1429_p8  ;;  %p1436_p13 = por %p1435_p10, %p1434_p7 }
  0x93   : > { %p1432_p5 = pneg %p1431_p3  ;;  %p1438_p12 = por %p1437_p9, %p1436_p13 }
  0x95   : > { %p1439_p2 = pnand %p1438_p12, %p1432_p5 }
  0x97   : > { %1442 = shalt.err (!%p1439_p2)
}
  0x98   : > { %s1443_s10 = scalar_lea.vmem %s1818_s13, 256  ;;  %s1600_s16 = smov [#allocation2]  }
  0x99   : > { %p1444_p4 = scmp.ne.s32.totalorder %s1818_s13, %s1443_s10  ;;  %s1448_s14 = sshll.u32 %s1600_s16, 4  ;;  %s1449_s14 = int_to_ptr.vmem [resolvable:$false] %s1448_s14 }
  0x9a   : > { %s1450_s12 = scalar_lea.vmem %s1449_s14, 512  ;;  %p1451_p3 = scmp.lt.s32.totalorder %s1818_s13, %s1449_s14 }
  0x9b   : > { %p1446_p6 = pnand %p1444_p4, %p1430_p0  ;;  %p1452_p7 = scmp.lt.s32.totalorder %s1450_s12, %s1443_s10 }
  0x9d   : > { %p1447_p8 = pneg %p1446_p6  ;;  %p1453_p10 = por %p1452_p7, %p1451_p3 }
  0x9f   : > { %p1454_p13 = pnand %p1453_p10, %p1447_p8 }
  0xa1   : > { %1457 = shalt.err (!%p1454_p13)
}
  0xa2   : > { %s1601_s29 = smov 64   ;;  %s1602_s20 = smov 4  }
  0xa3   : > { %1212 = dma.hbm_to_vmem [thread:$0]  (!%p1820_p11), %s1816_s19, 256, %s1818_s13, %s1824_s18, %s1601_s29, %s1601_s29, %s1602_s20  }
  0xa4   : > { %p2059_p0 = scmp.ne.s32.totalorder %s2049_s9, 0 }
  0xa5   : > { %s1855_s15 = sand.u32 (!%p2059_p0), 1, %s1584_s25   ;;  %p2060_p5 = scmp.ne.s32.totalorder (!%p2059_p0), %s2047_s30, 0 }
  0xa6   : > { %304 = sbr.rel (%p2059_p0) target bundleno = 789 (0x315), region = 40  ;;  %s1858_s11 = sshll.u32 (!%p2059_p0), %s1855_s15, 4 }
  0xa7   : > { %s307_s10 = scalar_lea.sflag (!%p2059_p0), [#allocation3], %s1855_s15  ;;  %s310_s16 = scalar_lea.vmem (!%p2059_p0), [#allocation2], %s1858_s11 }
  0xad   : > { %1559 = dma.done.wait (%p2060_p5), %s307_s10, 256  }
  0xae   : > { %1561 = vsyncadd (%p2060_p5), %s307_s10, 4294967040  ;;  %p2061_p11 = scmp.eq.s32.totalorder %s1670_s28, 0 }
  0xb0   : > { %1563 = dma.done.wait (%p2061_p11), [#allocation6], 32   ;;  %p2062_p9 = pmov %p2061_p11 }
  0xb2   : > { %1565 = vsyncadd (%p2062_p9), [#allocation6], 4294967264  ;;  %p2063_p12 = pmov %p2062_p9 }
  0xb3   : > { %p2064_p2 = pmov %p2062_p9 }
  0xb4   : > { %1567 = dma.done.wait (%p2063_p12), [#allocation9], 3120  }
  0xb5   : > { %1569 = vsyncadd (%p2064_p2), [#allocation9], 4294964176  ;;  %v1101_v0 = vld [vmem:[%s310_s16] sm:$0xff]   ;;  %v1138_v1 = vld [vmem:[%s310_s16 + $0x8] sm:$0xff]   ;;  %v1603_v41 = vmov 0   ;;  %s1895_s30 = scalar_lea.vmem [#allocation11], %s1858_s11 }
  0xb6   : > { %v1102_v2 = vunpack.c.l.bf16 %v1101_v0  ;;  %v1106_v3 = vunpack.c.l.bf16 %v1138_v1  ;;  %v1103_v4 = vunpack.c.h.bf16 %v1101_v0  ;;  %v1107_v5 = vunpack.c.h.bf16 %v1138_v1  ;;  %v1276_v6 = vld [vmem:[#allocation8 + $0x4] ss:$12 sps:$4 sm:$0xff]   ;;  %v1278_v7 = vld [vmem:[#allocation8] ss:$12 sps:$4 sm:$0xff]   ;;  %v1279_v8 = vld [vmem:[#allocation8 + $0x1c] ss:$12 sps:$4 sm:$0xff]   ;;  %658 = vmatprep.mubr.bf16.mxu0 %v1603_v41 }
  0xb7   : > { %v1281_v9 = vld [vmem:[#allocation8 + $0x8] ss:$12 sps:$4 sm:$0xff]   ;;  %626 = vmatprep.subr.bf16.mxu0 %v1276_v6  ;;  %v1282_v26 = vld [vmem:[#allocation8 + $0x18] ss:$12 sps:$4 sm:$0xff]   ;;  %v1285_v28 = vld [vmem:[#allocation8 + $0x20] ss:$12 sps:$4 sm:$0xff]  }
  0xb8   : > { %382 = vadd.xlane.f32.xlu0 %v1102_v2  ;;  %386 = vadd.xlane.f32.xlu1 %v1106_v3  ;;  %v1283_v27 = vld [vmem:[#allocation8 + $0x34] ss:$12 sps:$4 sm:$0xff]   ;;  %v1286_v29 = vld [vmem:[#allocation8 + $0x30] ss:$12 sps:$4 sm:$0xff]   ;;  %v1287_v30 = vld [vmem:[#allocation8 + $0x4c] ss:$12 sps:$4 sm:$0xff]  }
  0xb9   : > { %627 = vmatpush1.bf16.msra.mxu0 %v1278_v7  ;;  %1152 = vmatprep.subr.bf16.mxu1 %v1281_v9  ;;  %v1289_v31 = vld [vmem:[#allocation8 + $0x38] ss:$12 sps:$4 sm:$0xff]   ;;  %v1290_v32 = vld [vmem:[#allocation8 + $0x48] ss:$12 sps:$4 sm:$0xff]   ;;  %v1293_v34 = vld [vmem:[#allocation8 + $0x50] ss:$12 sps:$4 sm:$0xff]  }
  0xba   : > { %628 = vmatprep.subr.bf16.mxu0 %v1279_v8  ;;  %1153 = vmatpush3.bf16.msra.mxu1 %v1281_v9  ;;  %v1291_v33 = vld [vmem:[#allocation8 + $0x64] ss:$12 sps:$4 sm:$0xff]   ;;  %v1294_v35 = vld [vmem:[#allocation8 + $0x60] ss:$12 sps:$4 sm:$0xff]   ;;  %v1295_v36 = vld [vmem:[#allocation8 + $0x7c] ss:$12 sps:$4 sm:$0xff]  }
  0xbb   : > { %1154 = vmatprep.subr.bf16.mxu1 %v1285_v28  ;;  %v1297_v37 = vld [vmem:[#allocation8 + $0x68] ss:$12 sps:$4 sm:$0xff]   ;;  %v1298_v38 = vld [vmem:[#allocation8 + $0x78] ss:$12 sps:$4 sm:$0xff]   ;;  %v1301_v40 = vld [vmem:[#allocation8 + $0x80] ss:$12 sps:$4 sm:$0xff]  }
  0xbc   : > { %384 = vadd.xlane.f32.xlu0 %v1103_v4  ;;  %388 = vadd.xlane.f32.xlu1 %v1107_v5  ;;  %v1299_v39 = vld [vmem:[#allocation8 + $0x94] ss:$12 sps:$4 sm:$0xff]   ;;  %v1302_v42 = vld [vmem:[#allocation8 + $0x90] ss:$12 sps:$4 sm:$0xff]   ;;  %v1303_v43 = vld [vmem:[#allocation8 + $0xac] ss:$12 sps:$4 sm:$0xff]  }
  0xbd   : > { %629 = vmatpush1.bf16.msra.mxu0 %v1282_v26  ;;  %v1305_v44 = vld [vmem:[#allocation8 + $0x98] ss:$12 sps:$4 sm:$0xff]   ;;  %v1306_v45 = vld [vmem:[#allocation8 + $0xa8] ss:$12 sps:$4 sm:$0xff]   ;;  %v1307_v46 = vld [vmem:[#allocation8 + $0xb0] ss:$12 sps:$4 sm:$0xff]  }
  0xbe   : > { %630 = vmatprep.subr.bf16.mxu0 %v1283_v27  ;;  %1155 = vmatpush3.bf16.msra.mxu1 %v1285_v28  ;;  %v1035_v61 = vld [vmem:[#allocation5] ss:$0 sm:$0xff]  ;;  %s812_s9 = sshll.u32 %s1895_s30, 4  ;;  %s1900_s19 = scalar_lea.vmem [#allocation12], %s1858_s11  ;;  %s1904_s9 = int_to_ptr.vmem [resolvable:$true] %s812_s9 }
  0xbf   : > { %1156 = vmatprep.subr.bf16.mxu1 %v1289_v31  ;;  %s828_s13 = sshll.u32 %s1900_s19, 4  ;;  %s1097_s17 = sshll.u32 %s1670_s28, 8  ;;  %s1906_s13 = int_to_ptr.vmem [resolvable:$true] %s828_s13 }
  0xc0   : > { %s366_s18 = scalar_lea.vmem [#allocation14], %s1858_s11  ;;  %s1914_s10 = scalar_lea.hbm %s2036_s5, %s1097_s17 }
  0xc1   : > { %631 = vmatpush1.bf16.msra.mxu0 %v1286_v29  ;;  %s844_s14 = sshll.u32 %s366_s18, 4  ;;  %s1919_s0 = scalar_lea.hbm %s2037_s6, %s1097_s17  ;;  %s1921_s14 = int_to_ptr.vmem [resolvable:$true] %s844_s14 }
  0xc2   : > { %632 = vmatprep.subr.bf16.mxu0 %v1287_v30  ;;  %1157 = vmatpush3.bf16.msra.mxu1 %v1289_v31  ;;  %s1927_s1 = scalar_lea.hbm %s2038_s7, %s1097_s17  ;;  %s789_s2 = scalar_lea.sflag [#allocation4], %s1855_s15 }
  0xc3   : > { %1158 = vmatprep.subr.bf16.mxu1 %v1293_v34  ;;  %s1458_s29 = scalar_lea.vmem %s1904_s9, 256  ;;  %s1604_s20 = smov [#allocation11]  }
  0xc4   : > { %p1459_p4 = scmp.ne.s32.totalorder %s1904_s9, %s1458_s29  ;;  %s1462_s3 = sshll.u32 %s1604_s20, 4  ;;  %s1463_s3 = int_to_ptr.vmem [resolvable:$false] %s1462_s3 }
  0xc5   : > { %633 = vmatpush1.bf16.msra.mxu0 %v1290_v32  ;;  %s1464_s11 = scalar_lea.vmem %s1463_s3, 512  ;;  %p1465_p3 = scmp.lt.s32.totalorder %s1904_s9, %s1463_s3 }
  0xc6   : > { %634 = vmatprep.subr.bf16.mxu0 %v1291_v33  ;;  %1159 = vmatpush3.bf16.msra.mxu1 %v1293_v34  ;;  %p1460_p6 = pnand %p1459_p4, %p1803_p1  ;;  %p1466_p7 = scmp.lt.s32.totalorder %s1464_s11, %s1458_s29 }
  0xc7   : > { %1160 = vmatprep.subr.bf16.mxu1 %v1297_v37 }
  0xc8   : > { %p1461_p8 = pneg %p1460_p6  ;;  %p1467_p10 = por %p1466_p7, %p1465_p3 }
  0xc9   : > { %635 = vmatpush1.bf16.msra.mxu0 %v1294_v35 }
  0xca   : > { %636 = vmatprep.subr.bf16.mxu0 %v1295_v36  ;;  %1161 = vmatpush3.bf16.msra.mxu1 %v1297_v37  ;;  %p1468_p13 = pnand %p1467_p10, %p1461_p8 }
  0xcb   : > { %1162 = vmatprep.subr.bf16.mxu1 %v1301_v40 }
  0xcd   : > { %637 = vmatpush1.bf16.msra.mxu0 %v1298_v38 }
  0xce   : > { %638 = vmatprep.subr.bf16.mxu0 %v1299_v39  ;;  %1163 = vmatpush3.bf16.msra.mxu1 %v1301_v40 }
  0xcf   : > { %1164 = vmatprep.subr.bf16.mxu1 %v1305_v44 }
  0xd1   : > { %639 = vmatpush1.bf16.msra.mxu0 %v1302_v42 }
  0xd2   : > { %640 = vmatprep.subr.bf16.mxu0 %v1303_v43  ;;  %1165 = vmatpush3.bf16.msra.mxu1 %v1305_v44 }
  0xd3   : > { %1166 = vmatprep.subr.bf16.mxu1 %v1307_v46 }
  0xd5   : > { %641 = vmatpush1.bf16.msra.mxu0 %v1306_v45 }
  0xd6   : > { %1167 = vmatpush3.bf16.msra.mxu1 %v1307_v46 }
 0x145   : > { %v383_v10 = vpop.xlane.xlu0 %382  ;;  %v387_v11 = vpop.xlane.xlu1 %386 }
 0x146   : > { %v391_v12 = vmul.f32 0.0078125, %v383_v10  ;;  %v393_v13 = vmul.f32 0.0078125, %v387_v11 }
 0x148   : > { %v1874_v14 = vsub.f32 %v1102_v2, %v391_v12  ;;  %v1876_v15 = vsub.f32 %v1106_v3, %v393_v13  ;;  %v1036_v2 = vld [vmem:[#allocation7] ss:$0 sm:$0xff] }
 0x149   : > { %v385_v16 = vpop.xlane.xlu0 %384  ;;  %v389_v17 = vpop.xlane.xlu1 %388 }
 0x14a   : > { %v392_v18 = vmul.f32 0.0078125, %v385_v16  ;;  %v399_v19 = vmul.f32 %v1874_v14, %v1874_v14  ;;  %v394_v20 = vmul.f32 0.0078125, %v389_v17  ;;  %v401_v23 = vmul.f32 %v1876_v15, %v1876_v15 }
 0x14b   : > { %v483_v16 = vlaneseq }
 0x14c   : > { %v1880_v21 = vsub.f32 %v1103_v4, %v392_v18  ;;  %403 = vadd.xlane.f32.xlu0 %v399_v19  ;;  %v1882_v22 = vsub.f32 %v1107_v5, %v394_v20  ;;  %v481_v18 = vld [vmem:[#allocation10] sm:$0x7] }
 0x14d   : > { %v484_v17 = vshrl.u32 %v483_v16, 7 }
 0x14e   : > { %v400_v24 = vmul.f32 %v1880_v21, %v1880_v21  ;;  %v402_v25 = vmul.f32 %v1882_v22, %v1882_v22 }
 0x14f   : > { %v489_v19 = vsub.s32 1, %v484_v17 }
 0x150   : > { %407 = vadd.xlane.f32.xlu0 %v401_v23  ;;  %405 = vadd.xlane.f32.xlu1 %v400_v24 }
 0x151   : > { %v490_v23 = vrot.slane %v481_v18, %v489_v19 }
 0x154   : > { %409 = vadd.xlane.f32.xlu1 %v402_v25 }
 0x1d9   : > { %v404_v47 = vpop.xlane.xlu0 %403 }
 0x1da   : > { %v411_v48 = vmul.f32 0.0078125, %v404_v47 }
 0x1dc   : > { %v415_v49 = vadd.f32 1e-05, %v411_v48 }
 0x1dd   : > { %v406_v50 = vpop.xlane.xlu1 %405  ;;  %v408_v51 = vpop.xlane.xlu0 %407 }
 0x1de   : > { %1308 = vrsqrt.f32 %v415_v49  ;;  %v412_v52 = vmul.f32 0.0078125, %v406_v50  ;;  %v413_v53 = vmul.f32 0.0078125, %v408_v51 }
 0x1e0   : > { %v416_v54 = vadd.f32 1e-05, %v412_v52  ;;  %v417_v55 = vadd.f32 1e-05, %v413_v53 }
 0x1e1   : > { %v410_v56 = vpop.xlane.xlu1 %409 }
 0x1e2   : > { %1310 = vrsqrt.f32 %v416_v54  ;;  %v414_v57 = vmul.f32 0.0078125, %v410_v56 }
 0x1e3   : > { %1312 = vrsqrt.f32 %v417_v55 }
 0x1e4   : > { %v418_v58 = vadd.f32 1e-05, %v414_v57 }
 0x1e6   : > { %1314 = vrsqrt.f32 %v418_v58 }
 0x1e8   : > { %v1309_v59 = vpop.eup %1308 }
 0x1e9   : > { %v423_v60 = vmul.f32 %v1309_v59, %v1874_v14 }
 0x1eb   : > { %v433_v1 = vmul.f32 %v1035_v61, %v423_v60 }
 0x1ec   : > { %v1311_v62 = vpop.eup %1310 }
 0x1ed   : > { %v1313_v63 = vpop.eup %1312  ;;  %v424_v0 = vmul.f32 %v1311_v62, %v1880_v21  ;;  %v443_v6 = vadd.f32 %v1036_v2, %v433_v1  ;;  %v493_v21 = vsub.s32 2, %v484_v17 }
 0x1ee   : > { %v425_v3 = vmul.f32 %v1313_v63, %v1876_v15  ;;  %v485_v15 = vsub.s32 0, %v484_v17 }
 0x1ef   : > { %v434_v4 = vmul.f32 %v1035_v61, %v424_v0  ;;  %v494_v29 = vrot.slane %v481_v18, %v493_v21 }
 0x1f0   : > { %v1315_v5 = vpop.eup %1314  ;;  %v435_v9 = vmul.f32 %v1035_v61, %v425_v3  ;;  %v486_v20 = vrot.slane %v481_v18, %v485_v15 }
 0x1f1   : > { %v444_v7 = vadd.f32 %v1036_v2, %v434_v4  ;;  %v426_v8 = vmul.f32 %v1315_v5, %v1882_v22 }
 0x1f2   : > { %v445_v12 = vadd.f32 %v1036_v2, %v435_v9 }
 0x1f3   : > { %v447_v10 = vpack.c.bf16 %v444_v7, %v443_v6  ;;  %v436_v11 = vmul.f32 %v1035_v61, %v426_v8 }
 0x1f5   : > { %659 = vmatmul.mubr.bf16.vlgmr.msra.gmra.mrb[0].mxu0 %v447_v10  ;;  %1168 = vmatprep.mubr.bf16.mxu1 %v447_v10  ;;  %v446_v13 = vadd.f32 %v1036_v2, %v436_v11 }
 0x1f6   : > { %668 = vmatprep.mubr.bf16.mxu0 %v1603_v41 }
 0x1f7   : > { %v448_v14 = vpack.c.bf16 %v446_v13, %v445_v12 }
 0x1f9   : > { %1169 = vmatmul.mubr.bf16.vlgmr.msra.gmra.mrb[0].mxu1 %v448_v14 }
 0x1fd   : > { %669 = vmatmul.mubr.bf16.gmra.mrb[4].mxu0 %v448_v14 }
 0x2c8   : > { %v660_v22 = vpop.f32.mrb[0].mxu0 }
 0x2c9   : > { %v662_v24 = vpop.f32.mrb[1].mxu0  ;;  %v661_v26 = vadd.f32 %v660_v22, %v486_v20 }
 0x2ca   : > { %v664_v25 = vpop.f32.mrb[2].mxu0  ;;  %v663_v30 = vadd.f32 %v662_v24, %v490_v23 }
 0x2cb   : > { %v665_v27 = vadd.f32 %v664_v25, %v486_v20  ;;  %v666_v28 = vpop.f32.mrb[3].mxu0 }
 0x2cc   : > { %v667_v31 = vadd.f32 %v666_v28, %v490_v23  ;;  %v1170_v32 = vpop.f32.mrb[0].mxu1 }
 0x2cd   : > { %v1111_v33 = vpack.c.bf16 %v665_v27, %v661_v26  ;;  %v713_v34 = vpop.f32.mrb[1].mxu1  ;;  %v722_v37 = vadd.f32 %v1170_v32, %v494_v29 }
 0x2ce   : > { %v1121_v35 = vpack.c.bf16 %v667_v31, %v663_v30  ;;  %v1171_v36 = vpop.f32.mrb[2].mxu1  ;;  %v714_v40 = vadd.f32 %v713_v34, %v494_v29 }
 0x2cf   : > { %1112 = vst [vmem:[%s1895_s30] sm:$0xff] %v1111_v33   ;;  %v725_v38 = vadd.f32 %v1171_v36, %v494_v29  ;;  %v716_v39 = vpop.f32.mrb[3].mxu1 }
 0x2d0   : > { %1122 = vst [vmem:[%s1900_s19] sm:$0xff] %v1121_v35   ;;  %v717_v41 = vadd.f32 %v716_v39, %v494_v29  ;;  %v670_v42 = vpop.f32.mrb[4].mxu0 }
 0x2d1   : > { %v1136_v43 = vpack.c.bf16 %v725_v38, %v722_v37  ;;  %v672_v44 = vpop.f32.mrb[5].mxu0  ;;  %v671_v47 = vadd.f32 %v670_v42, %v486_v20 }
 0x2d2   : > { %v1131_v45 = vpack.c.bf16 %v717_v41, %v714_v40  ;;  %v674_v46 = vpop.f32.mrb[6].mxu0  ;;  %v673_v50 = vadd.f32 %v672_v44, %v490_v23 }
 0x2d3   : > { %1141 = vst [vmem:[%s366_s18 + $0x8] sm:$0xff] %v1136_v43   ;;  %v675_v48 = vadd.f32 %v674_v46, %v486_v20  ;;  %v676_v49 = vpop.f32.mrb[7].mxu0 }
 0x2d4   : > { %1132 = vst [vmem:[%s366_s18] sm:$0xff] %v1131_v45   ;;  %v677_v51 = vadd.f32 %v676_v49, %v490_v23 }
 0x2d5   : > { %v1116_v52 = vpack.c.bf16 %v675_v48, %v671_v47 }
 0x2d6   : > { %v1126_v53 = vpack.c.bf16 %v677_v51, %v673_v50 }
 0x2d7   : > { %1139 = vst [vmem:[%s1895_s30 + $0x8] sm:$0xff] %v1116_v52  }
 0x2d8   : > { %1140 = vst [vmem:[%s1900_s19 + $0x8] sm:$0xff] %v1126_v53  }
 0x2d9   : > { %1471 = shalt.err (!%p1468_p13)
}
 0x2da   : > { %s1472_s30 = scalar_lea.hbm %s1914_s10, 256  ;;  %s1476_s12 = scalar_lea.hbm %s2036_s5, 512 }
 0x2db   : > { %p1473_p0 = scmp.ne.s32.totalorder %s1914_s10, %s1472_s30  ;;  %p1477_p9 = scmp.lt.u32.totalorder %s1914_s10, %s2036_s5 }
 0x2dc   : > { %p1478_p12 = scmp.lt.u32.totalorder %s1476_s12, %s1472_s30  ;;  %p1480_p4 = scmp.lt.u32.totalorder %s1472_s30, %s1914_s10 }
 0x2dd   : > { %p1474_p5 = pnand %p1473_p0, %p1803_p1 }
 0x2de   : > { %p1479_p2 = por %p1478_p12, %p1477_p9 }
 0x2df   : > { %p1475_p11 = pneg %p1474_p5 }
 0x2e0   : > { %p1481_p6 = por %p1480_p4, %p1479_p2 }
 0x2e2   : > { %p1482_p8 = pnand %p1481_p6, %p1475_p11 }
 0x2e4   : > { %1485 = shalt.err (!%p1482_p8)
}
 0x2e5   : > { %s1605_s18 = smov 64   ;;  %s1606_s29 = smov 4  }
 0x2e6   : > { %1190 = dma.vmem_to_hbm [thread:$0]  (%p1803_p1), %s1904_s9, 256, %s1914_s10, %s789_s2, %s1605_s18, %s1605_s18, %s1606_s29  }
 0x2e7   : > { %s2065_s20 = sand.u32 1, %s1670_s28   ;;  %s1486_s30 = scalar_lea.vmem %s1906_s13, 256 }
 0x2e8   : > { %s1959_s11 = scalar_lea.sflag [#allocation13], %s2065_s20  ;;  %p1487_p3 = scmp.ne.s32.totalorder %s1906_s13, %s1486_s30 }
 0x2e9   : > { %s1607_s19 = smov [#allocation12]  }
 0x2ea   : > { %p1488_p7 = pnand %p1487_p3, %p1803_p1  ;;  %s1490_s17 = sshll.u32 %s1607_s19, 4  ;;  %s1491_s17 = int_to_ptr.vmem [resolvable:$false] %s1490_s17 }
 0x2eb   : > { %s1492_s12 = scalar_lea.vmem %s1491_s17, 512  ;;  %p1493_p13 = scmp.lt.s32.totalorder %s1906_s13, %s1491_s17 }
 0x2ec   : > { %p1489_p10 = pneg %p1488_p7  ;;  %p1494_p0 = scmp.lt.s32.totalorder %s1492_s12, %s1486_s30 }
 0x2ee   : > { %p1495_p5 = por %p1494_p0, %p1493_p13 }
 0x2f0   : > { %p1496_p11 = pnand %p1495_p5, %p1489_p10 }
 0x2f2   : > { %1499 = shalt.err (!%p1496_p11)
}
 0x2f3   : > { %s1500_s2 = scalar_lea.hbm %s1919_s0, 256  ;;  %s1504_s9 = scalar_lea.hbm %s2037_s6, 512 }
 0x2f4   : > { %p1501_p9 = scmp.ne.s32.totalorder %s1919_s0, %s1500_s2  ;;  %p1505_p4 = scmp.lt.u32.totalorder %s1919_s0, %s2037_s6 }
 0x2f5   : > { %p1506_p6 = scmp.lt.u32.totalorder %s1504_s9, %s1500_s2  ;;  %p1508_p3 = scmp.lt.u32.totalorder %s1500_s2, %s1919_s0 }
 0x2f6   : > { %p1502_p12 = pnand %p1501_p9, %p1803_p1 }
 0x2f7   : > { %p1507_p8 = por %p1506_p6, %p1505_p4 }
 0x2f8   : > { %p1503_p2 = pneg %p1502_p12 }
 0x2f9   : > { %p1509_p7 = por %p1508_p3, %p1507_p8 }
 0x2fb   : > { %p1510_p10 = pnand %p1509_p7, %p1503_p2 }
 0x2fd   : > { %1513 = shalt.err (!%p1510_p10)
}
 0x2fe   : > { %1191 = dma.vmem_to_hbm [thread:$0]  (%p1803_p1), %s1906_s13, 256, %s1919_s0, %s1959_s11, %s1605_s18, %s1605_s18, %s1606_s29  }
 0x2ff   : > { %s1514_s3 = scalar_lea.vmem %s1921_s14, 256  ;;  %s1608_s20 = smov [#allocation14]  }
 0x300   : > { %p1515_p13 = scmp.ne.s32.totalorder %s1921_s14, %s1514_s3  ;;  %s1518_s30 = sshll.u32 %s1608_s20, 4  ;;  %s1519_s30 = int_to_ptr.vmem [resolvable:$false] %s1518_s30 }
 0x301   : > { %s1520_s19 = scalar_lea.vmem %s1519_s30, 512  ;;  %p1521_p11 = scmp.lt.s32.totalorder %s1921_s14, %s1519_s30 }
 0x302   : > { %p1516_p0 = pnand %p1515_p13, %p1803_p1  ;;  %p1522_p9 = scmp.lt.s32.totalorder %s1520_s19, %s1514_s3 }
 0x304   : > { %p1517_p5 = pneg %p1516_p0  ;;  %p1523_p12 = por %p1522_p9, %p1521_p11 }
 0x306   : > { %p1524_p2 = pnand %p1523_p12, %p1517_p5 }
 0x308   : > { %1527 = shalt.err (!%p1524_p2)
}
 0x309   : > { %s1528_s0 = scalar_lea.hbm %s1927_s1, 256  ;;  %s1532_s12 = scalar_lea.hbm %s2038_s7, 512 }
 0x30a   : > { %p1529_p4 = scmp.ne.s32.totalorder %s1927_s1, %s1528_s0  ;;  %p1533_p3 = scmp.lt.u32.totalorder %s1927_s1, %s2038_s7 }
 0x30b   : > { %p1534_p7 = scmp.lt.u32.totalorder %s1532_s12, %s1528_s0  ;;  %p1536_p13 = scmp.lt.u32.totalorder %s1528_s0, %s1927_s1 }
 0x30c   : > { %p1530_p6 = pnand %p1529_p4, %p1803_p1 }
 0x30d   : > { %p1535_p10 = por %p1534_p7, %p1533_p3 }
 0x30e   : > { %p1531_p8 = pneg %p1530_p6 }
 0x30f   : > { %p1537_p0 = por %p1536_p13, %p1535_p10 }
 0x311   : > { %p1538_p5 = pnand %p1537_p0, %p1531_p8 }
 0x313   : > { %1541 = shalt.err (!%p1538_p5)
}
 0x314   : > { %1192 = dma.vmem_to_hbm [thread:$0]  (%p1803_p1), %s1921_s14, 256, %s1927_s1, %s1959_s11, %s1605_s18, %s1605_s18, %s1606_s29  }
 0x315 PF: > { %s859_s15 = sand.u32 1, %s1580_s24   ;;  %p2066_p11 = scmp.ne.s32.totalorder %s2048_s8, 0 }
 0x316   : > { %p2067_p9 = scmp.ge.s32.totalorder %s1592_s27, 2  ;;  %s860_s9 = scalar_lea.sflag [#allocation4], %s859_s15 }
 0x318   : > { %p1214_p12 = pnand %p2067_p9, %p2066_p11 }
 0x31a   : > { %1571 = dma.done.wait (!%p1214_p12), %s860_s9, 256  }
 0x31b   : > { %1573 = vsyncadd (!%p1214_p12), %s860_s9, 4294967040  ;;  %s2068_s21 = sadd.s32 4294967294, %s1592_s27  }
 0x31c   : > { %s868_s10 = sand.u32 1, %s2068_s21  }
 0x31d   : > { %s869_s16 = scalar_lea.sflag [#allocation13], %s868_s10 }
 0x31e   : > { %1575 = dma.done.wait (!%p1214_p12), %s869_s16, 512  }
 0x31f   : > { %1577 = vsyncadd (!%p1214_p12), %s869_s16, 4294966784  ;;  %p26_p1 = scmp.ge.s32.totalorder %s1793_s22, 4   ;;  %s2069_s24 = smov %s1584_s25 }
 0x320   : > { %s2070_s25 = smov %s1588_s26  ;;  %s2071_s26 = smov %s1809_s23 }
 0x321   : > { %s2072_s27 = smov %s1793_s22  ;;  %28 = sbr.rel (!%p26_p1) target bundleno = 14 (0xe), region = 133 }
 0x328   :  { %883 = vsyncpa [#allocation3], 1 }
 0x329   :  { %885 = vsyncpa [#allocation3 + $0x1], 1 }
 0x32a   :  { %886 = vsyncpa [#allocation6], 1 }
 0x32b   :  { %887 = vsyncpa [#allocation9], 1 }
 0x32c   :  { %888 = vsyncpa [#allocation4], 1 }
 0x32d   :  { %890 = vsyncpa [#allocation4 + $0x1], 1 }
 0x32e   :  { %891 = vsyncpa [#allocation13], 1 }
 0x32f   :  { %893 = vsyncpa [#allocation13 + $0x1], 1 }

// kernel: vision_transformer_forward.10
= control target key start
LH: loop header
LB: loop body
LE: loop exit
PB: predicated region body
PF: predicated region fallthrough
CT: control target
= control target key end

     0   :  { %s3433_s0 = inlined_call_operand.hbm [shape: bf16[64,128], index: 0, kind: input, shape index: {}]   ;;  %s3434_s1 = inlined_call_operand.hbm [shape: bf16[64,128], index: 1, kind: input, shape index: {}]   ;;  %s3435_s2 = inlined_call_operand.hbm [shape: bf16[128,128], index: 2, kind: input, shape index: {}]   ;;  %s3436_s3 = inlined_call_operand.hbm [shape: f32[1,128], index: 3, kind: input, shape index: {}]   ;;  %s3437_s4 = inlined_call_operand.hbm [shape: f32[1,128], index: 4, kind: input, shape index: {}]   ;;  %s3438_s5 = inlined_call_operand.hbm [shape: f32[1,128], index: 5, kind: input, shape index: {}]   ;;  %s3439_s6 = inlined_call_operand.hbm [shape: bf16[128,512], index: 6, kind: input, shape index: {}]   ;;  %s3440_s7 = inlined_call_operand.hbm [shape: f32[1,512], index: 7, kind: input, shape index: {}]   ;;  %s3441_s8 = inlined_call_operand.hbm [shape: bf16[512,128], index: 8, kind: input, shape index: {}]   ;;  %s3442_s9 = inlined_call_operand.hbm [shape: f32[1,128], index: 9, kind: input, shape index: {}]   ;;  %s3443_s10 = inlined_call_operand.hbm [shape: bf16[64,128], index: 10, kind: output, shape index: {}]  }
   0x1   :  { %3453 = sst [smem:[#allocation29_spill]] %s3435_s2 }
   0x2   :  { %3454 = sst [smem:[#allocation30_spill]] %s3436_s3 }
   0x3   :  { %3455 = sst [smem:[#allocation31_spill]] %s3437_s4 }
   0x4   :  { %3456 = sst [smem:[#allocation32_spill]] %s3438_s5 }
   0x5   :  { %3457 = sst [smem:[#allocation33_spill]] %s3439_s6 }
   0x6   :  { %3458 = sst [smem:[#allocation34_spill]] %s3440_s7 }
   0x7   :  { %3459 = sst [smem:[#allocation35_spill]] %s3443_s10 }
   0x8   :  { %15 = vsyncpa [#allocation3], 0 }
   0x9   :  { %17 = vsyncpa [#allocation3 + $0x1], 0 }
   0xa   :  { %18 = vsyncpa [#allocation6], 0 }
   0xb   :  { %20 = vsyncpa [#allocation6 + $0x1], 0 }
   0xc   :  { %21 = vsyncpa [#allocation9], 0 }
   0xd   :  { %22 = vsyncpa [#allocation12], 0 }
   0xe   :  { %23 = vsyncpa [#allocation15], 0 }
   0xf   :  { %24 = vsyncpa [#allocation18], 0 }
  0x10   :  { %25 = vsyncpa [#allocation4], 0 }
  0x11   :  { %27 = vsyncpa [#allocation4 + $0x1], 0  ;;  %s2751_s13 = smov 0   ;;  %s2753_s14 = smov 0  }
  0x12   :  { %s2755_s15 = smov 0   ;;  %s2757_s16 = smov 0  }
  0x13 LB: > { %s2678_s17 = smov [#allocation7]   ;;  %s2772_s19 = sadd.s32 4294967295, %s2676_s16   ;;  %s2676_s16 = sphi %s2757_s16, %s3497_s16   ;;  %s2672_s15 = sphi %s2755_s15, %s3496_s15   ;;  %s2668_s14 = sphi %s2753_s14, %s3495_s14   ;;  %s2664_s13 = sphi %s2751_s13, %s3494_s13  }
  0x14   : > { %s296_s18 = sshll.u32 %s2678_s17, 4  ;;  %p1789_p0 = scmp.ge.s32.totalorder %s2676_s16, 1  ;;  %s2777_s18 = int_to_ptr.vmem [resolvable:$true] %s296_s18 }
  0x15   : > { %p3448_p1 = scmp.eq.s32.totalorder %s2772_s19, 0  ;;  %p284_p2 = scmp.lt.s32.totalorder %s2676_s16, 3 }
  0x16   : > { %s2679_s21 = smov [#allocation8]   ;;  %s2680_s24 = smov [#allocation11]  }
  0x17   : > { %p2779_p3 = pnand %p1789_p0, %p284_p2  ;;  %s310_s22 = sshll.u32 %s2679_s21, 4  ;;  %s2792_s22 = int_to_ptr.vmem [resolvable:$true] %s310_s22 }
  0x18   : > { %s332_s25 = sshll.u32 %s2680_s24, 4  ;;  %s3463_s2 = sld [smem:[#allocation29_spill]]  ;;  %s2794_s25 = int_to_ptr.vmem [resolvable:$true] %s332_s25 }
  0x19   : > { %s3460_s20 = scalar_select %p2779_p3, 1, 0 }
  0x1a   : > { %p2071_p5 = pneg %p2779_p3 }
  0x1b   : > { %3461 = sst [smem:[#allocation28_spill]] %s3460_s20 }
  0x1c   : > { %p2788_p6 = pnand %p2071_p5, %p3448_p1 }
  0x1e   : > { %s2302_s28 = scalar_lea.hbm %s3463_s2, 1024  ;;  %p2804_p8 = pneg %p2788_p6 }
  0x1f   : > { %p2303_p7 = scmp.ne.s32.totalorder %s3463_s2, %s2302_s28  ;;  %p2309_p11 = scmp.lt.u32.totalorder %s2302_s28, %s3463_s2 }
  0x21   : > { %p2305_p9 = pnand %p2804_p8, %p2303_p7 }
  0x23   : > { %p2306_p10 = pneg %p2305_p9 }
  0x25   : > { %p2311_p12 = pnand %p2309_p11, %p2306_p10 }
  0x27   : > { %2314 = shalt.err (!%p2311_p12)
}
  0x28   : > { %s2315_s21 = scalar_lea.vmem %s2777_s18, 1024  ;;  %p2323_p5 = scmp.lt.s32.totalorder %s2777_s18, %s2777_s18 }
  0x29   : > { %p2316_p13 = scmp.ne.s32.totalorder %s2777_s18, %s2315_s21  ;;  %p2324_p4 = scmp.lt.s32.totalorder %s2315_s21, %s2315_s21 }
  0x2b   : > { %p2318_p0 = pnand %p2316_p13, %p2804_p8  ;;  %p2325_p7 = por %p2324_p4, %p2323_p5 }
  0x2d   : > { %p2319_p2 = pneg %p2318_p0 }
  0x2f   : > { %p2326_p9 = pnand %p2325_p7, %p2319_p2 }
  0x31   : > { %2329 = shalt.err (!%p2326_p9)
}
  0x32   : > { %s3446_s24 = smov 64   ;;  %s3450_s26 = smov 4  }
  0x33   : > { %2074 = dma.hbm_to_vmem [thread:$0]  (!%p2788_p6), %s3463_s2, 1024, %s2777_s18, [#allocation6], %s3446_s24, %s3446_s24, %s3450_s26  }
  0x34   : > { %s3465_s3 = sld [smem:[#allocation30_spill]] }
  0x3a   : > { %s2330_s12 = scalar_lea.hbm %s3465_s3, 16 }
  0x3b   : > { %p2331_p4 = scmp.ne.s32.totalorder %s3465_s3, %s2330_s12  ;;  %p2337_p12 = scmp.lt.u32.totalorder %s2330_s12, %s3465_s3 }
  0x3d   : > { %p2333_p10 = pnand %p2331_p4, %p2804_p8 }
  0x3f   : > { %p2334_p11 = pneg %p2333_p10 }
  0x41   : > { %p2339_p13 = pnand %p2337_p12, %p2334_p11 }
  0x43   : > { %2342 = shalt.err (!%p2339_p13)
}
  0x44   : > { %s2343_s18 = scalar_lea.vmem %s2792_s22, 16  ;;  %s2350_s27 = scalar_lea.vmem %s2792_s22, 32 }
  0x45   : > { %p2344_p0 = scmp.ne.s32.totalorder %s2792_s22, %s2343_s18  ;;  %p2351_p7 = scmp.lt.s32.totalorder %s2792_s22, %s2792_s22 }
  0x46   : > { %p2352_p9 = scmp.lt.s32.totalorder %s2350_s27, %s2343_s18 }
  0x47   : > { %p2346_p2 = pnand %p2344_p0, %p2804_p8 }
  0x48   : > { %p2353_p4 = por %p2352_p9, %p2351_p7 }
  0x49   : > { %p2347_p5 = pneg %p2346_p2 }
  0x4b   : > { %p2354_p10 = pnand %p2353_p4, %p2347_p5 }
  0x4d   : > { %2357 = shalt.err (!%p2354_p10)
}
  0x4e   : > { %2077 = dma.hbm_to_vmem [thread:$0]  (!%p2788_p6), %s3465_s3, 16, %s2792_s22, [#allocation9]  }
  0x4f   : > { %s3466_s5 = sld [smem:[#allocation32_spill]] }
  0x55   : > { %s2358_s30 = scalar_lea.hbm %s3466_s5, 16 }
  0x56   : > { %p2359_p11 = scmp.ne.s32.totalorder %s3466_s5, %s2358_s30  ;;  %p2365_p0 = scmp.lt.u32.totalorder %s2358_s30, %s3466_s5 }
  0x58   : > { %p2361_p12 = pnand %p2359_p11, %p2804_p8 }
  0x5a   : > { %p2362_p13 = pneg %p2361_p12 }
  0x5c   : > { %p2367_p2 = pnand %p2365_p0, %p2362_p13 }
  0x5e   : > { %2370 = shalt.err (!%p2367_p2)
}
  0x5f   : > { %s2371_s22 = scalar_lea.vmem %s2794_s25, 16  ;;  %s2378_s27 = scalar_lea.vmem %s2794_s25, 32 }
  0x60   : > { %p2372_p5 = scmp.ne.s32.totalorder %s2794_s25, %s2371_s22  ;;  %p2379_p4 = scmp.lt.s32.totalorder %s2794_s25, %s2794_s25 }
  0x61   : > { %p2380_p10 = scmp.lt.s32.totalorder %s2378_s27, %s2371_s22 }
  0x62   : > { %p2374_p7 = pnand %p2372_p5, %p2804_p8 }
  0x63   : > { %p2381_p11 = por %p2380_p10, %p2379_p4 }
  0x64   : > { %p2375_p9 = pneg %p2374_p7 }
  0x66   : > { %p2382_p12 = pnand %p2381_p11, %p2375_p9 }
  0x68   : > { %2385 = shalt.err (!%p2382_p12)
}
  0x69   : > { %2083 = dma.hbm_to_vmem [thread:$0]  (!%p2788_p6), %s3466_s5, 16, %s2794_s25, [#allocation12]  }
  0x6a   : > { %s2683_s28 = smov [#allocation14]   ;;  %s2684_s30 = smov [#allocation10]  }
  0x6b   : > { %s356_s29 = sshll.u32 %s2683_s28, 4  ;;  %s321_s12 = sshll.u32 %s2684_s30, 4  ;;  %s357_s29 = int_to_ptr.vmem [resolvable:$true] %s356_s29  ;;  %s322_s12 = int_to_ptr.vmem [resolvable:$true] %s321_s12 }
  0x6c   : > { %s3467_s7 = sld [smem:[#allocation34_spill]] }
  0x72   : > { %s2386_s18 = scalar_lea.hbm %s3467_s7, 64 }
  0x73   : > { %p2387_p13 = scmp.ne.s32.totalorder %s3467_s7, %s2386_s18  ;;  %p2393_p5 = scmp.lt.u32.totalorder %s2386_s18, %s3467_s7 }
  0x75   : > { %p2389_p0 = pnand %p2387_p13, %p2804_p8 }
  0x77   : > { %p2390_p2 = pneg %p2389_p0 }
  0x79   : > { %p2395_p7 = pnand %p2393_p5, %p2390_p2 }
  0x7b   : > { %2398 = shalt.err (!%p2395_p7)
}
  0x7c   : > { %s2399_s25 = scalar_lea.vmem %s357_s29, 64  ;;  %p2407_p11 = scmp.lt.s32.totalorder %s357_s29, %s357_s29 }
  0x7d   : > { %p2400_p9 = scmp.ne.s32.totalorder %s357_s29, %s2399_s25  ;;  %p2408_p12 = scmp.lt.s32.totalorder %s2399_s25, %s2399_s25 }
  0x7f   : > { %p2402_p4 = pnand %p2400_p9, %p2804_p8  ;;  %p2409_p1 = por %p2408_p12, %p2407_p11 }
  0x81   : > { %p2403_p10 = pneg %p2402_p4 }
  0x83   : > { %p2410_p3 = pnand %p2409_p1, %p2403_p10 }
  0x85   : > { %2413 = shalt.err (!%p2410_p3)
}
  0x86   : > { %2089 = dma.hbm_to_vmem [thread:$0]  (!%p2788_p6), %s3467_s7, 64, %s357_s29, [#allocation15]  }
  0x87   : > { %s3468_s4 = sld [smem:[#allocation31_spill]] }
  0x8d   : > { %s2414_s17 = scalar_lea.hbm %s3468_s4, 16 }
  0x8e   : > { %p2415_p13 = scmp.ne.s32.totalorder %s3468_s4, %s2414_s17  ;;  %p2421_p3 = scmp.lt.u32.totalorder %s2414_s17, %s3468_s4 }
  0x90   : > { %p2417_p0 = pnand %p2415_p13, %p2804_p8 }
  0x92   : > { %p2418_p1 = pneg %p2417_p0 }
  0x94   : > { %p2423_p2 = pnand %p2421_p3, %p2418_p1 }
  0x96   : > { %2426 = shalt.err (!%p2423_p2)
}
  0x97   : > { %s2427_s10 = scalar_lea.vmem %s322_s12, 16  ;;  %s2434_s29 = scalar_lea.vmem %s322_s12, 32 }
  0x98   : > { %p2428_p5 = scmp.ne.s32.totalorder %s322_s12, %s2427_s10  ;;  %p2435_p4 = scmp.lt.s32.totalorder %s322_s12, %s322_s12 }
  0x99   : > { %p2436_p10 = scmp.lt.s32.totalorder %s2434_s29, %s2427_s10 }
  0x9a   : > { %p2430_p7 = pnand %p2428_p5, %p2804_p8 }
  0x9b   : > { %p2437_p11 = por %p2436_p10, %p2435_p4 }
  0x9c   : > { %p2431_p9 = pneg %p2430_p7 }
  0x9e   : > { %p2438_p12 = pnand %p2437_p11, %p2431_p9 }
  0xa0   : > { %2441 = shalt.err (!%p2438_p12)
}
  0xa1   : > { %2080 = dma.hbm_to_vmem [thread:$0]  (!%p2788_p6), %s3468_s4, 16, %s322_s12, [#allocation9]  }
  0xa2   : > { %s2685_s28 = smov [#allocation13]   ;;  %s3469_s6 = sld [smem:[#allocation33_spill]] }
  0xa3   : > { %s342_s24 = sshll.u32 %s2685_s28, 4  ;;  %s343_s24 = int_to_ptr.vmem [resolvable:$true] %s342_s24 }
  0xa8   : > { %s2442_s21 = scalar_lea.hbm %s3469_s6, 4096 }
  0xa9   : > { %p2443_p13 = scmp.ne.s32.totalorder %s3469_s6, %s2442_s21  ;;  %p2449_p3 = scmp.lt.u32.totalorder %s2442_s21, %s3469_s6 }
  0xab   : > { %p2445_p0 = pnand %p2443_p13, %p2804_p8 }
  0xad   : > { %p2446_p1 = pneg %p2445_p0 }
  0xaf   : > { %p2451_p2 = pnand %p2449_p3, %p2446_p1 }
  0xb1   : > { %2454 = shalt.err (!%p2451_p2)
}
  0xb2   : > { %s2455_s12 = scalar_lea.vmem %s343_s24, 4096  ;;  %p2463_p4 = scmp.lt.s32.totalorder %s343_s24, %s343_s24 }
  0xb3   : > { %p2456_p5 = scmp.ne.s32.totalorder %s343_s24, %s2455_s12  ;;  %p2464_p10 = scmp.lt.s32.totalorder %s2455_s12, %s2455_s12 }
  0xb5   : > { %p2458_p7 = pnand %p2456_p5, %p2804_p8  ;;  %p2465_p11 = por %p2464_p10, %p2463_p4 }
  0xb7   : > { %p2459_p9 = pneg %p2458_p7 }
  0xb9   : > { %p2466_p12 = pnand %p2465_p11, %p2459_p9 }
  0xbb   : > { %2469 = shalt.err (!%p2466_p12)
}
  0xbc   : > { %s2686_s29 = smov 256   ;;  %s2687_s25 = smov 16  }
  0xbd   : > { %2086 = dma.hbm_to_vmem [thread:$0]  (!%p2788_p6), %s3469_s6, 4096, %s343_s24, [#allocation12], %s2686_s29, %s2686_s29, %s2687_s25  }
  0xbe   : > { %s2688_s30 = smov [#allocation16]   ;;  %s2689_s21 = smov [#allocation17]  }
  0xbf   : > { %s366_s17 = sshll.u32 %s2688_s30, 4  ;;  %s380_s18 = sshll.u32 %s2689_s21, 4  ;;  %s367_s17 = int_to_ptr.vmem [resolvable:$true] %s366_s17  ;;  %s2930_s18 = int_to_ptr.vmem [resolvable:$true] %s380_s18 }
  0xc0   : > { %s2470_s10 = scalar_lea.hbm %s3441_s8, 4096 }
  0xc1   : > { %p2471_p13 = scmp.ne.s32.totalorder %s3441_s8, %s2470_s10  ;;  %p2477_p3 = scmp.lt.u32.totalorder %s2470_s10, %s3441_s8 }
  0xc3   : > { %p2473_p0 = pnand %p2471_p13, %p2804_p8 }
  0xc5   : > { %p2474_p1 = pneg %p2473_p0 }
  0xc7   : > { %p2479_p2 = pnand %p2477_p3, %p2474_p1 }
  0xc9   : > { %2482 = shalt.err (!%p2479_p2)
}
  0xca   : > { %s2483_s29 = scalar_lea.vmem %s367_s17, 4096  ;;  %p2491_p4 = scmp.lt.s32.totalorder %s367_s17, %s367_s17 }
  0xcb   : > { %p2484_p5 = scmp.ne.s32.totalorder %s367_s17, %s2483_s29  ;;  %p2492_p10 = scmp.lt.s32.totalorder %s2483_s29, %s2483_s29 }
  0xcd   : > { %p2486_p7 = pnand %p2484_p5, %p2804_p8  ;;  %p2493_p11 = por %p2492_p10, %p2491_p4 }
  0xcf   : > { %p2487_p9 = pneg %p2486_p7 }
  0xd1   : > { %p2494_p12 = pnand %p2493_p11, %p2487_p9 }
  0xd3   : > { %2497 = shalt.err (!%p2494_p12)
}
  0xd4   : > { %s3470_s26 = smov 4   ;;  %s3471_s25 = smov 64  }
  0xd5   : > { %2092 = dma.hbm_to_vmem [thread:$0]  (!%p2788_p6), %s3441_s8, 4096, %s367_s17, [#allocation15], %s3471_s25, %s3471_s25, %s3470_s26  }
  0xd6   : > { %s2498_s27 = scalar_lea.hbm %s3442_s9, 16 }
  0xd7   : > { %p2499_p13 = scmp.ne.s32.totalorder %s3442_s9, %s2498_s27  ;;  %p2505_p3 = scmp.lt.u32.totalorder %s2498_s27, %s3442_s9 }
  0xd9   : > { %p2501_p0 = pnand %p2499_p13, %p2804_p8 }
  0xdb   : > { %p2502_p1 = pneg %p2501_p0 }
  0xdd   : > { %p2507_p2 = pnand %p2505_p3, %p2502_p1 }
  0xdf   : > { %2510 = shalt.err (!%p2507_p2)
}
  0xe0   : > { %s2511_s17 = scalar_lea.vmem %s2930_s18, 16  ;;  %s2518_s29 = scalar_lea.vmem %s2930_s18, 32 }
  0xe1   : > { %p2512_p5 = scmp.ne.s32.totalorder %s2930_s18, %s2511_s17  ;;  %p2519_p4 = scmp.lt.s32.totalorder %s2930_s18, %s2930_s18 }
  0xe2   : > { %p2520_p10 = scmp.lt.s32.totalorder %s2518_s29, %s2511_s17 }
  0xe3   : > { %p2514_p7 = pnand %p2512_p5, %p2804_p8 }
  0xe4   : > { %p2521_p11 = por %p2520_p10, %p2519_p4 }
  0xe5   : > { %p2515_p9 = pneg %p2514_p7 }
  0xe7   : > { %p2522_p12 = pnand %p2521_p11, %p2515_p9 }
  0xe9   : > { %2525 = shalt.err (!%p2522_p12)
}
  0xea   : > { %2095 = dma.hbm_to_vmem [thread:$0]  (!%p2788_p6), %s3442_s9, 16, %s2930_s18, [#allocation18]  }
  0xeb   : > { %s1788_s23 = sadd.s32 4294967294, %s2676_s16   ;;  %s2979_s11 = sadd.s32 1, %s2676_s16  }
  0xec   : > { %s37_s21 = ssub.s32 %s2676_s16, %s2979_s11  ;;  %s40_s22 = sadd.s32 1, %s2672_s15 }
  0xed   : > { %p38_p8 = scmp.eq.s32.totalorder %s37_s21, 0  ;;  %p47_p13 = scmp.ne.s32.totalorder %s2672_s15, %s2668_s14 }
  0xee   : > { %p48_p0 = scmp.eq.s32.totalorder %s2676_s16, 0  ;;  %p53_p1 = scmp.ne.s32.totalorder %s2668_s14, %s2664_s13 }
  0xef   : > { %s2990_s27 = scalar_select %p38_p8, %s2672_s15, %s40_s22  }
  0xf0   : > { %p2992_p3 = por %p48_p0, %p47_p13  ;;  %p3473_p2 = scmp.eq.s32.totalorder %s2772_s19, 0 }
  0xf1   : > { %p271_p5 = scmp.eq.s32.totalorder %s2772_s19, 1  ;;  %p277_p7 = scmp.eq.s32.totalorder %s1788_s23, 1 }
  0xf2   : > { %p2998_p6 = por %p3473_p2, %p53_p1  ;;  %p2115_p9 = scmp.lt.s32.totalorder %s2676_s16, 2 }
  0xf3   : > { %s391_s12 = sand.u32 1, %s2672_s15   ;;  %p3005_p4 = por %p271_p5, %p47_p13 }
  0xf4   : > { %p3009_p10 = por %p277_p7, %p53_p1  ;;  %s1799_s17 = sshll.u32 %s391_s12, 4 }
  0xf5   : > { %s3475_s20 = scalar_select %p3005_p4, 1, 0 }
  0xf6   : > { %s3476_s24 = scalar_select %p3009_p10, 1, 0 }
  0xf7   : > { %s1904_s29 = sshll.u32 %s2676_s16, 8  ;;  %s395_s23 = scalar_lea.vmem [#allocation2], %s1799_s17 }
  0xf8   : > { %s3017_s21 = scalar_lea.hbm %s3433_s0, %s1904_s29  ;;  %s402_s22 = sshll.u32 %s395_s23, 4  ;;  %s3019_s22 = int_to_ptr.vmem [resolvable:$true] %s402_s22 }
  0xf9   : > { %p3023_p11 = pnand %p2115_p9, %p2992_p3  ;;  %s3030_s28 = scalar_lea.hbm %s3434_s1, %s1904_s29 }
  0xfa   : > { %s416_s30 = scalar_lea.vmem [#allocation5], %s1799_s17  ;;  %s3034_s6 = scalar_lea.sflag [#allocation3], %s391_s12 }
  0xfb   : > { %s3032_s5 = sshll.u32 %s416_s30, 4  ;;  %s2526_s23 = scalar_lea.hbm %s3017_s21, 256  ;;  %s3066_s5 = int_to_ptr.vmem [resolvable:$true] %s3032_s5 }
  0xfc   : > { %p2527_p12 = scmp.ne.s32.totalorder %s3017_s21, %s2526_s23  ;;  %p2528_p8 = pneg %p3023_p11 }
  0xfd   : > { %s2531_s3 = scalar_lea.hbm %s3433_s0, 512  ;;  %p2532_p1 = scmp.lt.u32.totalorder %s3017_s21, %s3433_s0 }
  0xfe   : > { %p2529_p13 = pnand %p2528_p8, %p2527_p12  ;;  %p2533_p3 = scmp.lt.u32.totalorder %s2531_s3, %s2526_s23 }
  0xff   : > { %p2535_p5 = scmp.lt.u32.totalorder %s2526_s23, %s3017_s21 }
 0x100   : > { %p2530_p0 = pneg %p2529_p13  ;;  %p2534_p2 = por %p2533_p3, %p2532_p1 }
 0x102   : > { %p2536_p7 = por %p2535_p5, %p2534_p2 }
 0x104   : > { %p2537_p9 = pnand %p2536_p7, %p2530_p0 }
 0x106   : > { %2540 = shalt.err (!%p2537_p9)
}
 0x107   : > { %s2541_s12 = scalar_lea.vmem %s3019_s22, 256  ;;  %s2690_s7 = smov [#allocation2]  }
 0x108   : > { %p2542_p12 = scmp.ne.s32.totalorder %s3019_s22, %s2541_s12  ;;  %s2546_s17 = sshll.u32 %s2690_s7, 4  ;;  %s2547_s17 = int_to_ptr.vmem [resolvable:$false] %s2546_s17 }
 0x109   : > { %s2548_s30 = scalar_lea.vmem %s2547_s17, 512  ;;  %p2549_p4 = scmp.lt.s32.totalorder %s3019_s22, %s2547_s17 }
 0x10a   : > { %p2544_p13 = pnand %p2542_p12, %p2528_p8  ;;  %p2550_p1 = scmp.lt.s32.totalorder %s2548_s30, %s2541_s12 }
 0x10c   : > { %p2545_p10 = pneg %p2544_p13  ;;  %p2551_p3 = por %p2550_p1, %p2549_p4 }
 0x10e   : > { %p2552_p2 = pnand %p2551_p3, %p2545_p10 }
 0x110   : > { %2555 = shalt.err (!%p2552_p2)
}
 0x111   : > { %2099 = dma.hbm_to_vmem [thread:$0]  (!%p3023_p11), %s3017_s21, 256, %s3019_s22, %s3034_s6, %s3471_s25, %s3471_s25, %s3470_s26  }
 0x112   : > { %s412_s23 = sand.u32 1, %s2676_s16   ;;  %s2556_s3 = scalar_lea.hbm %s3030_s28, 256 }
 0x113   : > { %s3069_s10 = scalar_lea.sflag [#allocation6], %s412_s23  ;;  %p2557_p4 = scmp.ne.s32.totalorder %s3030_s28, %s2556_s3 }
 0x114   : > { %s2561_s12 = scalar_lea.hbm %s3434_s1, 512  ;;  %p2562_p5 = scmp.lt.u32.totalorder %s3030_s28, %s3434_s1 }
 0x115   : > { %p2559_p10 = pnand %p2557_p4, %p2528_p8  ;;  %p2563_p7 = scmp.lt.u32.totalorder %s2561_s12, %s2556_s3 }
 0x116   : > { %p2565_p12 = scmp.lt.u32.totalorder %s2556_s3, %s3030_s28 }
 0x117   : > { %p2560_p0 = pneg %p2559_p10  ;;  %p2564_p9 = por %p2563_p7, %p2562_p5 }
 0x119   : > { %p2566_p13 = por %p2565_p12, %p2564_p9 }
 0x11b   : > { %p2567_p1 = pnand %p2566_p13, %p2560_p0 }
 0x11d   : > { %2570 = shalt.err (!%p2567_p1)
}
 0x11e   : > { %s2571_s6 = scalar_lea.vmem %s3066_s5, 256  ;;  %s2691_s21 = smov [#allocation5]  }
 0x11f   : > { %p2572_p3 = scmp.ne.s32.totalorder %s3066_s5, %s2571_s6  ;;  %s2576_s22 = sshll.u32 %s2691_s21, 4  ;;  %s2577_s22 = int_to_ptr.vmem [resolvable:$false] %s2576_s22 }
 0x120   : > { %s2578_s30 = scalar_lea.vmem %s2577_s22, 512  ;;  %p2579_p10 = scmp.lt.s32.totalorder %s3066_s5, %s2577_s22 }
 0x121   : > { %p2574_p2 = pnand %p2572_p3, %p2528_p8  ;;  %p2580_p5 = scmp.lt.s32.totalorder %s2578_s30, %s2571_s6 }
 0x123   : > { %p2575_p4 = pneg %p2574_p2  ;;  %p2581_p7 = por %p2580_p5, %p2579_p10 }
 0x125   : > { %p2582_p9 = pnand %p2581_p7, %p2575_p4 }
 0x127   : > { %2585 = shalt.err (!%p2582_p9)
}
 0x128   : > { %2102 = dma.hbm_to_vmem [thread:$0]  (!%p3023_p11), %s3030_s28, 256, %s3066_s5, %s3069_s10, %s3471_s25, %s3471_s25, %s3470_s26  }
 0x129   : > { %s3478_s23 = sld [smem:[#allocation28_spill]] }
 0x12f   : > { %p3479_p8 = scmp.ne.s32.totalorder %s3478_s23, 0 }
 0x130   : > { %s3101_s3 = sand.u32 (!%p3479_p8), 1, %s2668_s14  }
 0x131   : > { %435 = sbr.rel (%p3479_p8) target bundleno = 1419 (0x58b), region = 60  ;;  %s3104_s4 = sshll.u32 (!%p3479_p8), %s3101_s3, 4 }
 0x132   : > { %s438_s2 = scalar_lea.sflag (!%p3479_p8), [#allocation3], %s3101_s3  ;;  %s441_s29 = scalar_lea.vmem (!%p3479_p8), [#allocation2], %s3104_s4 }
 0x138   : > { %2631 = dma.done.wait (%p2998_p6), %s438_s2, 256  }
 0x139   : > { %2633 = vsyncadd (%p2998_p6), %s438_s2, 4294967040  ;;  %s446_s5 = sand.u32 1, %s2772_s19   ;;  %s450_s25 = scalar_lea.vmem [#allocation5], %s3104_s4 }
 0x13a   : > { %s447_s26 = scalar_lea.sflag [#allocation6], %s446_s5 }
 0x13b   : > { %2635 = dma.done.wait (%p2998_p6), %s447_s26, 256  }
 0x13c   : > { %2637 = vsyncadd (%p2998_p6), %s447_s26, 4294967040  ;;  %p3480_p11 = scmp.eq.s32.totalorder %s2772_s19, 0 }
 0x13e   : > { %2639 = dma.done.wait (%p3480_p11), [#allocation6], 1024   ;;  %p3481_p0 = pmov %p3480_p11 }
 0x140   : > { %2641 = vsyncadd (%p3481_p0), [#allocation6], 4294966272  ;;  %p3482_p12 = pmov %p3481_p0 }
 0x141   : > { %p3483_p13 = pmov %p3481_p0 }
 0x142   : > { %2643 = dma.done.wait (%p3482_p12), [#allocation9], 32  }
 0x143   : > { %2645 = vsyncadd (%p3483_p13), [#allocation9], 4294967264  ;;  %p3484_p1 = pmov %p3481_p0 }
 0x144   : > { %p3485_p3 = pmov %p3481_p0 }
 0x145   : > { %2647 = dma.done.wait (%p3484_p1), [#allocation12], 4112  }
 0x146   : > { %2649 = vsyncadd (%p3485_p3), [#allocation12], 4294963184  ;;  %p3486_p6 = pmov %p3481_p0 }
 0x147   : > { %p3487_p2 = pmov %p3481_p0 }
 0x148   : > { %2651 = dma.done.wait (%p3486_p6), [#allocation15], 4160  }
 0x149   : > { %2653 = vsyncadd (%p3487_p2), [#allocation15], 4294963136  ;;  %p3488_p4 = pmov %p3481_p0 }
 0x14a   : > { %p3489_p10 = pmov %p3481_p0 }
 0x14b   : > { %2655 = dma.done.wait (%p3488_p4), [#allocation18], 16  }
 0x14c   : > { %2657 = vsyncadd (%p3489_p10), [#allocation18], 4294967280  ;;  %v2172_v0 = vld [vmem:[#allocation7] sm:$0xff]   ;;  %v2173_v1 = vld [vmem:[#allocation7 + $0x8] sm:$0xff]   ;;  %s523_s18 = scalar_lea.vmem [#allocation19], %s3104_s4  ;;  %s1910_s10 = sshll.u32 %s2772_s19, 8 }
 0x14d   : > { %1997 = vmatprep.subr.bf16.mxu0 %v2172_v0  ;;  %v2174_v2 = vld [vmem:[#allocation7 + $0x10] sm:$0xff]   ;;  %v2175_v3 = vld [vmem:[#allocation7 + $0x18] sm:$0xff]   ;;  %v2176_v5 = vld [vmem:[#allocation7 + $0x20] sm:$0xff]   ;;  %s1616_s28 = sshll.u32 %s523_s18, 4  ;;  %s3490_s17 = sld [smem:[#allocation35_spill]]  ;;  %s3389_s28 = int_to_ptr.vmem [resolvable:$true] %s1616_s28 }
 0x14e   : > { %1998 = vmatpush3.bf16.msra.mxu0 %v2172_v0  ;;  %v2180_v4 = vld [vmem:[%s450_s25] sm:$0xff]   ;;  %v2177_v6 = vld [vmem:[#allocation7 + $0x28] sm:$0xff]   ;;  %v2179_v8 = vld [vmem:[#allocation7 + $0x38] sm:$0xff]   ;;  %s1603_s21 = scalar_lea.sflag [#allocation4], %s3101_s3  ;;  %s2586_s22 = scalar_lea.vmem %s3389_s28, 256 }
 0x14f   : > { %1999 = vmatprep.subr.bf16.mxu0 %v2173_v1  ;;  %2013 = vmatprep.mubr.bf16.mxu0 %v2180_v4  ;;  %v2178_v7 = vld [vmem:[#allocation7 + $0x30] sm:$0xff]   ;;  %v2181_v9 = vld [vmem:[%s450_s25 + $0x8] sm:$0xff]   ;;  %v1817_v12 = vld [vmem:[#allocation8] ss:$0 sm:$0xff]  ;;  %p2587_p5 = scmp.ne.s32.totalorder %s3389_s28, %s2586_s22  ;;  %p3491_p7 = scmp.ne.s32.totalorder %s3475_s20, 0 }
 0x150   : > { %v1929_v10 = vld [vmem:[%s441_s29 + $0x8] sm:$0xff]   ;;  %v1912_v11 = vld [vmem:[%s441_s29] sm:$0xff]   ;;  %s2693_s19 = smov [#allocation19]  }
 0x151   : > { %v1917_v13 = vunpack.c.l.bf16 %v1929_v10  ;;  %v1913_v15 = vunpack.c.l.bf16 %v1912_v11  ;;  %v1918_v21 = vunpack.c.h.bf16 %v1929_v10  ;;  %v1914_v25 = vunpack.c.h.bf16 %v1912_v11  ;;  %v2182_v29 = vld [vmem:[#allocation13 + $0x4] ss:$16 sps:$4 sm:$0xff]   ;;  %v2184_v30 = vld [vmem:[#allocation13 + $0x8] ss:$16 sps:$4 sm:$0xff]   ;;  %v2186_v31 = vld [vmem:[#allocation13 + $0xc] ss:$16 sps:$4 sm:$0xff]   ;;  %p2588_p9 = pnand %p2587_p5, %p3491_p7 }
 0x152   : > { %2000 = vmatpush3.bf16.msra.mxu0 %v2173_v1  ;;  %v2187_v32 = vld [vmem:[#allocation13] ss:$16 sps:$4 sm:$0xff]   ;;  %v2188_v33 = vld [vmem:[#allocation13 + $0x24] ss:$16 sps:$4 sm:$0xff]   ;;  %959 = vmatprep.subr.bf16.mxu1 %v2182_v29  ;;  %v2192_v34 = vld [vmem:[#allocation13 + $0x2c] ss:$16 sps:$4 sm:$0xff]  }
 0x153   : > { %2001 = vmatprep.subr.bf16.mxu0 %v2174_v2  ;;  %960 = vmatpush1.bf16.msra.mxu1 %v2187_v32  ;;  %v2190_v35 = vld [vmem:[#allocation13 + $0x28] ss:$16 sps:$4 sm:$0xff]   ;;  %v2193_v52 = vld [vmem:[#allocation13 + $0x20] ss:$16 sps:$4 sm:$0xff]   ;;  %v2194_v53 = vld [vmem:[#allocation13 + $0x44] ss:$16 sps:$4 sm:$0xff]   ;;  %s3387_s6 = scalar_lea.hbm %s3490_s17, %s1910_s10  ;;  %p2589_p8 = pneg %p2588_p9 }
 0x154   : > { %961 = vmatprep.subr.bf16.mxu1 %v2188_v33  ;;  %v2198_v54 = vld [vmem:[#allocation13 + $0x4c] ss:$16 sps:$4 sm:$0xff]   ;;  %v2196_v55 = vld [vmem:[#allocation13 + $0x48] ss:$16 sps:$4 sm:$0xff]   ;;  %v2199_v56 = vld [vmem:[#allocation13 + $0x40] ss:$16 sps:$4 sm:$0xff]  }
 0x155   : > { %v2200_v57 = vld [vmem:[#allocation13 + $0x64] ss:$16 sps:$4 sm:$0xff]   ;;  %v2204_v58 = vld [vmem:[#allocation13 + $0x6c] ss:$16 sps:$4 sm:$0xff]   ;;  %v2202_v59 = vld [vmem:[#allocation13 + $0x68] ss:$16 sps:$4 sm:$0xff]  }
 0x156   : > { %2002 = vmatpush3.bf16.msra.mxu0 %v2174_v2  ;;  %v2205_v60 = vld [vmem:[#allocation13 + $0x60] ss:$16 sps:$4 sm:$0xff]   ;;  %v2206_v61 = vld [vmem:[#allocation13 + $0x84] ss:$16 sps:$4 sm:$0xff]   ;;  %v2210_v62 = vld [vmem:[#allocation13 + $0x8c] ss:$16 sps:$4 sm:$0xff]  }
 0x157   : > { %2003 = vmatprep.subr.bf16.mxu0 %v2175_v3  ;;  %962 = vmatpush1.bf16.msra.mxu1 %v2193_v52  ;;  %v2208_v63 = vld [vmem:[#allocation13 + $0x88] ss:$16 sps:$4 sm:$0xff]   ;;  %v2211_v0 = vld [vmem:[#allocation13 + $0x80] ss:$16 sps:$4 sm:$0xff]   ;;  %v2212_v1 = vld [vmem:[#allocation13 + $0xa4] ss:$16 sps:$4 sm:$0xff]  }
 0x158   : > { %963 = vmatprep.subr.bf16.mxu1 %v2194_v53  ;;  %v2216_v2 = vld [vmem:[#allocation13 + $0xac] ss:$16 sps:$4 sm:$0xff]   ;;  %v2217_v4 = vld [vmem:[#allocation13 + $0xa0] ss:$16 sps:$4 sm:$0xff]   ;;  %v2692_v11 = vmov 0   ;;  %v2230_v52 = vld [vmem:[#allocation16 + $0x40] sm:$0xff]  }
 0x159   : > { %v2228_v10 = vld [vmem:[#allocation13 + $0xec] ss:$16 sps:$4 sm:$0xff]   ;;  %991 = vmatprep.mubr.bf16.mxu1 %v2692_v11  ;;  %v2231_v53 = vld [vmem:[#allocation16] sm:$0xff]   ;;  %s2590_s30 = sshll.u32 %s2693_s19, 4  ;;  %s2591_s30 = int_to_ptr.vmem [resolvable:$false] %s2590_s30 }
 0x15a   : > { %2004 = vmatpush3.bf16.msra.mxu0 %v2175_v3  ;;  %v2214_v3 = vld [vmem:[#allocation13 + $0xa8] ss:$16 sps:$4 sm:$0xff]   ;;  %v1828_v32 = vld [vmem:[#allocation10] ss:$0 sm:$0xff]  ;;  %s2592_s23 = scalar_lea.vmem %s2591_s30, 512  ;;  %p2593_p11 = scmp.lt.s32.totalorder %s3389_s28, %s2591_s30 }
 0x15b   : > { %2005 = vmatprep.subr.bf16.mxu0 %v2176_v5  ;;  %964 = vmatpush1.bf16.msra.mxu1 %v2199_v56  ;;  %v3185_v56 = vld [vmem:[#allocation16 + $0xc8] sm:$0xff]   ;;  %p2594_p0 = scmp.lt.s32.totalorder %s2592_s23, %s2586_s22 }
 0x15c   : > { %965 = vmatprep.subr.bf16.mxu1 %v2200_v57  ;;  %v3188_v57 = vld [vmem:[#allocation16 + $0x88] sm:$0xff]  }
 0x15d   : > { %p2595_p12 = por %p2594_p0, %p2593_p11 }
 0x15e   : > { %2006 = vmatpush3.bf16.msra.mxu0 %v2176_v5  ;;  %v2218_v5 = vld [vmem:[#allocation13 + $0xc4] ss:$16 sps:$4 sm:$0xff]  }
 0x15f   : > { %2007 = vmatprep.subr.bf16.mxu0 %v2177_v6  ;;  %966 = vmatpush1.bf16.msra.mxu1 %v2205_v60  ;;  %v3191_v60 = vld [vmem:[#allocation16 + $0xd0] sm:$0xff]   ;;  %p2596_p13 = pnand %p2595_p12, %p2589_p8 }
 0x160   : > { %967 = vmatprep.subr.bf16.mxu1 %v2206_v61  ;;  %v3193_v61 = vld [vmem:[#allocation16 + $0x90] sm:$0xff]  }
 0x162   : > { %2008 = vmatpush3.bf16.msra.mxu0 %v2177_v6  ;;  %v2222_v6 = vld [vmem:[#allocation13 + $0xcc] ss:$16 sps:$4 sm:$0xff]  }
 0x163   : > { %2009 = vmatprep.subr.bf16.mxu0 %v2178_v7  ;;  %968 = vmatpush1.bf16.msra.mxu1 %v2211_v0  ;;  %v3197_v0 = vld [vmem:[#allocation16 + $0xd8] sm:$0xff]  }
 0x164   : > { %969 = vmatprep.subr.bf16.mxu1 %v2212_v1  ;;  %v3199_v1 = vld [vmem:[#allocation16 + $0x98] sm:$0xff]  }
 0x166   : > { %2010 = vmatpush3.bf16.msra.mxu0 %v2178_v7  ;;  %v2220_v7 = vld [vmem:[#allocation13 + $0xc8] ss:$16 sps:$4 sm:$0xff]  }
 0x167   : > { %2011 = vmatprep.subr.bf16.mxu0 %v2179_v8  ;;  %970 = vmatpush1.bf16.msra.mxu1 %v2217_v4  ;;  %v3203_v4 = vld [vmem:[#allocation16 + $0xe0] sm:$0xff]  }
 0x168   : > { %971 = vmatprep.subr.bf16.mxu1 %v2218_v5  ;;  %v3205_v5 = vld [vmem:[#allocation16 + $0xa0] sm:$0xff]  }
 0x16a   : > { %2012 = vmatpush3.bf16.msra.mxu0 %v2179_v8  ;;  %v2223_v8 = vld [vmem:[#allocation13 + $0xc0] ss:$16 sps:$4 sm:$0xff]  }
 0x16b   : > { %1012 = vmatprep.subr.bf16.mxu0 %v2186_v31  ;;  %972 = vmatpush1.bf16.msra.mxu1 %v2223_v8  ;;  %v3209_v8 = vld [vmem:[#allocation16 + $0xe8] sm:$0xff]  }
 0x16d   : > { %2014 = vmatmul.mubr.bf16.vlgmr.msra.gmra.mrb[0].mxu0 %v2181_v9  ;;  %v2224_v9 = vld [vmem:[#allocation13 + $0xe4] ss:$16 sps:$4 sm:$0xff]  }
 0x16e   : > { %1013 = vmatpush1.bf16.msra.mxu0 %v2184_v30  ;;  %1044 = vmatprep.mubr.bf16.mxu0 %v2692_v11 }
 0x16f   : > { %1014 = vmatprep.subr.bf16.mxu0 %v2192_v34  ;;  %973 = vmatprep.subr.bf16.mxu1 %v2224_v9  ;;  %v3211_v9 = vld [vmem:[#allocation16 + $0xa8] sm:$0xff]  }
 0x172   : > { %1015 = vmatpush1.bf16.msra.mxu0 %v2190_v35 }
 0x173   : > { %1016 = vmatprep.subr.bf16.mxu0 %v2198_v54  ;;  %v2232_v54 = vld [vmem:[#allocation16 + $0xc0] sm:$0xff]  }
 0x176   : > { %1017 = vmatpush1.bf16.msra.mxu0 %v2196_v55  ;;  %v3182_v55 = vld [vmem:[#allocation16 + $0x80] sm:$0xff]  }
 0x177   : > { %1018 = vmatprep.subr.bf16.mxu0 %v2204_v58  ;;  %v2238_v58 = vld [vmem:[#allocation16 + $0x50] sm:$0xff]  }
 0x17a   : > { %1019 = vmatpush1.bf16.msra.mxu0 %v2202_v59  ;;  %v2239_v59 = vld [vmem:[#allocation16 + $0x10] sm:$0xff]  }
 0x17b   : > { %1020 = vmatprep.subr.bf16.mxu0 %v2210_v62  ;;  %v2242_v62 = vld [vmem:[#allocation16 + $0x58] sm:$0xff]  }
 0x17e   : > { %1021 = vmatpush1.bf16.msra.mxu0 %v2208_v63  ;;  %v2243_v63 = vld [vmem:[#allocation16 + $0x18] sm:$0xff]  }
 0x17f   : > { %1022 = vmatprep.subr.bf16.mxu0 %v2216_v2  ;;  %v2246_v2 = vld [vmem:[#allocation16 + $0x60] sm:$0xff]  }
 0x182   : > { %1023 = vmatpush1.bf16.msra.mxu0 %v2214_v3  ;;  %v2247_v3 = vld [vmem:[#allocation16 + $0x20] sm:$0xff]  }
 0x183   : > { %1024 = vmatprep.subr.bf16.mxu0 %v2222_v6  ;;  %v2250_v6 = vld [vmem:[#allocation16 + $0x68] sm:$0xff]  }
 0x186   : > { %1025 = vmatpush1.bf16.msra.mxu0 %v2220_v7  ;;  %v2251_v7 = vld [vmem:[#allocation16 + $0x28] sm:$0xff]  }
 0x187   : > { %1026 = vmatprep.subr.bf16.mxu0 %v2228_v10  ;;  %v2254_v10 = vld [vmem:[#allocation16 + $0x70] sm:$0xff]  }
 0x240   : > { %v2015_v14 = vpop.f32.mrb[0].mxu0 }
 0x241   : > { %v666_v16 = vadd.f32 %v2015_v14, %v1817_v12  ;;  %v657_v17 = vpop.f32.mrb[1].mxu0 }
 0x242   : > { %v658_v18 = vadd.f32 %v1817_v12, %v657_v17  ;;  %v2016_v19 = vpop.f32.mrb[2].mxu0 }
 0x243   : > { %v3146_v20 = vadd.f32 %v1917_v13, %v666_v16  ;;  %v669_v22 = vadd.f32 %v2016_v19, %v1817_v12  ;;  %v660_v23 = vpop.f32.mrb[3].mxu0  ;;  %v2229_v13 = vld [vmem:[#allocation13 + $0xe0] ss:$16 sps:$4 sm:$0xff]  }
 0x244   : > { %v3148_v24 = vadd.f32 %v1913_v15, %v658_v18  ;;  %v661_v26 = vadd.f32 %v1817_v12, %v660_v23  ;;  %v2226_v12 = vld [vmem:[#allocation13 + $0xe8] ss:$16 sps:$4 sm:$0xff]   ;;  %974 = vmatpush1.bf16.msra.mxu1 %v2229_v13 }
 0x245   : > { %682 = vadd.xlane.f32.xlu1 %v3146_v20  ;;  %v3152_v27 = vadd.f32 %v1918_v21, %v669_v22  ;;  %1027 = vmatpush1.bf16.msra.mxu0 %v2226_v12  ;;  %v3215_v12 = vld [vmem:[#allocation16 + $0xf0] sm:$0xff]  }
 0x246   : > { %678 = vadd.xlane.f32.xlu0 %v3148_v24  ;;  %v3154_v28 = vadd.f32 %v1914_v25, %v661_v26  ;;  %1941 = vmatprep.subr.bf16.mxu1 %v2230_v52  ;;  %v3217_v13 = vld [vmem:[#allocation16 + $0xb0] sm:$0xff]  }
 0x247   : > { %1969 = vmatprep.subr.bf16.mxu0 %v2232_v54 }
 0x249   : > { %684 = vadd.xlane.f32.xlu1 %v3152_v27 }
 0x24a   : > { %680 = vadd.xlane.f32.xlu0 %v3154_v28 }
 0x2d2   : > { %v683_v36 = vpop.xlane.xlu1 %682 }
 0x2d3   : > { %v679_v37 = vpop.xlane.xlu0 %678  ;;  %v689_v38 = vmul.f32 0.0078125, %v683_v36 }
 0x2d4   : > { %v687_v39 = vmul.f32 0.0078125, %v679_v37  ;;  %v1829_v37 = vld [vmem:[#allocation11] ss:$0 sm:$0xff] }
 0x2d5   : > { %v3162_v43 = vsub.f32 %v3146_v20, %v689_v38 }
 0x2d6   : > { %v3159_v40 = vsub.f32 %v3148_v24, %v687_v39  ;;  %v685_v41 = vpop.xlane.xlu1 %684 }
 0x2d7   : > { %v681_v42 = vpop.xlane.xlu0 %680  ;;  %v690_v44 = vmul.f32 0.0078125, %v685_v41  ;;  %v697_v49 = vmul.f32 %v3162_v43, %v3162_v43 }
 0x2d8   : > { %v688_v45 = vmul.f32 0.0078125, %v681_v42  ;;  %v695_v46 = vmul.f32 %v3159_v40, %v3159_v40 }
 0x2d9   : > { %v3170_v48 = vsub.f32 %v3152_v27, %v690_v44 }
 0x2da   : > { %v3167_v47 = vsub.f32 %v3154_v28, %v688_v45  ;;  %699 = vadd.xlane.f32.xlu0 %v695_v46 }
 0x2db   : > { %v698_v51 = vmul.f32 %v3170_v48, %v3170_v48 }
 0x2dc   : > { %v696_v50 = vmul.f32 %v3167_v47, %v3167_v47 }
 0x2de   : > { %703 = vadd.xlane.f32.xlu0 %v697_v49  ;;  %701 = vadd.xlane.f32.xlu1 %v696_v50 }
 0x2e2   : > { %705 = vadd.xlane.f32.xlu1 %v698_v51 }
 0x367   : > { %v700_v14 = vpop.xlane.xlu0 %699 }
 0x368   : > { %v707_v15 = vmul.f32 0.0078125, %v700_v14  ;;  %v2258_v14 = vld [vmem:[#allocation16 + $0x78] sm:$0xff]  }
 0x36a   : > { %v711_v16 = vadd.f32 1e-05, %v707_v15  ;;  %v2259_v15 = vld [vmem:[#allocation16 + $0x38] sm:$0xff]  }
 0x36b   : > { %v702_v17 = vpop.xlane.xlu1 %701  ;;  %v704_v18 = vpop.xlane.xlu0 %703 }
 0x36c   : > { %2262 = vrsqrt.f32 %v711_v16  ;;  %v708_v19 = vmul.f32 0.0078125, %v702_v17  ;;  %v709_v21 = vmul.f32 0.0078125, %v704_v18  ;;  %v3221_v16 = vld [vmem:[#allocation16 + $0xf8] sm:$0xff]   ;;  %v779_v18 = vlaneseq }
 0x36d   : > { %v3223_v17 = vld [vmem:[#allocation16 + $0xb8] sm:$0xff]  }
 0x36e   : > { %v712_v22 = vadd.f32 1e-05, %v708_v19  ;;  %v713_v23 = vadd.f32 1e-05, %v709_v21  ;;  %v780_v19 = vshrl.u32 %v779_v18, 7 }
 0x36f   : > { %v706_v25 = vpop.xlane.xlu1 %705 }
 0x370   : > { %2264 = vrsqrt.f32 %v712_v22  ;;  %v710_v26 = vmul.f32 0.0078125, %v706_v25  ;;  %v781_v21 = vsub.s32 0, %v780_v19  ;;  %v789_v22 = vsub.s32 2, %v780_v19 }
 0x371   : > { %2266 = vrsqrt.f32 %v713_v23  ;;  %v777_v23 = vld [vmem:[#allocation14] sm:$0xf]  ;;  %v785_v25 = vsub.s32 1, %v780_v19 }
 0x372   : > { %v714_v29 = vadd.f32 1e-05, %v710_v26  ;;  %v793_v26 = vsub.s32 3, %v780_v19 }
 0x374   : > { %2268 = vrsqrt.f32 %v714_v29  ;;  %v3227_v29 = vrot.slane %v777_v23, %v781_v21 }
 0x376   : > { %v2263_v30 = vpop.eup %2262 }
 0x377   : > { %v719_v31 = vmul.f32 %v2263_v30, %v3159_v40  ;;  %v3229_v30 = vrot.slane %v777_v23, %v789_v22 }
 0x379   : > { %v729_v35 = vmul.f32 %v1828_v32, %v719_v31  ;;  %v3231_v31 = vrot.slane %v777_v23, %v785_v25 }
 0x37a   : > { %v2265_v33 = vpop.eup %2264 }
 0x37b   : > { %v720_v34 = vmul.f32 %v2265_v33, %v3167_v47  ;;  %v2267_v36 = vpop.eup %2266  ;;  %v739_v41 = vadd.f32 %v1829_v37, %v729_v35 }
 0x37c   : > { %v721_v44 = vmul.f32 %v2267_v36, %v3162_v43  ;;  %v2234_v43 = vld [vmem:[#allocation16 + $0x48] sm:$0xff]  }
 0x37d   : > { %v730_v38 = vmul.f32 %v1828_v32, %v720_v34 }
 0x37e   : > { %v2269_v39 = vpop.eup %2268  ;;  %v731_v40 = vmul.f32 %v1828_v32, %v721_v44 }
 0x37f   : > { %v740_v42 = vadd.f32 %v1829_v37, %v730_v38  ;;  %v722_v45 = vmul.f32 %v2269_v39, %v3170_v48  ;;  %v2235_v48 = vld [vmem:[#allocation16 + $0x8] sm:$0xff]  }
 0x380   : > { %v741_v47 = vadd.f32 %v1829_v37, %v731_v40 }
 0x381   : > { %v743_v46 = vpack.c.bf16 %v740_v42, %v739_v41  ;;  %v732_v49 = vmul.f32 %v1828_v32, %v722_v45  ;;  %v3233_v32 = vrot.slane %v777_v23, %v793_v26 }
 0x383   : > { %992 = vmatmul.mubr.bf16.vlgmr.msra.gmra.mrb[0].mxu1 %v743_v46  ;;  %1045 = vmatmul.mubr.bf16.vlgmr.msra.gmra.mrb[4].mxu0 %v743_v46  ;;  %v742_v50 = vadd.f32 %v1829_v37, %v732_v49 }
 0x384   : > { %1001 = vmatprep.mubr.bf16.mxu1 %v2692_v11  ;;  %1054 = vmatprep.mubr.bf16.mxu0 %v2692_v11  ;;  %v2255_v11 = vld [vmem:[#allocation16 + $0x30] sm:$0xff]  }
 0x385   : > { %v744_v51 = vpack.c.bf16 %v742_v50, %v741_v47  ;;  %1942 = vmatpush3.bf16.msra.mxu1 %v2231_v53  ;;  %1970 = vmatpush3.bf16.msra.mxu0 %v3182_v55 }
 0x386   : > { %1943 = vmatprep.subr.bf16.mxu1 %v2234_v43  ;;  %1971 = vmatprep.subr.bf16.mxu0 %v3185_v56 }
 0x389   : > { %1944 = vmatpush3.bf16.msra.mxu1 %v2235_v48  ;;  %1972 = vmatpush3.bf16.msra.mxu0 %v3188_v57 }
 0x38a   : > { %1945 = vmatprep.subr.bf16.mxu1 %v2238_v58  ;;  %1973 = vmatprep.subr.bf16.mxu0 %v3191_v60 }
 0x38b   : > { %1002 = vmatmul.mubr.bf16.gmra.mrb[4].mxu1 %v744_v51  ;;  %1055 = vmatmul.mubr.bf16.gmra.mrb[8].mxu0 %v744_v51 }
 0x38d   : > { %1946 = vmatpush3.bf16.msra.mxu1 %v2239_v59  ;;  %1974 = vmatpush3.bf16.msra.mxu0 %v3193_v61 }
 0x38e   : > { %1947 = vmatprep.subr.bf16.mxu1 %v2242_v62  ;;  %1975 = vmatprep.subr.bf16.mxu0 %v3197_v0 }
 0x391   : > { %1948 = vmatpush3.bf16.msra.mxu1 %v2243_v63  ;;  %1976 = vmatpush3.bf16.msra.mxu0 %v3199_v1 }
 0x392   : > { %1949 = vmatprep.subr.bf16.mxu1 %v2246_v2  ;;  %1977 = vmatprep.subr.bf16.mxu0 %v3203_v4 }
 0x395   : > { %1950 = vmatpush3.bf16.msra.mxu1 %v2247_v3  ;;  %1978 = vmatpush3.bf16.msra.mxu0 %v3205_v5 }
 0x396   : > { %1951 = vmatprep.subr.bf16.mxu1 %v2250_v6  ;;  %1979 = vmatprep.subr.bf16.mxu0 %v3209_v8 }
 0x399   : > { %1952 = vmatpush3.bf16.msra.mxu1 %v2251_v7  ;;  %1980 = vmatpush3.bf16.msra.mxu0 %v3211_v9 }
 0x39a   : > { %1953 = vmatprep.subr.bf16.mxu1 %v2254_v10  ;;  %1981 = vmatprep.subr.bf16.mxu0 %v3215_v12 }
 0x39d   : > { %1954 = vmatpush3.bf16.msra.mxu1 %v2255_v11  ;;  %1982 = vmatpush3.bf16.msra.mxu0 %v3217_v13 }
 0x39e   : > { %1955 = vmatprep.subr.bf16.mxu1 %v2258_v14  ;;  %1983 = vmatprep.subr.bf16.mxu0 %v3221_v16 }
 0x3a1   : > { %1956 = vmatpush3.bf16.msra.mxu1 %v2259_v15  ;;  %1984 = vmatpush3.bf16.msra.mxu0 %v3223_v17 }
 0x3a2   : > { %2017 = vmatprep.subr.bf16.mxu1 %v2232_v54 }
 0x456   : > { %v993_v33 = vpop.f32.mrb[0].mxu1  ;;  %v1046_v34 = vpop.f32.mrb[4].mxu0 }
 0x457   : > { %v3236_v35 = vadd.f32 %v993_v33, %v3227_v29  ;;  %v3239_v36 = vadd.f32 %v1046_v34, %v3229_v30  ;;  %v995_v37 = vpop.f32.mrb[1].mxu1  ;;  %v1048_v38 = vpop.f32.mrb[5].mxu0 }
 0x458   : > { %v3242_v39 = vadd.f32 %v995_v37, %v3231_v31  ;;  %v3245_v41 = vadd.f32 %v1048_v38, %v3233_v32  ;;  %v997_v42 = vpop.f32.mrb[2].mxu1  ;;  %v1050_v44 = vpop.f32.mrb[6].mxu0 }
 0x459   : > { %v1065_v45 = vmul.f32 %v3236_v35, %v3236_v35  ;;  %v1067_v46 = vmul.f32 %v3239_v36, %v3239_v36  ;;  %v3252_v49 = vadd.f32 %v997_v42, %v3227_v29  ;;  %v3255_v40 = vadd.f32 %v1050_v44, %v3229_v30  ;;  %v999_v50 = vpop.f32.mrb[3].mxu1  ;;  %v1052_v47 = vpop.f32.mrb[7].mxu0 }
 0x45a   : > { %v1066_v51 = vmul.f32 %v3242_v39, %v3242_v39  ;;  %v1068_v52 = vmul.f32 %v3245_v41, %v3245_v41  ;;  %v3262_v53 = vadd.f32 %v999_v50, %v3231_v31  ;;  %v3265_v54 = vadd.f32 %v1052_v47, %v3233_v32 }
 0x45b   : > { %v1081_v43 = vmul.f32 %v1065_v45, %v3236_v35  ;;  %v1083_v48 = vmul.f32 %v1067_v46, %v3239_v36  ;;  %v1069_v58 = vmul.f32 %v3252_v49, %v3252_v49  ;;  %v1071_v59 = vmul.f32 %v3255_v40, %v3255_v40 }
 0x45c   : > { %v1082_v62 = vmul.f32 %v1066_v51, %v3242_v39  ;;  %v1084_v63 = vmul.f32 %v1068_v52, %v3245_v41  ;;  %v1070_v2 = vmul.f32 %v3262_v53, %v3262_v53  ;;  %v1072_v3 = vmul.f32 %v3265_v54, %v3265_v54 }
 0x45d   : > { %v1097_v6 = vmul.f32 0.044715, %v1081_v43  ;;  %v1099_v7 = vmul.f32 0.044715, %v1083_v48  ;;  %v1085_v10 = vmul.f32 %v1069_v58, %v3252_v49  ;;  %v1087_v11 = vmul.f32 %v1071_v59, %v3255_v40 }
 0x45e   : > { %v1098_v14 = vmul.f32 0.044715, %v1082_v62  ;;  %v1100_v15 = vmul.f32 0.044715, %v1084_v63  ;;  %v1086_v18 = vmul.f32 %v1070_v2, %v3262_v53  ;;  %v1088_v19 = vmul.f32 %v1072_v3, %v3265_v54  ;;  %v1003_v21 = vpop.f32.mrb[4].mxu1  ;;  %v1056_v22 = vpop.f32.mrb[8].mxu0 }
 0x45f   : > { %v1113_v23 = vadd.f32 %v1097_v6, %v3236_v35  ;;  %v1115_v25 = vadd.f32 %v1099_v7, %v3239_v36  ;;  %v1101_v26 = vmul.f32 0.044715, %v1085_v10  ;;  %v1103_v33 = vmul.f32 0.044715, %v1087_v11  ;;  %v1005_v34 = vpop.f32.mrb[5].mxu1  ;;  %v1058_v37 = vpop.f32.mrb[9].mxu0 }
 0x460   : > { %v1114_v38 = vadd.f32 %v1098_v14, %v3242_v39  ;;  %v1116_v42 = vadd.f32 %v1100_v15, %v3245_v41  ;;  %v1102_v44 = vmul.f32 0.044715, %v1086_v18  ;;  %v1104_v45 = vmul.f32 0.044715, %v1088_v19  ;;  %v1007_v46 = vpop.f32.mrb[6].mxu1  ;;  %v1060_v50 = vpop.f32.mrb[10].mxu0 }
 0x461   : > { %v1129_v47 = vmul.f32 0.7978846, %v1113_v23  ;;  %v1131_v51 = vmul.f32 0.7978846, %v1115_v25  ;;  %v1117_v52 = vadd.f32 %v1101_v26, %v3252_v49  ;;  %v1119_v43 = vadd.f32 %v1103_v33, %v3255_v40  ;;  %v1009_v48 = vpop.f32.mrb[7].mxu1  ;;  %v1062_v58 = vpop.f32.mrb[11].mxu0 }
 0x462   : > { %v1130_v59 = vmul.f32 0.7978846, %v1114_v38  ;;  %v1132_v62 = vmul.f32 0.7978846, %v1116_v42  ;;  %v1118_v63 = vadd.f32 %v1102_v44, %v3262_v53  ;;  %v1120_v2 = vadd.f32 %v1104_v45, %v3265_v54 }
 0x463   : > { %2270 = vtanh.f32 %v1129_v47  ;;  %v1133_v3 = vmul.f32 0.7978846, %v1117_v52  ;;  %v1135_v6 = vmul.f32 0.7978846, %v1119_v43  ;;  %v3292_v7 = vadd.f32 %v1003_v21, %v3227_v29 }
 0x464   : > { %2272 = vtanh.f32 %v1131_v51  ;;  %v1134_v10 = vmul.f32 0.7978846, %v1118_v63  ;;  %v1136_v11 = vmul.f32 0.7978846, %v1120_v2  ;;  %v3295_v14 = vadd.f32 %v1056_v22, %v3229_v30 }
 0x465   : > { %2274 = vtanh.f32 %v1130_v59  ;;  %v1073_v15 = vmul.f32 %v3292_v7, %v3292_v7  ;;  %v3300_v18 = vadd.f32 %v1005_v34, %v3231_v31  ;;  %v3303_v19 = vadd.f32 %v1058_v37, %v3233_v32 }
 0x466   : > { %2276 = vtanh.f32 %v1132_v62  ;;  %v1075_v21 = vmul.f32 %v3295_v14, %v3295_v14  ;;  %v3308_v23 = vadd.f32 %v1007_v46, %v3227_v29  ;;  %v3311_v22 = vadd.f32 %v1060_v50, %v3229_v30 }
 0x467   : > { %2278 = vtanh.f32 %v1133_v3  ;;  %v1089_v25 = vmul.f32 %v1073_v15, %v3292_v7  ;;  %v1074_v26 = vmul.f32 %v3300_v18, %v3300_v18  ;;  %v1076_v33 = vmul.f32 %v3303_v19, %v3303_v19 }
 0x468   : > { %2280 = vtanh.f32 %v1135_v6  ;;  %v1091_v34 = vmul.f32 %v1075_v21, %v3295_v14  ;;  %v1077_v37 = vmul.f32 %v3308_v23, %v3308_v23  ;;  %v1079_v29 = vmul.f32 %v3311_v22, %v3311_v22 }
 0x469   : > { %2282 = vtanh.f32 %v1134_v10  ;;  %v1105_v30 = vmul.f32 0.044715, %v1089_v25  ;;  %v1090_v38 = vmul.f32 %v1074_v26, %v3300_v18  ;;  %v1092_v42 = vmul.f32 %v1076_v33, %v3303_v19 }
 0x46a   : > { %2284 = vtanh.f32 %v1136_v11  ;;  %v1107_v44 = vmul.f32 0.044715, %v1091_v34  ;;  %v1093_v45 = vmul.f32 %v1077_v37, %v3308_v23  ;;  %v1095_v46 = vmul.f32 %v1079_v29, %v3311_v22 }
 0x46b   : > { %v1121_v50 = vadd.f32 %v1105_v30, %v3292_v7  ;;  %v1106_v47 = vmul.f32 0.044715, %v1090_v38  ;;  %v1108_v51 = vmul.f32 0.044715, %v1092_v42  ;;  %v3329_v52 = vadd.f32 %v1009_v48, %v3231_v31 }
 0x46c   : > { %v1123_v43 = vadd.f32 %v1107_v44, %v3295_v14  ;;  %v1109_v59 = vmul.f32 0.044715, %v1093_v45  ;;  %v1111_v62 = vmul.f32 0.044715, %v1095_v46  ;;  %v3333_v63 = vadd.f32 %v1062_v58, %v3233_v32 }
 0x46d   : > { %v2271_v2 = vpop.eup %2270  ;;  %v1137_v3 = vmul.f32 0.7978846, %v1121_v50  ;;  %v1122_v6 = vadd.f32 %v1106_v47, %v3300_v18  ;;  %v1124_v10 = vadd.f32 %v1108_v51, %v3303_v19  ;;  %v1078_v11 = vmul.f32 %v3329_v52, %v3329_v52 }
 0x46e   : > { %v2273_v15 = vpop.eup %2272  ;;  %v1161_v21 = vadd.f32 1.0, %v2271_v2  ;;  %v1139_v31 = vmul.f32 0.7978846, %v1123_v43  ;;  %v1125_v48 = vadd.f32 %v1109_v59, %v3308_v23  ;;  %v1127_v25 = vadd.f32 %v1111_v62, %v3311_v22 }
 0x46f   : > { %v2275_v26 = vpop.eup %2274  ;;  %v1163_v33 = vadd.f32 1.0, %v2273_v15  ;;  %2286 = vtanh.f32 %v1137_v3  ;;  %v1138_v32 = vmul.f32 0.7978846, %v1122_v6  ;;  %v1140_v58 = vmul.f32 0.7978846, %v1124_v10 }
 0x470   : > { %v2277_v34 = vpop.eup %2276  ;;  %v1177_v37 = vmul.f32 0.5, %v1161_v21  ;;  %2288 = vtanh.f32 %v1139_v31  ;;  %v1141_v29 = vmul.f32 0.7978846, %v1125_v48  ;;  %v1143_v30 = vmul.f32 0.7978846, %v1127_v25 }
 0x471   : > { %v2279_v38 = vpop.eup %2278  ;;  %v1179_v42 = vmul.f32 0.5, %v1163_v33  ;;  %2290 = vtanh.f32 %v1138_v32  ;;  %v1094_v44 = vmul.f32 %v1078_v11, %v3329_v52  ;;  %v1080_v45 = vmul.f32 %v3333_v63, %v3333_v63 }
 0x472   : > { %v2281_v46 = vpop.eup %2280  ;;  %v1193_v50 = vmul.f32 %v1177_v37, %v3236_v35  ;;  %v1165_v47 = vadd.f32 1.0, %v2279_v38  ;;  %2292 = vtanh.f32 %v1140_v58  ;;  %v1162_v51 = vadd.f32 1.0, %v2275_v26 }
 0x473   : > { %v2283_v43 = vpop.eup %2282  ;;  %v1195_v59 = vmul.f32 %v1179_v42, %v3239_v36  ;;  %v1167_v62 = vadd.f32 1.0, %v2281_v46  ;;  %2294 = vtanh.f32 %v1141_v29  ;;  %v1110_v2 = vmul.f32 0.044715, %v1094_v44 }
 0x474   : > { %v2285_v3 = vpop.eup %2284  ;;  %v1181_v6 = vmul.f32 0.5, %v1165_v47  ;;  %2296 = vtanh.f32 %v1143_v30  ;;  %v1096_v10 = vmul.f32 %v1080_v45, %v3333_v63  ;;  %v1166_v11 = vadd.f32 1.0, %v2283_v43 }
 0x475   : > { %v1183_v15 = vmul.f32 0.5, %v1167_v62  ;;  %v1126_v21 = vadd.f32 %v1110_v2, %v3329_v52  ;;  %v1178_v31 = vmul.f32 0.5, %v1162_v51  ;;  %v1164_v35 = vadd.f32 1.0, %v2277_v34 }
 0x476   : > { %v1197_v48 = vmul.f32 %v1181_v6, %v3252_v49  ;;  %v1112_v25 = vmul.f32 0.044715, %v1096_v10  ;;  %v1182_v26 = vmul.f32 0.5, %v1166_v11  ;;  %v1168_v33 = vadd.f32 1.0, %v2285_v3 }
 0x477   : > { %v1199_v36 = vmul.f32 %v1183_v15, %v3255_v40  ;;  %v1142_v32 = vmul.f32 0.7978846, %v1126_v21  ;;  %v1194_v58 = vmul.f32 %v1178_v31, %v3242_v39  ;;  %v1180_v37 = vmul.f32 0.5, %v1164_v35 }
 0x478   : > { %v1209_v29 = vpack.c.bf16 %v1197_v48, %v1193_v50  ;;  %v1128_v30 = vadd.f32 %v1112_v25, %v3333_v63  ;;  %v1198_v38 = vmul.f32 %v1182_v26, %v3262_v53  ;;  %v1184_v42 = vmul.f32 0.5, %v1168_v33 }
 0x479   : > { %v2287_v44 = vpop.eup %2286  ;;  %v1211_v45 = vpack.c.bf16 %v1199_v36, %v1195_v59  ;;  %2298 = vtanh.f32 %v1142_v32  ;;  %v1196_v49 = vmul.f32 %v1180_v37, %v3245_v41 }
 0x47a   : > { %v2289_v34 = vpop.eup %2288  ;;  %v1144_v46 = vmul.f32 0.7978846, %v1128_v30  ;;  %v1210_v47 = vpack.c.bf16 %v1198_v38, %v1194_v58  ;;  %v1200_v40 = vmul.f32 %v1184_v42, %v3265_v54  ;;  %v1169_v51 = vadd.f32 1.0, %v2287_v44 }
 0x47b   : > { %v2291_v43 = vpop.eup %2290  ;;  %v1171_v39 = vadd.f32 1.0, %v2289_v34 }
 0x47c   : > { %v2293_v62 = vpop.eup %2292  ;;  %2300 = vtanh.f32 %v1144_v46  ;;  %1512 = vmatprep.mubr.bf16.mxu1 %v1210_v47  ;;  %v1212_v50 = vpack.c.bf16 %v1200_v40, %v1196_v49  ;;  %v1185_v41 = vmul.f32 0.5, %v1169_v51  ;;  %v1170_v54 = vadd.f32 1.0, %v2291_v43 }
 0x47d   : > { %v2295_v2 = vpop.eup %2294  ;;  %1513 = vmatmul.mubr.bf16.vlgmr.msra.gmra.mrb[8].mxu1 %v1209_v29  ;;  %v1187_v3 = vmul.f32 0.5, %v1171_v39  ;;  %v1172_v48 = vadd.f32 1.0, %v2293_v62 }
 0x47e   : > { %v2297_v53 = vpop.eup %2296  ;;  %1561 = vmatprep.mubr.bf16.mxu0 %v1212_v50  ;;  %2025 = vmatpush3.bf16.msra.mxu1 %v3182_v55  ;;  %v1173_v59 = vadd.f32 1.0, %v2295_v2  ;;  %v1201_v15 = vmul.f32 %v1185_v41, %v3292_v7  ;;  %v1186_v26 = vmul.f32 0.5, %v1170_v54 }
 0x47f   : > { %v1175_v6 = vadd.f32 1.0, %v2297_v53  ;;  %1562 = vmatmul.mubr.bf16.vlgmr.msra.gmra.mrb[12].mxu0 %v1211_v45  ;;  %2018 = vmatprep.subr.bf16.mxu1 %v3185_v56  ;;  %v1203_v35 = vmul.f32 %v1187_v3, %v3295_v14  ;;  %v1188_v7 = vmul.f32 0.5, %v1172_v48 }
 0x480   : > { %v1189_v10 = vmul.f32 0.5, %v1173_v59 }
 0x481   : > { %v1191_v11 = vmul.f32 0.5, %v1175_v6 }
 0x482   : > { %2026 = vmatpush3.bf16.msra.mxu1 %v3188_v57  ;;  %v1205_v21 = vmul.f32 %v1189_v10, %v3308_v23  ;;  %v1202_v23 = vmul.f32 %v1186_v26, %v3300_v18 }
 0x483   : > { %v2299_v31 = vpop.eup %2298  ;;  %v1207_v55 = vmul.f32 %v1191_v11, %v3311_v22  ;;  %2019 = vmatprep.subr.bf16.mxu1 %v3191_v60  ;;  %v1204_v60 = vmul.f32 %v1188_v7, %v3303_v19 }
 0x484   : > { %v1174_v25 = vadd.f32 1.0, %v2299_v31  ;;  %v1213_v56 = vpack.c.bf16 %v1205_v21, %v1201_v15 }
 0x485   : > { %v1215_v33 = vpack.c.bf16 %v1207_v55, %v1203_v35 }
 0x486   : > { %v2301_v36 = vpop.eup %2300  ;;  %v1190_v32 = vmul.f32 0.5, %v1174_v25  ;;  %2027 = vmatpush3.bf16.msra.mxu1 %v3193_v61 }
 0x487   : > { %v1176_v57 = vadd.f32 1.0, %v2301_v36  ;;  %2020 = vmatprep.subr.bf16.mxu1 %v3197_v0 }
 0x488   : > { %v1206_v14 = vmul.f32 %v1190_v32, %v3329_v52 }
 0x489   : > { %v1192_v22 = vmul.f32 0.5, %v1176_v57 }
 0x48a   : > { %v1214_v58 = vpack.c.bf16 %v1206_v14, %v1202_v23  ;;  %2028 = vmatpush3.bf16.msra.mxu1 %v3199_v1  ;;  %v1862_v1 = vld [vmem:[#allocation17] ss:$0 sm:$0xff] }
 0x48b   : > { %v1208_v37 = vmul.f32 %v1192_v22, %v3333_v63  ;;  %2021 = vmatprep.subr.bf16.mxu1 %v3203_v4 }
 0x48c   : > { %1520 = vmatprep.mubr.bf16.mxu1 %v1214_v58 }
 0x48d   : > { %1521 = vmatmul.mubr.bf16.gmra.mrb[12].mxu1 %v1213_v56  ;;  %v1216_v61 = vpack.c.bf16 %v1208_v37, %v1204_v60 }
 0x48e   : > { %2029 = vmatpush3.bf16.msra.mxu1 %v3205_v5 }
 0x48f   : > { %1569 = vmatprep.mubr.bf16.mxu1 %v1216_v61  ;;  %2022 = vmatprep.subr.bf16.mxu1 %v3209_v8 }
 0x492   : > { %2030 = vmatpush3.bf16.msra.mxu1 %v3211_v9 }
 0x493   : > { %2023 = vmatprep.subr.bf16.mxu1 %v3215_v12 }
 0x496   : > { %2031 = vmatpush3.bf16.msra.mxu1 %v3217_v13 }
 0x497   : > { %2024 = vmatprep.subr.bf16.mxu1 %v3221_v16 }
 0x49a   : > { %2032 = vmatpush3.bf16.msra.mxu1 %v3223_v17 }
 0x49d   : > { %1570 = vmatmul.mubr.bf16.vlgmr.msra.gmra.mrb[16].mxu1 %v1215_v33 }
 0x550   : > { %v1957_v0 = vpop.f32.mrb[8].mxu1 }
 0x551   : > { %v1958_v4 = vpop.f32.mrb[9].mxu1 }
 0x552   : > { %v1985_v18 = vpop.f32.mrb[12].mxu0  ;;  %v1959_v19 = vadd.f32 %v1958_v4, %v1957_v0  ;;  %v1960_v5 = vpop.f32.mrb[10].mxu1 }
 0x553   : > { %v1986_v52 = vpop.f32.mrb[13].mxu0  ;;  %v1961_v8 = vpop.f32.mrb[11].mxu1 }
 0x554   : > { %v1515_v63 = vadd.f32 %v1959_v19, %v1862_v1  ;;  %v1987_v9 = vadd.f32 %v1986_v52, %v1985_v18  ;;  %v1988_v29 = vpop.f32.mrb[14].mxu0  ;;  %v1962_v12 = vadd.f32 %v1961_v8, %v1960_v5 }
 0x555   : > { %v1989_v30 = vpop.f32.mrb[15].mxu0 }
 0x556   : > { %v1564_v13 = vadd.f32 %v1987_v9, %v1515_v63  ;;  %v1518_v38 = vadd.f32 %v1962_v12, %v1862_v1  ;;  %v1990_v16 = vadd.f32 %v1989_v30, %v1988_v29 }
 0x558   : > { %v1567_v42 = vadd.f32 %v1990_v16, %v1518_v38  ;;  %v1578_v17 = vadd.f32 %v1564_v13, %v3148_v24 }
 0x55a   : > { %v1579_v44 = vadd.f32 %v1567_v42, %v3154_v28 }
 0x55c   : > { %v1922_v45 = vpack.c.bf16 %v1579_v44, %v1578_v17 }
 0x55e   : > { %1923 = vst [vmem:[%s523_s18] sm:$0xff] %v1922_v45  }
 0x560   : > { %v1963_v49 = vpop.f32.mrb[12].mxu1 }
 0x561   : > { %v1964_v34 = vpop.f32.mrb[13].mxu1 }
 0x562   : > { %v1965_v46 = vadd.f32 %v1964_v34, %v1963_v49  ;;  %v1966_v47 = vpop.f32.mrb[14].mxu1 }
 0x563   : > { %v1967_v40 = vpop.f32.mrb[15].mxu1 }
 0x564   : > { %v1968_v51 = vadd.f32 %v1967_v40, %v1966_v47  ;;  %v1523_v62 = vadd.f32 %v1965_v46, %v1862_v1 }
 0x566   : > { %v1526_v24 = vadd.f32 %v1968_v51, %v1862_v1 }
 0x570   : > { %v1991_v43 = vpop.f32.mrb[16].mxu1 }
 0x571   : > { %v1992_v39 = vpop.f32.mrb[17].mxu1 }
 0x572   : > { %v1993_v50 = vadd.f32 %v1992_v39, %v1991_v43  ;;  %v1994_v2 = vpop.f32.mrb[18].mxu1 }
 0x573   : > { %v1995_v53 = vpop.f32.mrb[19].mxu1 }
 0x574   : > { %v1572_v28 = vadd.f32 %v1993_v50, %v1523_v62  ;;  %v1996_v59 = vadd.f32 %v1995_v53, %v1994_v2 }
 0x576   : > { %v1575_v41 = vadd.f32 %v1996_v59, %v1526_v24  ;;  %v1580_v3 = vadd.f32 %v1572_v28, %v3146_v20 }
 0x578   : > { %v1581_v6 = vadd.f32 %v1575_v41, %v3152_v27 }
 0x57a   : > { %v1927_v54 = vpack.c.bf16 %v1581_v6, %v1580_v3 }
 0x57c   : > { %1930 = vst [vmem:[%s523_s18 + $0x8] sm:$0xff] %v1927_v54  }
 0x57d   : > { %2599 = shalt.err (!%p2596_p13)
}
 0x57e   : > { %s2600_s4 = scalar_lea.hbm %s3387_s6, 256  ;;  %s2604_s5 = scalar_lea.hbm %s3490_s17, 512 }
 0x57f   : > { %p2601_p1 = scmp.ne.s32.totalorder %s3387_s6, %s2600_s4  ;;  %p2605_p2 = scmp.lt.u32.totalorder %s3387_s6, %s3490_s17 }
 0x580   : > { %p2606_p4 = scmp.lt.u32.totalorder %s2604_s5, %s2600_s4  ;;  %p2608_p5 = scmp.lt.u32.totalorder %s2600_s4, %s3387_s6 }
 0x581   : > { %p2602_p3 = pnand %p2601_p1, %p3491_p7 }
 0x582   : > { %p2607_p10 = por %p2606_p4, %p2605_p2 }
 0x583   : > { %p2603_p6 = pneg %p2602_p3 }
 0x584   : > { %p2609_p9 = por %p2608_p5, %p2607_p10 }
 0x586   : > { %p2610_p8 = pnand %p2609_p9, %p2603_p6 }
 0x588   : > { %2613 = shalt.err (!%p2610_p8)
}
 0x589   : > { %s2694_s18 = smov 64   ;;  %s2695_s10 = smov 4  }
 0x58a   : > { %2069 = dma.vmem_to_hbm [thread:$0]  (%p3491_p7), %s3389_s28, 256, %s3387_s6, %s1603_s21, %s2694_s18, %s2694_s18, %s2695_s10  }
 0x58b PF: > { %s1631_s12 = sand.u32 1, %s2664_s13   ;;  %p3492_p11 = scmp.ne.s32.totalorder %s3476_s24, 0 }
 0x58c   : > { %p3493_p0 = scmp.ge.s32.totalorder %s2676_s16, 2  ;;  %s1632_s7 = scalar_lea.sflag [#allocation4], %s1631_s12 }
 0x58e   : > { %p2104_p12 = pnand %p3493_p0, %p3492_p11 }
 0x590   : > { %2659 = dma.done.wait (!%p2104_p12), %s1632_s7, 256  }
 0x591   : > { %2661 = vsyncadd (!%p2104_p12), %s1632_s7, 4294967040  ;;  %p30_p13 = scmp.ge.s32.totalorder %s2979_s11, 4   ;;  %s3494_s13 = smov %s2668_s14 }
 0x592   : > { %s3495_s14 = smov %s2672_s15  ;;  %s3496_s15 = smov %s2990_s27 }
 0x593   : > { %s3497_s16 = smov %s2979_s11  ;;  %32 = sbr.rel (!%p30_p13) target bundleno = 19 (0x13), region = 150 }
 0x59a   :  { %1637 = vsyncpa [#allocation3], 1 }
 0x59b   :  { %1639 = vsyncpa [#allocation3 + $0x1], 1 }
 0x59c   :  { %1640 = vsyncpa [#allocation6], 1 }
 0x59d   :  { %1642 = vsyncpa [#allocation6 + $0x1], 1 }
 0x59e   :  { %1643 = vsyncpa [#allocation9], 1 }
 0x59f   :  { %1644 = vsyncpa [#allocation12], 1 }
 0x5a0   :  { %1645 = vsyncpa [#allocation15], 1 }
 0x5a1   :  { %1646 = vsyncpa [#allocation18], 1 }
 0x5a2   :  { %1647 = vsyncpa [#allocation4], 1 }
 0x5a3   :  { %1649 = vsyncpa [#allocation4 + $0x1], 1 }

// kernel: vision_transformer_forward.9
= control target key start
LH: loop header
LB: loop body
LE: loop exit
PB: predicated region body
PF: predicated region fallthrough
CT: control target
= control target key end

     0   :  { %s3441_s0 = inlined_call_operand.hbm [shape: bf16[2,32,128], index: 0, kind: input, shape index: {}]   ;;  %s3442_s1 = inlined_call_operand.hbm [shape: bf16[2,32,128], index: 1, kind: input, shape index: {}]   ;;  %s3443_s2 = inlined_call_operand.hbm [shape: bf16[2,32,128], index: 2, kind: input, shape index: {}]   ;;  %s3444_s3 = inlined_call_operand.hbm [shape: f32[1,32], index: 3, kind: input, shape index: {}]   ;;  %s3445_s4 = inlined_call_operand.hbm [shape: bf16[2,32,128], index: 4, kind: output, shape index: {}]  }
   0x1   :  { %3460 = sst [smem:[#allocation24_spill]] %s3441_s0 }
   0x2   :  { %3461 = sst [smem:[#allocation25_spill]] %s3442_s1 }
   0x3   :  { %9 = vsyncpa [#allocation6], 0 }
   0x4   :  { %11 = vsyncpa [#allocation6 + $0x1], 0 }
   0x5   :  { %12 = vsyncpa [#allocation9], 0 }
   0x6   :  { %14 = vsyncpa [#allocation9 + $0x1], 0 }
   0x7   :  { %15 = vsyncpa [#allocation12], 0 }
   0x8   :  { %16 = vsyncpa [#allocation7], 0 }
   0x9   :  { %18 = vsyncpa [#allocation7 + $0x1], 0  ;;  %s2501_s15 = smov 0   ;;  %s2503_s16 = smov 0  }
   0xa   :  { %s2505_s17 = smov 0   ;;  %s2507_s18 = smov 0  }
   0xb   :  { %s2509_s19 = smov 0   ;;  %s2511_s20 = smov 0  }
   0xc LB: > { %3462 = sst [smem:[#allocation18_spill]] %s2448_s17  ;;  %s43_s21 = sadd.s32 1, %s2456_s19  ;;  %s2460_s20 = sphi %s2511_s20, %s24_s20   ;;  %s2456_s19 = sphi %s2509_s19, %s3510_s19   ;;  %s2452_s18 = sphi %s2507_s18, %s3509_s18   ;;  %s2448_s17 = sphi %s2505_s17, %s3508_s17   ;;  %s2444_s16 = sphi %s2503_s16, %s3512_s16   ;;  %s2440_s15 = sphi %s2501_s15, %s3511_s15  }
   0xd   : > { %3463 = sst [smem:[#allocation19_spill]] %s2456_s19  ;;  %s52_s22 = sadd.s32 1, %s2448_s17 }
   0xe   : > { %p45_p0 = scmp.ge.s32.totalorder %s43_s21, 2  ;;  %p3446_p1 = scmp.ne.s32.totalorder %s2448_s17, %s2444_s16 }
   0xf   : > { %p60_p2 = scmp.eq.s32.totalorder %s2460_s20, 0  ;;  %p2086_p5 = scmp.lt.s32.totalorder %s2460_s20, 2 }
  0x10   : > { %s3514_s21 = smov (%p45_p0, %s43_s21), 0  ;;  %s3451_s24 = sand.u32 1, %s2448_s17  }
  0x11   : > { %3464 = sst [smem:[#allocation20_spill]] %s3514_s21  ;;  %p61_p4 = por %p60_p2, %p3446_p1 }
  0x12   : > { %s47_s23 = ssub.s32 %s2456_s19, %s3514_s21  ;;  %s2548_s25 = sshll.u32 %s3451_s24, 4 }
  0x13   : > { %p50_p6 = scmp.eq.s32.totalorder %s47_s23, 0  ;;  %s2551_s26 = sshll.u32 %s2456_s19, 8 }
  0x14   : > { %p2553_p7 = pnand %p2086_p5, %p61_p4  ;;  %s235_s29 = sand.u32 1, %s2460_s20  }
  0x15   : > { %s2558_s28 = scalar_select %p50_p6, %s2448_s17, %s52_s22  }
  0x16   : > { %s3467_s1 = sld [smem:[#allocation25_spill]]  ;;  %s239_s7 = scalar_lea.vmem [#allocation8], %s2548_s25 }
  0x17   : > { %3466 = sst [smem:[#allocation21_spill]] %s2558_s28  ;;  %s248_s8 = sshll.u32 %s239_s7, 4  ;;  %s2568_s8 = int_to_ptr.vmem [resolvable:$true] %s248_s8 }
  0x18   : > { %s2570_s9 = scalar_lea.sflag [#allocation9], %s235_s29  ;;  %p2576_p9 = pneg %p2553_p7 }
  0x1c   : > { %s2565_s6 = scalar_lea.hbm %s3467_s1, %s2551_s26  ;;  %s2257_s14 = scalar_lea.hbm %s3467_s1, 512 }
  0x1d   : > { %s2252_s10 = scalar_lea.hbm %s2565_s6, 256  ;;  %p2258_p12 = scmp.lt.u32.totalorder %s2565_s6, %s3467_s1 }
  0x1e   : > { %p2253_p8 = scmp.ne.s32.totalorder %s2565_s6, %s2252_s10  ;;  %p2259_p13 = scmp.lt.u32.totalorder %s2257_s14, %s2252_s10 }
  0x1f   : > { %p2261_p2 = scmp.lt.u32.totalorder %s2252_s10, %s2565_s6 }
  0x20   : > { %p2255_p10 = pnand %p2576_p9, %p2253_p8  ;;  %p2260_p0 = por %p2259_p13, %p2258_p12 }
  0x22   : > { %p2256_p11 = pneg %p2255_p10  ;;  %p2262_p4 = por %p2261_p2, %p2260_p0 }
  0x24   : > { %p2263_p5 = pnand %p2262_p4, %p2256_p11 }
  0x26   : > { %2266 = shalt.err (!%p2263_p5)
}
  0x27   : > { %s2267_s29 = scalar_lea.vmem %s2568_s8, 256  ;;  %s2462_s30 = smov [#allocation8]  }
  0x28   : > { %p2268_p6 = scmp.ne.s32.totalorder %s2568_s8, %s2267_s29  ;;  %s2272_s5 = sshll.u32 %s2462_s30, 4  ;;  %s2273_s5 = int_to_ptr.vmem [resolvable:$false] %s2272_s5 }
  0x29   : > { %s2274_s7 = scalar_lea.vmem %s2273_s5, 512  ;;  %p2275_p3 = scmp.lt.s32.totalorder %s2568_s8, %s2273_s5 }
  0x2a   : > { %p2270_p8 = pnand %p2268_p6, %p2576_p9  ;;  %p2276_p1 = scmp.lt.s32.totalorder %s2274_s7, %s2267_s29 }
  0x2c   : > { %p2271_p10 = pneg %p2270_p8  ;;  %p2277_p12 = por %p2276_p1, %p2275_p3 }
  0x2e   : > { %p2278_p13 = pnand %p2277_p12, %p2271_p10 }
  0x30   : > { %2281 = shalt.err (!%p2278_p13)
}
  0x31   : > { %s3447_s10 = smov 64   ;;  %s3449_s12 = smov 4  }
  0x32   : > { %2077 = dma.hbm_to_vmem [thread:$0]  (!%p2553_p7), %s2565_s6, 256, %s2568_s8, %s2570_s9, %s3447_s10, %s3447_s10, %s3449_s12  }
  0x33   : > { %s2604_s13 = sadd.s32 4294967295, %s2460_s20   ;;  %s1881_s14 = sadd.s32 4294967294, %s2460_s20  }
  0x34   : > { %p65_p1 = scmp.ne.s32.totalorder %s2444_s16, %s2440_s15  ;;  %p3454_p3 = scmp.eq.s32.totalorder %s2604_s13, 0 }
  0x35   : > { %p173_p11 = scmp.eq.s32.totalorder %s2604_s13, 1  ;;  %p179_p0 = scmp.eq.s32.totalorder %s1881_s14, 1 }
  0x36   : > { %p1882_p2 = scmp.ge.s32.totalorder %s2460_s20, 1  ;;  %p2614_p4 = por %p3454_p3, %p65_p1 }
  0x37   : > { %p3470_p5 = scmp.ne.s32.totalorder %s2448_s17, %s2444_s16  ;;  %p2625_p8 = por %p179_p0, %p65_p1 }
  0x38   : > { %s3469_s22 = scalar_select %p2614_p4, 1, 0 }
  0x39   : > { %p2621_p6 = por %p173_p11, %p3470_p5  ;;  %p186_p10 = scmp.lt.s32.totalorder %s2460_s20, 3 }
  0x3a   : > { %s3472_s8 = scalar_select %p2625_p8, 1, 0 }
  0x3b   : > { %s3471_s6 = scalar_select %p2621_p6, 1, 0 }
  0x3c   : > { %p2630_p12 = pnand %p1882_p2, %p186_p10  ;;  %s2465_s29 = smov [#allocation11]  }
  0x3d   : > { %s201_s30 = sshll.u32 %s2465_s29, 4  ;;  %s3474_s0 = sld [smem:[#allocation24_spill]]  ;;  %s2634_s30 = int_to_ptr.vmem [resolvable:$true] %s201_s30 }
  0x3e   : > { %s3473_s23 = scalar_select %p2630_p12, 1, 0 }
  0x3f   : > { %p2067_p13 = pneg %p2630_p12  ;;  %s216_s10 = scalar_lea.vmem [#allocation5], %s2548_s25 }
  0x40   : > { %s225_s12 = sshll.u32 %s216_s10, 4  ;;  %s3476_s29 = sand.u32 1, %s2448_s17   ;;  %s2651_s12 = int_to_ptr.vmem [resolvable:$true] %s225_s12 }
  0x41   : > { %p2647_p1 = pnand %p2067_p13, %p3454_p3  ;;  %s2655_s1 = scalar_lea.sflag [#allocation6], %s3476_s29 }
  0x43   : > { %s2642_s14 = scalar_lea.hbm %s3474_s0, %s2551_s26  ;;  %s2287_s19 = scalar_lea.hbm %s3474_s0, 512 }
  0x44   : > { %s3475_s24 = scalar_select %p2647_p1, 1, 0 }
  0x45   : > { %s2282_s21 = scalar_lea.hbm %s2642_s14, 256  ;;  %p2288_p5 = scmp.lt.u32.totalorder %s2642_s14, %s3474_s0 }
  0x46   : > { %p2283_p11 = scmp.ne.s32.totalorder %s2642_s14, %s2282_s21  ;;  %p2289_p10 = scmp.lt.u32.totalorder %s2287_s19, %s2282_s21 }
  0x47   : > { %p2291_p3 = scmp.lt.u32.totalorder %s2282_s21, %s2642_s14 }
  0x48   : > { %p2285_p0 = pnand %p2283_p11, %p2576_p9  ;;  %p2290_p13 = por %p2289_p10, %p2288_p5 }
  0x4a   : > { %p2286_p2 = pneg %p2285_p0  ;;  %p2292_p8 = por %p2291_p3, %p2290_p13 }
  0x4c   : > { %p2293_p6 = pnand %p2292_p8, %p2286_p2 }
  0x4e   : > { %2296 = shalt.err (!%p2293_p6)
}
  0x4f   : > { %s2297_s29 = scalar_lea.vmem %s2651_s12, 256  ;;  %s2466_s5 = smov [#allocation5]  }
  0x50   : > { %p2298_p11 = scmp.ne.s32.totalorder %s2651_s12, %s2297_s29  ;;  %s2302_s7 = sshll.u32 %s2466_s5, 4  ;;  %s2303_s7 = int_to_ptr.vmem [resolvable:$false] %s2302_s7 }
  0x51   : > { %s2304_s28 = scalar_lea.vmem %s2303_s7, 512  ;;  %p2305_p12 = scmp.lt.s32.totalorder %s2651_s12, %s2303_s7 }
  0x52   : > { %p2300_p0 = pnand %p2298_p11, %p2576_p9  ;;  %p2306_p1 = scmp.lt.s32.totalorder %s2304_s28, %s2297_s29 }
  0x54   : > { %p2301_p4 = pneg %p2300_p0  ;;  %p2307_p5 = por %p2306_p1, %p2305_p12 }
  0x56   : > { %p2308_p10 = pnand %p2307_p5, %p2301_p4 }
  0x58   : > { %2311 = shalt.err (!%p2308_p10)
}
  0x59   : > { %s3477_s19 = smov 4   ;;  %s3478_s21 = smov 64  }
  0x5a   : > { %2074 = dma.hbm_to_vmem [thread:$0]  (!%p2553_p7), %s2642_s14, 256, %s2651_s12, %s2655_s1, %s3478_s21, %s3478_s21, %s3477_s19  }
  0x5b   : > { %s2312_s5 = scalar_lea.hbm %s3444_s3, 16  ;;  %p3479_p4 = scmp.ne.s32.totalorder %s3475_s24, 0 }
  0x5c   : > { %p2313_p3 = scmp.ne.s32.totalorder %s3444_s3, %s2312_s5  ;;  %p2319_p1 = scmp.lt.u32.totalorder %s2312_s5, %s3444_s3 }
  0x5d   : > { %p2314_p6 = pneg %p3479_p4 }
  0x5f   : > { %p2315_p8 = pnand %p2314_p6, %p2313_p3 }
  0x61   : > { %p2316_p12 = pneg %p2315_p8 }
  0x63   : > { %p2321_p2 = pnand %p2319_p1, %p2316_p12 }
  0x65   : > { %2324 = shalt.err (!%p2321_p2)
}
  0x66   : > { %s2325_s0 = scalar_lea.vmem %s2634_s30, 16  ;;  %s2332_s1 = scalar_lea.vmem %s2634_s30, 32 }
  0x67   : > { %p2326_p13 = scmp.ne.s32.totalorder %s2634_s30, %s2325_s0  ;;  %p2333_p5 = scmp.lt.s32.totalorder %s2634_s30, %s2634_s30 }
  0x68   : > { %p2334_p10 = scmp.lt.s32.totalorder %s2332_s1, %s2325_s0 }
  0x69   : > { %p2328_p11 = pnand %p2326_p13, %p2314_p6 }
  0x6a   : > { %p2335_p3 = por %p2334_p10, %p2333_p5 }
  0x6b   : > { %p2329_p0 = pneg %p2328_p11 }
  0x6d   : > { %p2336_p8 = pnand %p2335_p3, %p2329_p0 }
  0x6f   : > { %2339 = shalt.err (!%p2336_p8)
}
  0x70   : > { %2070 = dma.hbm_to_vmem [thread:$0]  (!%p3479_p4), %s3444_s3, 16, %s2634_s30, [#allocation12]  }
  0x71   : > { %s2708_s5 = scalar_lea.hbm %s3443_s2, %s2551_s26  ;;  %s262_s7 = scalar_lea.vmem [#allocation10], %s2548_s25 }
  0x72   : > { %s271_s29 = sshll.u32 %s262_s7, 4  ;;  %s2340_s24 = scalar_lea.hbm %s2708_s5, 256  ;;  %s2711_s29 = int_to_ptr.vmem [resolvable:$true] %s271_s29 }
  0x73   : > { %p2341_p6 = scmp.ne.s32.totalorder %s2708_s5, %s2340_s24  ;;  %s2345_s0 = scalar_lea.hbm %s3443_s2, 512 }
  0x74   : > { %p2346_p4 = scmp.lt.u32.totalorder %s2708_s5, %s3443_s2  ;;  %p2347_p2 = scmp.lt.u32.totalorder %s2345_s0, %s2340_s24 }
  0x75   : > { %p2343_p12 = pnand %p2341_p6, %p2576_p9  ;;  %p2349_p11 = scmp.lt.u32.totalorder %s2340_s24, %s2708_s5 }
  0x76   : > { %p2348_p13 = por %p2347_p2, %p2346_p4 }
  0x77   : > { %p2344_p1 = pneg %p2343_p12 }
  0x78   : > { %p2350_p0 = por %p2349_p11, %p2348_p13 }
  0x7a   : > { %p2351_p5 = pnand %p2350_p0, %p2344_p1 }
  0x7c   : > { %2354 = shalt.err (!%p2351_p5)
}
  0x7d   : > { %s2355_s25 = scalar_lea.vmem %s2711_s29, 256  ;;  %s2467_s17 = smov [#allocation10]  }
  0x7e   : > { %p2356_p10 = scmp.ne.s32.totalorder %s2711_s29, %s2355_s25  ;;  %s2360_s12 = sshll.u32 %s2467_s17, 4  ;;  %s2361_s12 = int_to_ptr.vmem [resolvable:$false] %s2360_s12 }
  0x7f   : > { %s2362_s14 = scalar_lea.vmem %s2361_s12, 512  ;;  %p2363_p6 = scmp.lt.s32.totalorder %s2711_s29, %s2361_s12 }
  0x80   : > { %p2358_p3 = pnand %p2356_p10, %p2576_p9  ;;  %p2364_p12 = scmp.lt.s32.totalorder %s2362_s14, %s2355_s25 }
  0x82   : > { %p2359_p8 = pneg %p2358_p3  ;;  %p2365_p4 = por %p2364_p12, %p2363_p6 }
  0x84   : > { %p2366_p2 = pnand %p2365_p4, %p2359_p8 }
  0x86   : > { %2369 = shalt.err (!%p2366_p2)
}
  0x87   : > { %2080 = dma.hbm_to_vmem [thread:$0]  (!%p2553_p7), %s2708_s5, 256, %s2711_s29, %s2570_s9, %s3478_s21, %s3478_s21, %s3477_s19  }
  0x88   : > { %p3480_p9 = scmp.ne.s32.totalorder %s3473_s23, 0 }
  0x8a   : > { %283 = sbr.rel (%p3480_p9) target bundleno = 2632 (0xa48), region = 36 }
  0x91   : > { %s2741_s11 = sand.u32 1, %s2444_s16   ;;  %p3481_p1 = scmp.ne.s32.totalorder %s3469_s22, 0 }
  0x92   : > { %s2744_s10 = sshll.u32 %s2741_s11, 4  ;;  %s286_s27 = scalar_lea.sflag [#allocation6], %s2741_s11 }
  0x93   : > { %s289_s7 = scalar_lea.vmem [#allocation5], %s2744_s10 }
  0x94   : > { %2423 = dma.done.wait (%p3481_p1), %s286_s27, 256  }
  0x95   : > { %2425 = vsyncadd (%p3481_p1), %s286_s27, 4294967040  ;;  %s294_s9 = sand.u32 1, %s2604_s13   ;;  %s298_s19 = scalar_lea.vmem [#allocation8], %s2744_s10 }
  0x96   : > { %s295_s23 = scalar_lea.sflag [#allocation9], %s294_s9 }
  0x97   : > { %2427 = dma.done.wait (%p3481_p1), %s295_s23, 512  }
  0x98   : > { %2429 = vsyncadd (%p3481_p1), %s295_s23, 4294966784  ;;  %s307_s21 = scalar_lea.vmem [#allocation10], %s2744_s10  ;;  %p3482_p7 = scmp.eq.s32.totalorder %s2604_s13, 0 }
  0x9a   : > { %2431 = dma.done.wait (%p3482_p7), [#allocation12], 16   ;;  %p3483_p13 = pmov %p3482_p7 }
  0x9b   : > { %vm431_vm0 = vcmask 261120   ;;  %v2763_v0 = vld [vmem:[%s298_s19] sm:$0xff]   ;;  %v2765_v1 = vld [vmem:[%s298_s19 + $0x8] sm:$0xff]   ;;  %vm355_vm1 = vcmask 7168   ;;  %v2468_v6 = vmov -1e+30  }
  0x9c   : > { %2433 = vsyncadd (%p3483_p13), [#allocation12], 4294967280  ;;  %2047 = vmatprep.subr.msk.bf16.mxu0 %vm431_vm0, %v2763_v0  ;;  %v439_v2 = vsel %vm431_vm0, %v2763_v0, 0  ;;  %v2771_v3 = vld [vmem:[%s289_s7] sm:$0xff]   ;;  %v442_v4 = vsel %vm431_vm0, %v2765_v1, 0  ;;  %v2779_v5 = vld [vmem:[%s289_s7 + $0x8] sm:$0xff]  }
  0x9d   : > { %1984 = vmatpush3.bf16.xpose.msra.mxu0 %v439_v2  ;;  %1987 = vmatprep.mubr.msk.bf16.mxu0 %vm431_vm0, %v2771_v3  ;;  %358 = vst.msk [vmem:[#allocation2 + $0x10] sm:$0xff] %vm355_vm1, %v2468_v6  ;;  %356 = vst.msk [vmem:[#allocation2] sm:$0xff] %vm355_vm1, %v2468_v6  ;;  %v2799_v7 = vld [vmem:[#allocation11] ss:$0 sm:$0xff]  ;;  %v2469_v20 = vmov 0   ;;  %v2470_v21 = vmov 0.0  }
  0x9e   : > { %2048 = vmatprep.subr.msk.bf16.mxu0 %vm431_vm0, %v2765_v1  ;;  %357 = vst.msk [vmem:[#allocation2 + $0x8] sm:$0xff] %vm355_vm1, %v2468_v6  ;;  %359 = vst.msk [vmem:[#allocation2 + $0x18] sm:$0xff] %vm355_vm1, %v2468_v6  ;;  %2148 = vset.pattern.permute.xlu1 %v2469_v20  ;;  %v2879_v38 = vld [vmem:[%s307_s21] sm:$0xff]   ;;  %s2471_s13 = smov 96   ;;  %v2887_v39 = vld [vmem:[%s307_s21 + $0x8] sm:$0xff]   ;;  %s2472_s22 = smov 64  }
  0x9f   : > { %360 = vst.msk [vmem:[#allocation2 + $0x20] sm:$0xff] %vm355_vm1, %v2468_v6  ;;  %361 = vst.msk [vmem:[#allocation2 + $0x28] sm:$0xff] %vm355_vm1, %v2468_v6  ;;  %2147 = vset.pattern.permute.xlu0 %v2469_v20  ;;  %1991 = vmatprep.subr.bf16.mxu1 %v2879_v38  ;;  %s2473_s5 = smov 32   ;;  %vm969_vm2 = vcmask 523520   ;;  %vm1252_vm3 = vcmask 785920   ;;  %vm1535_vm4 = vcmask 1048320  }
  0xa0   : > { %362 = vst.msk [vmem:[#allocation2 + $0x30] sm:$0xff] %vm355_vm1, %v2468_v6  ;;  %363 = vst.msk [vmem:[#allocation2 + $0x38] sm:$0xff] %vm355_vm1, %v2468_v6  ;;  %1992 = vmatpush3.bf16.msra.mxu1 %v2879_v38  ;;  %vm1683_vm5 = vcmask 523264   ;;  %vm1688_vm6 = vcmask 785408   ;;  %s1939_s29 = sshll.u32 %s2452_s18, 8  ;;  %s345_s24 = scalar_lea.vmem [#allocation13], %s2744_s10 }
  0xa1   : > { %364 = vst.msk [vmem:[#allocation2 + $0x40] sm:$0xff] %vm355_vm1, %v2468_v6  ;;  %365 = vst.msk [vmem:[#allocation2 + $0x48] sm:$0xff] %vm355_vm1, %v2468_v6  ;;  %1993 = vmatprep.subr.bf16.mxu1 %v2887_v39  ;;  %s1729_s28 = sshll.u32 %s345_s24, 4  ;;  %s3388_s0 = scalar_lea.hbm %s3445_s4, %s1939_s29  ;;  %s3390_s28 = int_to_ptr.vmem [resolvable:$true] %s1729_s28 }
  0xa2   : > { %366 = vst.msk [vmem:[#allocation2 + $0x50] sm:$0xff] %vm355_vm1, %v2468_v6  ;;  %367 = vst.msk [vmem:[#allocation2 + $0x58] sm:$0xff] %vm355_vm1, %v2468_v6  ;;  %s1714_s1 = scalar_lea.sflag [#allocation7], %s2741_s11  ;;  %s2370_s26 = scalar_lea.vmem %s3390_s28, 256 }
  0xa3   : > { %368 = vst.msk [vmem:[#allocation2 + $0x60] sm:$0xff] %vm355_vm1, %v2468_v6  ;;  %369 = vst.msk [vmem:[#allocation2 + $0x68] sm:$0xff] %vm355_vm1, %v2468_v6  ;;  %p2371_p11 = scmp.ne.s32.totalorder %s3390_s28, %s2370_s26  ;;  %p3504_p0 = scmp.ne.s32.totalorder %s3471_s6, 0 }
  0xa4   : > { %370 = vst.msk [vmem:[#allocation2 + $0x70] sm:$0xff] %vm355_vm1, %v2468_v6  ;;  %371 = vst.msk [vmem:[#allocation2 + $0x78] sm:$0xff] %vm355_vm1, %v2468_v6  ;;  %v2837_v22 = vld [vmem:[#allocation2 + $0x10] sm:$0xff]  ;;  %v2839_v23 = vld [vmem:[#allocation2] sm:$0xff]  ;;  %1994 = vmatpush3.bf16.msra.mxu1 %v2887_v39  ;;  %s2474_s25 = smov [#allocation13]  }
  0xa5   : > { %1986 = vmatpush3.bf16.xpose.msra.mxu0 %v442_v4  ;;  %373 = vst.msk [vmem:[#allocation3 + $0x8] sm:$0xff] %vm355_vm1, %v2470_v21  ;;  %372 = vst.msk [vmem:[#allocation3] sm:$0xff] %vm355_vm1, %v2470_v21  ;;  %v2847_v28 = vld [vmem:[#allocation2 + $0x18] sm:$0xff]  ;;  %v2854_v30 = vld [vmem:[#allocation2 + $0x8] sm:$0xff]  ;;  %p2372_p5 = pnand %p2371_p11, %p3504_p0  ;;  %s2374_s17 = sshll.u32 %s2474_s25, 4  ;;  %s2375_s17 = int_to_ptr.vmem [resolvable:$false] %s2374_s17 }
  0xa6   : > { %374 = vst.msk [vmem:[#allocation3 + $0x10] sm:$0xff] %vm355_vm1, %v2470_v21  ;;  %375 = vst.msk [vmem:[#allocation3 + $0x18] sm:$0xff] %vm355_vm1, %v2470_v21  ;;  %s2376_s12 = scalar_lea.vmem %s2375_s17, 512  ;;  %p2377_p3 = scmp.lt.s32.totalorder %s3390_s28, %s2375_s17 }
  0xa7   : > { %376 = vst.msk [vmem:[#allocation3 + $0x20] sm:$0xff] %vm355_vm1, %v2470_v21  ;;  %377 = vst.msk [vmem:[#allocation3 + $0x28] sm:$0xff] %vm355_vm1, %v2470_v21  ;;  %p2373_p10 = pneg %p2372_p5  ;;  %p2378_p8 = scmp.lt.s32.totalorder %s2376_s12, %s2370_s26 }
  0xa8   : > { %378 = vst.msk [vmem:[#allocation3 + $0x30] sm:$0xff] %vm355_vm1, %v2470_v21  ;;  %379 = vst.msk [vmem:[#allocation3 + $0x38] sm:$0xff] %vm355_vm1, %v2470_v21 }
  0xa9   : > { %380 = vst.msk [vmem:[#allocation3 + $0x40] sm:$0xff] %vm355_vm1, %v2470_v21  ;;  %381 = vst.msk [vmem:[#allocation3 + $0x48] sm:$0xff] %vm355_vm1, %v2470_v21  ;;  %p2379_p6 = por %p2378_p8, %p2377_p3 }
  0xaa   : > { %382 = vst.msk [vmem:[#allocation3 + $0x50] sm:$0xff] %vm355_vm1, %v2470_v21  ;;  %383 = vst.msk [vmem:[#allocation3 + $0x58] sm:$0xff] %vm355_vm1, %v2470_v21  ;;  %v3127_v29 = vld [vmem:[#allocation2 + $0x68] sm:$0xff] }
  0xab   : > { %384 = vst.msk [vmem:[#allocation3 + $0x60] sm:$0xff] %vm355_vm1, %v2470_v21  ;;  %385 = vst.msk [vmem:[#allocation3 + $0x68] sm:$0xff] %vm355_vm1, %v2470_v21  ;;  %v3142_v37 = vld [vmem:[#allocation2 + $0x70] sm:$0xff]  ;;  %p2380_p12 = pnand %p2379_p6, %p2373_p10 }
  0xac   : > { %1988 = vmatmul.mubr.msk.bf16.vlgmr.msra.gmra.mrb[0].mxu0 %vm431_vm0, %v2779_v5  ;;  %386 = vst.msk [vmem:[#allocation3 + $0x70] sm:$0xff] %vm355_vm1, %v2470_v21  ;;  %387 = vst.msk [vmem:[#allocation3 + $0x78] sm:$0xff] %vm355_vm1, %v2470_v21 }
  0xad   : > { %388 = vst [vmem:[#allocation4] sm:$0xff] %v2470_v21  ;;  %389 = vst [vmem:[#allocation4 + $0x8] sm:$0xff] %v2470_v21 }
  0xae   : > { %390 = vst [vmem:[#allocation4 + $0x10] sm:$0xff] %v2470_v21  ;;  %391 = vst [vmem:[#allocation4 + $0x18] sm:$0xff] %v2470_v21  ;;  %v2937_v21 = vld [vmem:[#allocation2 + $0x20] sm:$0xff] }
 0x17f   : > { %v1989_v8 = vpop.f32.mrb[0].mxu0 }
 0x180   : > { %v2802_v9 = vadd.f32 %v1989_v8, %v2799_v7  ;;  %v478_v10 = vpop.f32.mrb[1].mxu0 }
 0x181   : > { %v2805_v11 = vadd.f32 %v2799_v7, %v478_v10  ;;  %v1990_v12 = vpop.f32.mrb[2].mxu0 }
 0x182   : > { %v2808_v13 = vadd.f32 %v1990_v12, %v2799_v7  ;;  %v481_v14 = vpop.f32.mrb[3].mxu0  ;;  %v503_v15 = vsel %vm431_vm0, %v2802_v9, -inf }
 0x183   : > { %v2813_v16 = vadd.f32 %v2799_v7, %v481_v14  ;;  %504 = vmax.xlane.f32.xlu1 %v503_v15  ;;  %v497_v17 = vsel %vm431_vm0, %v2805_v11, -inf }
 0x184   : > { %498 = vmax.xlane.f32.xlu0 %v497_v17  ;;  %v506_v18 = vsel %vm431_vm0, %v2808_v13, -inf }
 0x185   : > { %v500_v19 = vsel %vm431_vm0, %v2813_v16, -inf }
 0x187   : > { %507 = vmax.xlane.f32.xlu1 %v506_v18 }
 0x188   : > { %501 = vmax.xlane.f32.xlu0 %v500_v19 }
 0x210   : > { %v505_v24 = vpop.xlane.xlu1 %504 }
 0x211   : > { %v2842_v25 = vmax.f32 %v2837_v22, %v505_v24  ;;  %v499_v26 = vpop.xlane.xlu0 %498 }
 0x212   : > { %v2845_v27 = vmax.f32 %v2839_v23, %v499_v26  ;;  %v2939_v26 = vld [vmem:[#allocation2 + $0x28] sm:$0xff] }
 0x213   : > { %693 = vst.msk [vmem:[#allocation2 + $0x10] sm:$0xff] %vm355_vm1, %v2842_v25  ;;  %537 = vperm.xlu1 %2148, %v2842_v25  }
 0x214   : > { %691 = vst.msk [vmem:[#allocation2] sm:$0xff] %vm355_vm1, %v2845_v27  ;;  %v508_v32 = vpop.xlane.xlu1 %507  ;;  %527 = vperm.xlu0 %2147, %v2845_v27  }
 0x215   : > { %v2862_v33 = vmax.f32 %v2847_v28, %v508_v32  ;;  %v502_v34 = vpop.xlane.xlu0 %501 }
 0x216   : > { %v2865_v35 = vmax.f32 %v2854_v30, %v502_v34 }
 0x217   : > { %694 = vst.msk [vmem:[#allocation2 + $0x18] sm:$0xff] %vm355_vm1, %v2862_v33 }
 0x218   : > { %692 = vst.msk [vmem:[#allocation2 + $0x8] sm:$0xff] %vm355_vm1, %v2865_v35  ;;  %532 = vperm.xlu1 %2148, %v2865_v35  }
 0x21c   : > { %542 = vperm.xlu1 %2148, %v2862_v33  }
 0x220   : > { %699 = vrot.lane.b32.xlu1 %v2763_v0, %s2471_s13 }
 0x224   : > { %701 = vrot.lane.b32.xlu1 %v2765_v1, %s2471_s13 }
 0x228   : > { %695 = vrot.lane.b32.xlu1 %v2771_v3, %s2471_s13 }
 0x22c   : > { %697 = vrot.lane.b32.xlu1 %v2779_v5, %s2471_s13 }
 0x292   : > { %v538_v40 = vpop.permute.xlu1 %537 }
 0x293   : > { %v528_v41 = vpop.permute.xlu0 %527  ;;  %v547_v43 = vsub.f32 %v2802_v9, %v538_v40  ;;  %v2944_v40 = vld [vmem:[#allocation2 + $0x38] sm:$0xff] }
 0x294   : > { %v545_v42 = vsub.f32 %v2805_v11, %v528_v41 }
 0x295   : > { %v553_v48 = vmul.f32 1.442695, %v547_v43 }
 0x296   : > { %v549_v44 = vmul.f32 1.442695, %v545_v42 }
 0x297   : > { %v533_v45 = vpop.permute.xlu1 %532 }
 0x298   : > { %v546_v46 = vsub.f32 %v2813_v16, %v533_v45  ;;  %2155 = vpow2.f32 %v549_v44  ;;  %v2954_v44 = vld [vmem:[#allocation2 + $0x30] sm:$0xff] }
 0x29a   : > { %v551_v47 = vmul.f32 1.442695, %v546_v46 }
 0x29b   : > { %v543_v49 = vpop.permute.xlu1 %542 }
 0x29c   : > { %2157 = vpow2.f32 %v551_v47  ;;  %v548_v50 = vsub.f32 %v2808_v13, %v543_v49 }
 0x29d   : > { %2159 = vpow2.f32 %v553_v48 }
 0x29e   : > { %v555_v51 = vmul.f32 1.442695, %v548_v50 }
 0x29f   : > { %v700_v52 = vpop.permute.xlu1 %699 }
 0x2a0   : > { %2161 = vpow2.f32 %v555_v51  ;;  %2049 = vmatprep.subr.msk.bf16.mxu1 %vm431_vm0, %v700_v52  ;;  %v710_v60 = vsel %vm431_vm0, %v700_v52, 0 }
 0x2a2   : > { %v2902_v53 = vpop.eup %2155 }
 0x2a3   : > { %v702_v54 = vpop.permute.xlu1 %701 }
 0x2a4   : > { %v713_v62 = vsel %vm431_vm0, %v702_v54, 0 }
 0x2a6   : > { %v2904_v55 = vpop.eup %2157 }
 0x2a7   : > { %v614_v56 = vpack.c.bf16 %v2904_v55, %v2902_v53  ;;  %v2908_v57 = vpop.eup %2159  ;;  %v696_v61 = vpop.permute.xlu1 %695 }
 0x2a9   : > { %1995 = vmatprep.mubr.msk.bf16.mxu1 %vm431_vm0, %v614_v56 }
 0x2aa   : > { %v2911_v58 = vpop.eup %2161 }
 0x2ab   : > { %v615_v59 = vpack.c.bf16 %v2911_v58, %v2908_v57  ;;  %v698_v63 = vpop.permute.xlu1 %697 }
 0x2ad   : > { %1996 = vmatmul.mubr.msk.bf16.vlgmr.msra.gmra.mrb[0].mxu1 %vm431_vm0, %v615_v59 }
 0x2ae   : > { %2000 = vmatpush3.bf16.xpose.msra.mxu1 %v710_v60  ;;  %2003 = vmatprep.mubr.msk.bf16.mxu1 %vm431_vm0, %v696_v61 }
 0x2af   : > { %2050 = vmatprep.subr.msk.bf16.mxu1 %vm431_vm0, %v702_v54 }
 0x2b6   : > { %2002 = vmatpush3.bf16.xpose.msra.mxu1 %v713_v62 }
 0x2bd   : > { %2004 = vmatmul.mubr.msk.bf16.vlgmr.msra.gmra.mrb[4].mxu1 %vm431_vm0, %v698_v63 }
 0x380   : > { %v2921_v2 = vpop.f32.mrb[0].mxu1 }
 0x381   : > { %v2923_v4 = vpop.f32.mrb[1].mxu1 }
 0x382   : > { %3484 = vst [vmem:[#allocation22_spill] sm:$0xff] %v2923_v4  ;;  %v2925_v6 = vpop.f32.mrb[2].mxu1 }
 0x383   : > { %3485 = vst [vmem:[#allocation23_spill] sm:$0xff] %v2925_v6  ;;  %v2927_v8 = vpop.f32.mrb[3].mxu1 }
 0x390   : > { %v2005_v9 = vpop.f32.mrb[4].mxu1 }
 0x391   : > { %v749_v10 = vpop.f32.mrb[5].mxu1  ;;  %v758_v17 = vadd.f32 %v2005_v9, %v2799_v7 }
 0x392   : > { %v750_v11 = vadd.f32 %v2799_v7, %v749_v10  ;;  %v2006_v12 = vpop.f32.mrb[6].mxu1 }
 0x393   : > { %v752_v13 = vpop.f32.mrb[7].mxu1  ;;  %v761_v14 = vadd.f32 %v2006_v12, %v2799_v7  ;;  %v775_v20 = vsel %vm431_vm0, %v758_v17, -inf }
 0x394   : > { %v753_v15 = vadd.f32 %v2799_v7, %v752_v13  ;;  %v769_v16 = vsel %vm431_vm0, %v750_v11, -inf }
 0x395   : > { %770 = vmax.xlane.f32.xlu1 %v769_v16  ;;  %v778_v19 = vsel %vm431_vm0, %v761_v14, -inf }
 0x396   : > { %v772_v18 = vsel %vm431_vm0, %v753_v15, -inf }
 0x397   : > { %773 = vmax.xlane.f32.xlu0 %v772_v18 }
 0x399   : > { %779 = vmax.xlane.f32.xlu1 %v778_v19 }
 0x39b   : > { %776 = vmax.xlane.f32.xlu0 %v775_v20 }
 0x422   : > { %v771_v24 = vpop.xlane.xlu1 %770 }
 0x423   : > { %v2942_v32 = vmax.f32 %v2937_v21, %v771_v24 }
 0x424   : > { %v774_v34 = vpop.xlane.xlu0 %773 }
 0x425   : > { %974 = vst.msk [vmem:[#allocation2 + $0x20] sm:$0xff] %vm355_vm1, %v2942_v32  ;;  %v2951_v42 = vmax.f32 %v2939_v26, %v774_v34  ;;  %799 = vperm.xlu0 %2147, %v2942_v32  }
 0x426   : > { %v780_v43 = vpop.xlane.xlu1 %779 }
 0x427   : > { %975 = vst.msk [vmem:[#allocation2 + $0x28] sm:$0xff] %vm355_vm1, %v2951_v42  ;;  %v2961_v46 = vmax.f32 %v2944_v40, %v780_v43  ;;  %804 = vperm.xlu1 %2148, %v2951_v42  }
 0x428   : > { %v777_v47 = vpop.xlane.xlu0 %776 }
 0x429   : > { %977 = vst.msk [vmem:[#allocation2 + $0x38] sm:$0xff] %vm355_vm1, %v2961_v46  ;;  %v2969_v49 = vmax.f32 %v2954_v44, %v777_v47  ;;  %814 = vperm.xlu0 %2147, %v2961_v46  }
 0x42b   : > { %976 = vst.msk [vmem:[#allocation2 + $0x30] sm:$0xff] %vm355_vm1, %v2969_v49  ;;  %809 = vperm.xlu1 %2148, %v2969_v49  }
 0x42d   : > { %890 = vrot.lane.b32.xlu0 %v2887_v39, %s2471_s13 }
 0x42f   : > { %888 = vrot.lane.b32.xlu1 %v2879_v38, %s2471_s13 }
 0x431   : > { %984 = vrot.lane.b32.xlu0 %v2765_v1, %s2472_s22 }
 0x433   : > { %982 = vrot.lane.b32.xlu1 %v2763_v0, %s2472_s22 }
 0x435   : > { %980 = vrot.lane.b32.xlu0 %v2779_v5, %s2472_s22 }
 0x437   : > { %978 = vrot.lane.b32.xlu1 %v2771_v3, %s2472_s22 }
 0x4a4   : > { %v800_v51 = vpop.permute.xlu0 %799 }
 0x4a5   : > { %v817_v52 = vsub.f32 %v750_v11, %v800_v51 }
 0x4a6   : > { %v805_v54 = vpop.permute.xlu1 %804 }
 0x4a7   : > { %v821_v56 = vmul.f32 1.442695, %v817_v52  ;;  %v818_v59 = vsub.f32 %v753_v15, %v805_v54 }
 0x4a8   : > { %v815_v60 = vpop.permute.xlu0 %814 }
 0x4a9   : > { %v823_v61 = vmul.f32 1.442695, %v818_v59  ;;  %v820_v62 = vsub.f32 %v761_v14, %v815_v60  ;;  %2163 = vpow2.f32 %v821_v56 }
 0x4aa   : > { %v810_v63 = vpop.permute.xlu1 %809 }
 0x4ab   : > { %2165 = vpow2.f32 %v823_v61  ;;  %v827_v9 = vmul.f32 1.442695, %v820_v62  ;;  %v819_v10 = vsub.f32 %v758_v17, %v810_v63 }
 0x4ac   : > { %v891_v16 = vpop.permute.xlu0 %890 }
 0x4ad   : > { %v825_v12 = vmul.f32 1.442695, %v819_v10  ;;  %2167 = vpow2.f32 %v827_v9 }
 0x4ae   : > { %v889_v13 = vpop.permute.xlu1 %888 }
 0x4af   : > { %2169 = vpow2.f32 %v825_v12  ;;  %2007 = vmatprep.subr.bf16.mxu0 %v889_v13 }
 0x4b0   : > { %2008 = vmatpush3.bf16.msra.mxu0 %v889_v13  ;;  %v985_v43 = vpop.permute.xlu0 %984 }
 0x4b1   : > { %2009 = vmatprep.subr.bf16.mxu0 %v891_v16  ;;  %v996_v47 = vsel %vm431_vm0, %v985_v43, 0 }
 0x4b2   : > { %v983_v11 = vpop.permute.xlu1 %982 }
 0x4b3   : > { %v2989_v18 = vpop.eup %2163  ;;  %v993_v20 = vsel %vm431_vm0, %v983_v11, 0 }
 0x4b4   : > { %2010 = vmatpush3.bf16.msra.mxu0 %v891_v16  ;;  %v981_v51 = vpop.permute.xlu0 %980 }
 0x4b5   : > { %v2991_v15 = vpop.eup %2165  ;;  %2051 = vmatprep.subr.msk.bf16.mxu0 %vm431_vm0, %v983_v11 }
 0x4b6   : > { %v886_v14 = vpack.c.bf16 %v2991_v15, %v2989_v18  ;;  %v979_v34 = vpop.permute.xlu1 %978 }
 0x4b7   : > { %v2996_v17 = vpop.eup %2167 }
 0x4b8   : > { %2011 = vmatprep.mubr.msk.bf16.mxu0 %vm431_vm0, %v886_v14 }
 0x4b9   : > { %v2999_v19 = vpop.eup %2169 }
 0x4ba   : > { %v887_v24 = vpack.c.bf16 %v2996_v17, %v2999_v19 }
 0x4bc   : > { %2012 = vmatmul.mubr.msk.bf16.vlgmr.msra.gmra.mrb[4].mxu0 %vm431_vm0, %v887_v24  ;;  %v3025_v24 = vld [vmem:[#allocation2 + $0x40] sm:$0xff] }
 0x4bd   : > { %2016 = vmatpush3.bf16.xpose.msra.mxu0 %v993_v20  ;;  %2019 = vmatprep.mubr.msk.bf16.mxu0 %vm431_vm0, %v979_v34 }
 0x4be   : > { %2052 = vmatprep.subr.msk.bf16.mxu0 %vm431_vm0, %v985_v43  ;;  %v3027_v43 = vld [vmem:[#allocation2 + $0x48] sm:$0xff] }
 0x4c5   : > { %2018 = vmatpush3.bf16.xpose.msra.mxu0 %v996_v47 }
 0x4cc   : > { %2020 = vmatmul.mubr.msk.bf16.vlgmr.msra.gmra.mrb[8].mxu0 %vm431_vm0, %v981_v51 }
 0x58f   : > { %v3009_v52 = vpop.f32.mrb[4].mxu0 }
 0x590   : > { %v3011_v54 = vpop.f32.mrb[5].mxu0 }
 0x591   : > { %v3013_v56 = vpop.f32.mrb[6].mxu0 }
 0x592   : > { %v3015_v59 = vpop.f32.mrb[7].mxu0 }
 0x59f   : > { %v2021_v60 = vpop.f32.mrb[8].mxu0 }
 0x5a0   : > { %v1032_v61 = vpop.f32.mrb[9].mxu0  ;;  %v1041_v16 = vadd.f32 %v2021_v60, %v2799_v7 }
 0x5a1   : > { %v1033_v62 = vadd.f32 %v2799_v7, %v1032_v61  ;;  %v2022_v63 = vpop.f32.mrb[10].mxu0  ;;  %v3032_v61 = vld [vmem:[#allocation2 + $0x58] sm:$0xff] }
 0x5a2   : > { %v1035_v9 = vpop.f32.mrb[11].mxu0  ;;  %v1044_v10 = vadd.f32 %v2022_v63, %v2799_v7  ;;  %v1058_v20 = vsel %vm431_vm0, %v1041_v16, -inf }
 0x5a3   : > { %v1036_v12 = vadd.f32 %v2799_v7, %v1035_v9  ;;  %v1052_v13 = vsel %vm431_vm0, %v1033_v62, -inf }
 0x5a4   : > { %1053 = vmax.xlane.f32.xlu1 %v1052_v13  ;;  %v1061_v14 = vsel %vm431_vm0, %v1044_v10, -inf  ;;  %v3042_v13 = vld [vmem:[#allocation2 + $0x50] sm:$0xff] }
 0x5a5   : > { %v1055_v11 = vsel %vm431_vm0, %v1036_v12, -inf }
 0x5a6   : > { %1056 = vmax.xlane.f32.xlu0 %v1055_v11 }
 0x5a8   : > { %1062 = vmax.xlane.f32.xlu1 %v1061_v14 }
 0x5aa   : > { %1059 = vmax.xlane.f32.xlu0 %v1058_v20 }
 0x631   : > { %v1054_v34 = vpop.xlane.xlu1 %1053 }
 0x632   : > { %v3030_v47 = vmax.f32 %v3025_v24, %v1054_v34 }
 0x633   : > { %v1057_v51 = vpop.xlane.xlu0 %1056 }
 0x634   : > { %1257 = vst.msk [vmem:[#allocation2 + $0x40] sm:$0xff] %vm355_vm1, %v3030_v47  ;;  %v3039_v63 = vmax.f32 %v3027_v43, %v1057_v51  ;;  %1082 = vperm.xlu0 %2147, %v3030_v47  }
 0x635   : > { %v1063_v9 = vpop.xlane.xlu1 %1062 }
 0x636   : > { %1258 = vst.msk [vmem:[#allocation2 + $0x48] sm:$0xff] %vm355_vm1, %v3039_v63  ;;  %v3049_v14 = vmax.f32 %v3032_v61, %v1063_v9  ;;  %1087 = vperm.xlu1 %2148, %v3039_v63  }
 0x637   : > { %v1060_v20 = vpop.xlane.xlu0 %1059 }
 0x638   : > { %1260 = vst.msk [vmem:[#allocation2 + $0x58] sm:$0xff] %vm355_vm1, %v3049_v14  ;;  %v3057_v51 = vmax.f32 %v3042_v13, %v1060_v20  ;;  %1097 = vperm.xlu0 %2147, %v3049_v14  }
 0x63a   : > { %1259 = vst.msk [vmem:[#allocation2 + $0x50] sm:$0xff] %vm355_vm1, %v3057_v51  ;;  %1092 = vperm.xlu1 %2148, %v3057_v51  }
 0x63c   : > { %1173 = vrot.lane.b32.xlu0 %v2887_v39, %s2472_s22 }
 0x63e   : > { %1171 = vrot.lane.b32.xlu1 %v2879_v38, %s2472_s22 }
 0x640   : > { %1267 = vrot.lane.b32.xlu0 %v2765_v1, %s2473_s5 }
 0x642   : > { %1265 = vrot.lane.b32.xlu1 %v2763_v0, %s2473_s5 }
 0x644   : > { %1263 = vrot.lane.b32.xlu0 %v2779_v5, %s2473_s5 }
 0x646   : > { %1261 = vrot.lane.b32.xlu1 %v2771_v3, %s2473_s5 }
 0x6b3   : > { %v1083_v9 = vpop.permute.xlu0 %1082 }
 0x6b4   : > { %v1100_v20 = vsub.f32 %v1033_v62, %v1083_v9 }
 0x6b5   : > { %v1088_v34 = vpop.permute.xlu1 %1087 }
 0x6b6   : > { %v1104_v11 = vmul.f32 1.442695, %v1100_v20  ;;  %v1101_v60 = vsub.f32 %v1036_v12, %v1088_v34 }
 0x6b7   : > { %v1098_v48 = vpop.permute.xlu0 %1097 }
 0x6b8   : > { %v1106_v41 = vmul.f32 1.442695, %v1101_v60  ;;  %v1103_v36 = vsub.f32 %v1044_v10, %v1098_v48  ;;  %2171 = vpow2.f32 %v1104_v11 }
 0x6b9   : > { %v1093_v31 = vpop.permute.xlu1 %1092 }
 0x6ba   : > { %2173 = vpow2.f32 %v1106_v41  ;;  %v1110_v1 = vmul.f32 1.442695, %v1103_v36  ;;  %v1102_v50 = vsub.f32 %v1041_v16, %v1093_v31 }
 0x6bb   : > { %v1174_v5 = vpop.permute.xlu0 %1173 }
 0x6bc   : > { %v1108_v0 = vmul.f32 1.442695, %v1102_v50  ;;  %2175 = vpow2.f32 %v1110_v1 }
 0x6bd   : > { %v1172_v45 = vpop.permute.xlu1 %1171 }
 0x6be   : > { %2177 = vpow2.f32 %v1108_v0  ;;  %2023 = vmatprep.subr.bf16.mxu1 %v1172_v45 }
 0x6bf   : > { %2024 = vmatpush3.bf16.msra.mxu1 %v1172_v45  ;;  %v1268_v10 = vpop.permute.xlu0 %1267 }
 0x6c0   : > { %2025 = vmatprep.subr.bf16.mxu1 %v1174_v5  ;;  %v1279_v16 = vsel %vm431_vm0, %v1268_v10, 0 }
 0x6c1   : > { %v1266_v3 = vpop.permute.xlu1 %1265 }
 0x6c2   : > { %v3077_v62 = vpop.eup %2171  ;;  %v1276_v45 = vsel %vm431_vm0, %v1266_v3, 0 }
 0x6c3   : > { %2026 = vmatpush3.bf16.msra.mxu1 %v1174_v5  ;;  %v1264_v60 = vpop.permute.xlu0 %1263 }
 0x6c4   : > { %v3079_v12 = vpop.eup %2173  ;;  %2053 = vmatprep.subr.msk.bf16.mxu1 %vm431_vm0, %v1266_v3 }
 0x6c5   : > { %v1169_v36 = vpack.c.bf16 %v3079_v12, %v3077_v62  ;;  %v1262_v50 = vpop.permute.xlu1 %1261 }
 0x6c6   : > { %v3084_v31 = vpop.eup %2175 }
 0x6c7   : > { %2027 = vmatprep.mubr.msk.bf16.mxu1 %vm431_vm0, %v1169_v36 }
 0x6c8   : > { %v3087_v41 = vpop.eup %2177 }
 0x6c9   : > { %v1170_v48 = vpack.c.bf16 %v3084_v31, %v3087_v41 }
 0x6cb   : > { %2028 = vmatmul.mubr.msk.bf16.vlgmr.msra.gmra.mrb[8].mxu1 %vm431_vm0, %v1170_v48 }
 0x6cc   : > { %2032 = vmatpush3.bf16.xpose.msra.mxu1 %v1276_v45  ;;  %2035 = vmatprep.mubr.msk.bf16.mxu1 %vm431_vm0, %v1262_v50 }
 0x6cd   : > { %2054 = vmatprep.subr.msk.bf16.mxu1 %vm431_vm0, %v1268_v10 }
 0x6d4   : > { %2034 = vmatpush3.bf16.xpose.msra.mxu1 %v1279_v16 }
 0x6db   : > { %2036 = vmatmul.mubr.msk.bf16.vlgmr.msra.gmra.mrb[12].mxu1 %vm431_vm0, %v1264_v60 }
 0x79e   : > { %v3097_v11 = vpop.f32.mrb[8].mxu1 }
 0x79f   : > { %v3099_v34 = vpop.f32.mrb[9].mxu1 }
 0x7a0   : > { %v3101_v9 = vpop.f32.mrb[10].mxu1 }
 0x7a1   : > { %v3103_v20 = vpop.f32.mrb[11].mxu1 }
 0x7ae   : > { %v2037_v1 = vpop.f32.mrb[12].mxu1 }
 0x7af   : > { %v1315_v0 = vpop.f32.mrb[13].mxu1  ;;  %v3117_v10 = vadd.f32 %v2037_v1, %v2799_v7 }
 0x7b0   : > { %v3106_v5 = vadd.f32 %v2799_v7, %v1315_v0  ;;  %v2038_v3 = vpop.f32.mrb[14].mxu1 }
 0x7b1   : > { %v1318_v36 = vpop.f32.mrb[15].mxu1  ;;  %v3109_v45 = vadd.f32 %v2038_v3, %v2799_v7  ;;  %v1341_v0 = vsel %vm431_vm0, %v3117_v10, -inf  ;;  %v3125_v3 = vld [vmem:[#allocation2 + $0x60] sm:$0xff] }
 0x7b2   : > { %v3112_v48 = vadd.f32 %v2799_v7, %v1318_v36  ;;  %v1335_v50 = vsel %vm431_vm0, %v3106_v5, -inf }
 0x7b3   : > { %1336 = vmax.xlane.f32.xlu1 %v1335_v50  ;;  %v1344_v60 = vsel %vm431_vm0, %v3109_v45, -inf  ;;  %v3132_v50 = vld [vmem:[#allocation2 + $0x78] sm:$0xff] }
 0x7b4   : > { %v1338_v16 = vsel %vm431_vm0, %v3112_v48, -inf }
 0x7b5   : > { %1339 = vmax.xlane.f32.xlu0 %v1338_v16 }
 0x7b7   : > { %1345 = vmax.xlane.f32.xlu1 %v1344_v60 }
 0x7b9   : > { %1342 = vmax.xlane.f32.xlu0 %v1341_v0 }
 0x840   : > { %v1337_v36 = vpop.xlane.xlu1 %1336 }
 0x841   : > { %v3130_v7 = vmax.f32 %v3125_v3, %v1337_v36  ;;  %v565_v36 = vsel %vm431_vm0, %v2902_v53, 0.0  ;;  %v847_v53 = vsel %vm431_vm0, %v2996_v17, 0.0 }
 0x842   : > { %v1340_v1 = vpop.xlane.xlu0 %1339 }
 0x843   : > { %1540 = vst.msk [vmem:[#allocation2 + $0x60] sm:$0xff] %vm355_vm1, %v3130_v7  ;;  %v3139_v60 = vmax.f32 %v3127_v29, %v1340_v1  ;;  %1365 = vperm.xlu0 %2147, %v3130_v7   ;;  %v841_v1 = vsel %vm431_vm0, %v2991_v15, 0.0 }
 0x844   : > { %v1346_v0 = vpop.xlane.xlu1 %1345 }
 0x845   : > { %1541 = vst.msk [vmem:[#allocation2 + $0x68] sm:$0xff] %vm355_vm1, %v3139_v60  ;;  %v3149_v6 = vmax.f32 %v3132_v50, %v1346_v0  ;;  %1370 = vperm.xlu1 %2148, %v3139_v60   ;;  %v571_v0 = vsel %vm431_vm0, %v2908_v57, 0.0  ;;  %v3486_v57 = vsub.f32 %v2854_v30, %v2865_v35 }
 0x846   : > { %v1343_v16 = vpop.xlane.xlu0 %1342 }
 0x847   : > { %1543 = vst.msk [vmem:[#allocation2 + $0x78] sm:$0xff] %vm355_vm1, %v3149_v6  ;;  %v3157_v4 = vmax.f32 %v3142_v37, %v1343_v16  ;;  %1380 = vperm.xlu0 %2147, %v3149_v6   ;;  %v568_v16 = vsel %vm431_vm0, %v2904_v55, 0.0  ;;  %v838_v55 = vsel %vm431_vm0, %v2989_v18, 0.0  ;;  %v519_v15 = vmul.f32 1.442695, %v3486_v57 }
 0x848   : > { %v3489_v18 = vsub.f32 %v2954_v44, %v2969_v49  ;;  %v3490_v44 = vsub.f32 %v2839_v23, %v2845_v27  ;;  %v1121_v23 = vsel %vm431_vm0, %v3077_v62, 0.0  ;;  %v3493_v27 = vsub.f32 %v2944_v40, %v2961_v46 }
 0x849   : > { %1542 = vst.msk [vmem:[#allocation2 + $0x70] sm:$0xff] %vm355_vm1, %v3157_v4  ;;  %1375 = vperm.xlu1 %2148, %v3157_v4   ;;  %2179 = vpow2.f32 %v519_v15  ;;  %v1130_v62 = vsel %vm431_vm0, %v3084_v31, 0.0  ;;  %v3494_v40 = vsub.f32 %v3025_v24, %v3030_v47  ;;  %v3495_v31 = vsub.f32 %v3042_v13, %v3057_v51 }
 0x84a   : > { %v793_v17 = vmul.f32 1.442695, %v3489_v18  ;;  %v517_v49 = vmul.f32 1.442695, %v3490_v44 }
 0x84b   : > { %1456 = vrot.lane.b32.xlu0 %v2887_v39, %s2473_s5  ;;  %v574_v39 = vsel %vm431_vm0, %v2911_v58, 0.0  ;;  %v3487_v58 = vsub.f32 %v2837_v22, %v2842_v25  ;;  %v1072_v46 = vmul.f32 1.442695, %v3494_v40 }
 0x84d   : > { %1454 = vrot.lane.b32.xlu1 %v2879_v38, %s2473_s5  ;;  %v844_v38 = vsel %vm431_vm0, %v2999_v19, 0.0  ;;  %v3488_v19 = vsub.f32 %v2939_v26, %v2951_v42  ;;  %v1124_v26 = vsel %vm431_vm0, %v3079_v12, 0.0  ;;  %v1127_v42 = vsel %vm431_vm0, %v3087_v41, 0.0 }
 0x853   : > { %v3199_v30 = vpop.eup %2179 }
 0x86a   : > { %569 = vadd.xlane.f32.xlu0 %v568_v16 }
 0x86e   : > { %572 = vadd.xlane.f32.xlu0 %v571_v0 }
 0x871   : > { %566 = vadd.xlane.f32.xlu1 %v565_v36  ;;  %v521_v36 = vmul.f32 1.442695, %v3487_v58  ;;  %v3496_v58 = vsub.f32 %v3032_v61, %v3049_v14 }
 0x872   : > { %842 = vadd.xlane.f32.xlu0 %v841_v1  ;;  %v791_v1 = vmul.f32 1.442695, %v3488_v19 }
 0x873   : > { %2181 = vpow2.f32 %v521_v36  ;;  %v1078_v36 = vmul.f32 1.442695, %v3496_v58 }
 0x874   : > { %2183 = vpow2.f32 %v791_v1 }
 0x875   : > { %575 = vadd.xlane.f32.xlu1 %v574_v39  ;;  %2185 = vpow2.f32 %v793_v17 }
 0x876   : > { %845 = vadd.xlane.f32.xlu0 %v844_v38  ;;  %2187 = vpow2.f32 %v517_v49 }
 0x879   : > { %839 = vadd.xlane.f32.xlu1 %v838_v55 }
 0x87d   : > { %848 = vadd.xlane.f32.xlu1 %v847_v53  ;;  %v3204_v22 = vpop.eup %2181 }
 0x87e   : > { %v3207_v25 = vpop.eup %2183 }
 0x87f   : > { %v3210_v35 = vpop.eup %2185 }
 0x88c   : > { %955 = vrot.lane.b32.xlu0 %v3015_v59, %s2473_s5 }
 0x88e   : > { %597 = vperm.xlu1 %2148, %v3199_v30  }
 0x890   : > { %959 = vrot.lane.b32.xlu0 %v3013_v56, %s2473_s5  ;;  %v3491_v56 = vsub.f32 %v2847_v28, %v2862_v33  ;;  %v795_v28 = vmul.f32 1.442695, %v3493_v27 }
 0x892   : > { %602 = vperm.xlu1 %2148, %v3204_v22  }
 0x896   : > { %869 = vperm.xlu1 %2148, %v3207_v25  }
 0x89a   : > { %874 = vperm.xlu1 %2148, %v3210_v35  }
 0x89e   : > { %953 = vrot.lane.b32.xlu1 %v3011_v54, %s2473_s5  ;;  %v523_v54 = vmul.f32 1.442695, %v3491_v56  ;;  %v3497_v56 = vsub.f32 %v3127_v29, %v3139_v60  ;;  %v3500_v29 = vsub.f32 %v3125_v3, %v3130_v7  ;;  %v559_v7 = vld [vmem:[#allocation3 + $0x10] sm:$0xff] }
 0x8a0   : > { %2189 = vpow2.f32 %v523_v54  ;;  %v1357_v54 = vmul.f32 1.442695, %v3497_v56 }
 0x8a2   : > { %957 = vrot.lane.b32.xlu1 %v3009_v52, %s2473_s5  ;;  %v3492_v52 = vsub.f32 %v2937_v21, %v2942_v32  ;;  %v3238_v32 = vpop.eup %2187 }
 0x8a4   : > { %v789_v59 = vmul.f32 1.442695, %v3492_v52 }
 0x8a6   : > { %2191 = vpow2.f32 %v789_v59  ;;  %v3498_v59 = vsub.f32 %v3132_v50, %v3149_v6  ;;  %v3501_v6 = vsub.f32 %v3142_v37, %v3157_v4  ;;  %v563_v37 = vmul.f32 %v3204_v22, %v559_v7  ;;  %v557_v4 = vld [vmem:[#allocation3] sm:$0xff] }
 0x8aa   : > { %v3247_v53 = vpop.eup %2189 }
 0x8af   : > { %1125 = vadd.xlane.f32.xlu0 %v1124_v26 }
 0x8b0   : > { %v3253_v24 = vpop.eup %2191 }
 0x8b3   : > { %1128 = vadd.xlane.f32.xlu0 %v1127_v42 }
 0x8c2   : > { %v1366_v12 = vpop.permute.xlu0 %1365 }
 0x8c3   : > { %v1383_v16 = vsub.f32 %v3106_v5, %v1366_v12  ;;  %v1361_v12 = vmul.f32 1.442695, %v3498_v59 }
 0x8c4   : > { %v1371_v0 = vpop.permute.xlu1 %1370 }
 0x8c5   : > { %v1387_v41 = vmul.f32 1.442695, %v1383_v16  ;;  %v1384_v39 = vsub.f32 %v3112_v48, %v1371_v0  ;;  %v3499_v16 = vsub.f32 %v3027_v43, %v3039_v63  ;;  %v1359_v43 = vmul.f32 1.442695, %v3501_v6  ;;  %v558_v63 = vld [vmem:[#allocation3 + $0x8] sm:$0xff] }
 0x8c6   : > { %v1381_v33 = vpop.permute.xlu0 %1380  ;;  %1122 = vadd.xlane.f32.xlu1 %v1121_v23  ;;  %v831_v23 = vld [vmem:[#allocation3 + $0x28] sm:$0xff] }
 0x8c7   : > { %v1389_v38 = vmul.f32 1.442695, %v1384_v39  ;;  %v1386_v21 = vsub.f32 %v3109_v45, %v1381_v33  ;;  %2193 = vpow2.f32 %v1387_v41  ;;  %v1074_v0 = vmul.f32 1.442695, %v3499_v16 }
 0x8c8   : > { %v1376_v5 = vpop.permute.xlu1 %1375  ;;  %v561_v33 = vmul.f32 %v3238_v32, %v557_v4 }
 0x8c9   : > { %2195 = vpow2.f32 %v1389_v38  ;;  %v1393_v55 = vmul.f32 1.442695, %v1386_v21  ;;  %v1385_v48 = vsub.f32 %v3117_v10, %v1376_v5  ;;  %592 = vperm.xlu0 %2147, %v3238_v32   ;;  %v1076_v10 = vmul.f32 1.442695, %v3495_v31  ;;  %v560_v21 = vld [vmem:[#allocation3 + $0x18] sm:$0xff] }
 0x8ca   : > { %2197 = vpow2.f32 %v795_v28  ;;  %1131 = vadd.xlane.f32.xlu1 %v1130_v62  ;;  %v1457_v15 = vpop.permute.xlu0 %1456  ;;  %v835_v38 = vmul.f32 %v3207_v25, %v831_v23  ;;  %v564_v62 = vmul.f32 %v3247_v53, %v560_v21 }
 0x8cb   : > { %v1391_v45 = vmul.f32 1.442695, %v1385_v48  ;;  %2199 = vpow2.f32 %v1393_v55  ;;  %v832_v55 = vld [vmem:[#allocation3 + $0x30] sm:$0xff] }
 0x8cc   : > { %v1455_v57 = vpop.permute.xlu1 %1454  ;;  %v836_v25 = vmul.f32 %v3210_v35, %v832_v55 }
 0x8cd   : > { %2201 = vpow2.f32 %v1391_v45  ;;  %607 = vperm.xlu0 %2147, %v3247_v53   ;;  %2039 = vmatprep.subr.bf16.mxu0 %v1455_v57 }
 0x8ce   : > { %2203 = vpow2.f32 %v1072_v46  ;;  %2040 = vmatpush3.bf16.msra.mxu0 %v1455_v57  ;;  %v830_v46 = vld [vmem:[#allocation3 + $0x20] sm:$0xff] }
 0x8cf   : > { %2041 = vmatprep.subr.bf16.mxu0 %v1457_v15  ;;  %2205 = vpow2.f32 %v1076_v10  ;;  %v834_v31 = vmul.f32 %v3253_v24, %v830_v46  ;;  %v833_v10 = vld [vmem:[#allocation3 + $0x38] sm:$0xff] }
 0x8d0   : > { %2207 = vpow2.f32 %v1078_v36  ;;  %v1116_v46 = vld [vmem:[#allocation3 + $0x58] sm:$0xff] }
 0x8d1   : > { %864 = vperm.xlu0 %2147, %v3253_v24   ;;  %v2194_v47 = vpop.eup %2193  ;;  %2209 = vpow2.f32 %v1357_v54 }
 0x8d2   : > { %2042 = vmatpush3.bf16.msra.mxu0 %v1457_v15  ;;  %v1404_v14 = vsel %vm431_vm0, %v2194_v47, 0.0  ;;  %2211 = vpow2.f32 %v1361_v12 }
 0x8d3   : > { %v2196_v19 = vpop.eup %2195  ;;  %2213 = vpow2.f32 %v1074_v0 }
 0x8d4   : > { %v3259_v1 = vpop.eup %2197  ;;  %v1452_v18 = vpack.c.bf16 %v2196_v19, %v2194_v47  ;;  %v1407_v52 = vsel %vm431_vm0, %v2196_v19, 0.0 }
 0x8d5   : > { %879 = vperm.xlu0 %2147, %v3259_v1   ;;  %v2200_v13 = vpop.eup %2199  ;;  %v837_v36 = vmul.f32 %v3259_v1, %v833_v10 }
 0x8d6   : > { %2043 = vmatprep.mubr.msk.bf16.mxu0 %vm431_vm0, %v1452_v18  ;;  %v1413_v49 = vsel %vm431_vm0, %v2200_v13, 0.0 }
 0x8d7   : > { %v2202_v51 = vpop.eup %2201 }
 0x8d8   : > { %v3263_v17 = vpop.eup %2203  ;;  %v1410_v26 = vsel %vm431_vm0, %v2202_v51, 0.0  ;;  %v1453_v42 = vpack.c.bf16 %v2200_v13, %v2202_v51 }
 0x8d9   : > { %1411 = vadd.xlane.f32.xlu1 %v1410_v26  ;;  %1147 = vperm.xlu0 %2147, %v3263_v17   ;;  %v3268_v61 = vpop.eup %2205 }
 0x8da   : > { %2044 = vmatmul.mubr.msk.bf16.vlgmr.msra.gmra.mrb[12].mxu0 %vm431_vm0, %v1453_v42  ;;  %v3272_v44 = vpop.eup %2207 }
 0x8db   : > { %v3295_v60 = vpop.eup %2209 }
 0x8dd   : > { %1405 = vadd.xlane.f32.xlu1 %v1404_v14  ;;  %1157 = vperm.xlu0 %2147, %v3268_v61  }
 0x8e1   : > { %1414 = vadd.xlane.f32.xlu1 %v1413_v49  ;;  %1162 = vperm.xlu0 %2147, %v3272_v44  }
 0x8e5   : > { %1408 = vadd.xlane.f32.xlu1 %v1407_v52  ;;  %1236 = vrot.lane.b32.xlu0 %v3099_v34, %s2472_s22  ;;  %v1355_v34 = vmul.f32 1.442695, %v3500_v29 }
 0x8e7   : > { %2215 = vpow2.f32 %v1355_v34 }
 0x8e8   : > { %2217 = vpow2.f32 %v1359_v43 }
 0x8e9   : > { %1238 = vrot.lane.b32.xlu0 %v3103_v20, %s2472_s22  ;;  %v3301_v20 = vpop.eup %2211 }
 0x8ea   : > { %v3303_v50 = vpop.eup %2213 }
 0x8ed   : > { %1242 = vrot.lane.b32.xlu0 %v3101_v9, %s2472_s22  ;;  %v562_v9 = vmul.f32 %v3199_v30, %v558_v63 }
 0x8f1   : > { %1435 = vperm.xlu0 %2147, %v3295_v60   ;;  %v3312_v28 = vpop.eup %2215 }
 0x8f2   : > { %v3318_v48 = vpop.eup %2217 }
 0x8f5   : > { %1445 = vperm.xlu0 %2147, %v3301_v20  }
 0x8f6   : > { %1152 = vperm.xlu1 %2148, %v3303_v50  }
 0x8f7   : > { %v570_v3 = vpop.xlane.xlu0 %569 }
 0x8f8   : > { %v578_v41 = vadd.f32 %v570_v3, %v562_v9  ;;  %v1114_v3 = vld [vmem:[#allocation3 + $0x48] sm:$0xff] }
 0x8f9   : > { %v1118_v7 = vmul.f32 %v3303_v50, %v1114_v3 }
 0x8fa   : > { %583 = vst.msk [vmem:[#allocation3 + $0x8] sm:$0xff] %vm355_vm1, %v578_v41  ;;  %1240 = vrot.lane.b32.xlu1 %v3097_v11, %s2472_s22 }
 0x8fb   : > { %v573_v39 = vpop.xlane.xlu0 %572 }
 0x8fc   : > { %v579_v27 = vadd.f32 %v573_v39, %v563_v37  ;;  %v1115_v37 = vld [vmem:[#allocation3 + $0x50] sm:$0xff] }
 0x8fd   : > { %v1119_v39 = vmul.f32 %v3268_v61, %v1115_v37 }
 0x8fe   : > { %584 = vst.msk [vmem:[#allocation3 + $0x10] sm:$0xff] %vm355_vm1, %v579_v27  ;;  %1430 = vperm.xlu1 %2148, %v3312_v28   ;;  %v567_v30 = vpop.xlane.xlu1 %566 }
 0x8ff   : > { %v577_v5 = vadd.f32 %v567_v30, %v561_v33  ;;  %v843_v11 = vpop.xlane.xlu0 %842 }
 0x900   : > { %v851_v22 = vadd.f32 %v843_v11, %v835_v38  ;;  %v2251_v38 = vld [vmem:[#allocation4] sm:$0xff] }
 0x901   : > { %582 = vst.msk [vmem:[#allocation3] sm:$0xff] %vm355_vm1, %v577_v5  ;;  %v1552_v40 = vld [vmem:[#allocation3 + $0x8] sm:$0xff] }
 0x902   : > { %855 = vst.msk [vmem:[#allocation3 + $0x28] sm:$0xff] %vm355_vm1, %v851_v22  ;;  %1440 = vperm.xlu1 %2148, %v3318_v48   ;;  %v576_v32 = vpop.xlane.xlu1 %575  ;;  %1562 = vperm.xlu0 %2147, %v1552_v40   ;;  %v3502_v5 = vld [vmem:[#allocation22_spill] sm:$0xff]  ;;  %v3503_v22 = vld [vmem:[#allocation23_spill] sm:$0xff] }
 0x903   : > { %v580_v45 = vadd.f32 %v576_v32, %v564_v62  ;;  %v846_v57 = vpop.xlane.xlu0 %845  ;;  %v1113_v40 = vld [vmem:[#allocation3 + $0x40] sm:$0xff] }
 0x904   : > { %v852_v15 = vadd.f32 %v846_v57, %v836_v25  ;;  %v1117_v61 = vmul.f32 %v3263_v17, %v1113_v40 }
 0x905   : > { %585 = vst.msk [vmem:[#allocation3 + $0x18] sm:$0xff] %vm355_vm1, %v580_v45  ;;  %v1553_v13 = vld [vmem:[#allocation3 + $0x10] sm:$0xff] }
 0x906   : > { %856 = vst.msk [vmem:[#allocation3 + $0x30] sm:$0xff] %vm355_vm1, %v852_v15  ;;  %v840_v53 = vpop.xlane.xlu1 %839 }
 0x907   : > { %v850_v47 = vadd.f32 %v840_v53, %v834_v31  ;;  %v956_v29 = vpop.permute.xlu0 %955  ;;  %v1120_v53 = vmul.f32 %v3272_v44, %v1116_v46 }
 0x908   : > { %v1551_v58 = vld [vmem:[#allocation3] sm:$0xff] }
 0x909   : > { %854 = vst.msk [vmem:[#allocation3 + $0x20] sm:$0xff] %vm355_vm1, %v850_v47  ;;  %1557 = vperm.xlu1 %2148, %v1551_v58   ;;  %v1584_v26 = vld [vmem:[#allocation3 + $0x28] sm:$0xff] }
 0x90a   : > { %v849_v35 = vpop.xlane.xlu1 %848 }
 0x90b   : > { %v853_v19 = vadd.f32 %v849_v35, %v837_v36 }
 0x90c   : > { %v1554_v18 = vld [vmem:[#allocation3 + $0x18] sm:$0xff] }
 0x90d   : > { %857 = vst.msk [vmem:[#allocation3 + $0x38] sm:$0xff] %vm355_vm1, %v853_v19  ;;  %1572 = vperm.xlu0 %2147, %v1554_v18   ;;  %1567 = vperm.xlu1 %2148, %v1553_v13   ;;  %v1585_v54 = vld [vmem:[#allocation3 + $0x30] sm:$0xff] }
 0x90e   : > { %v598_v24 = vpop.permute.xlu1 %597 }
 0x90f   : > { %v611_v51 = vmul.f32 0.0, %v598_v24 }
 0x910   : > { %v1583_v42 = vld [vmem:[#allocation3 + $0x20] sm:$0xff] }
 0x911   : > { %v684_v14 = vadd.f32 %v2927_v8, %v611_v51  ;;  %1594 = vperm.xlu0 %2147, %v1584_v26   ;;  %1589 = vperm.xlu1 %2148, %v1583_v42   ;;  %v1398_v42 = vld [vmem:[#allocation3 + $0x70] sm:$0xff] }
 0x912   : > { %v603_v49 = vpop.permute.xlu1 %602 }
 0x913   : > { %688 = vst.msk [vmem:[#allocation4 + $0x8] sm:$0xff] %vm431_vm0, %v684_v14  ;;  %v612_v1 = vmul.f32 0.0, %v603_v49 }
 0x914   : > { %v1586_v56 = vld [vmem:[#allocation3 + $0x38] sm:$0xff] }
 0x915   : > { %v685_v52 = vadd.f32 %v2921_v2, %v612_v1  ;;  %1604 = vperm.xlu0 %2147, %v1586_v56   ;;  %1599 = vperm.xlu1 %2148, %v1585_v54   ;;  %v960_v2 = vpop.permute.xlu0 %959  ;;  %v1402_v56 = vmul.f32 %v3318_v48, %v1398_v42 }
 0x916   : > { %v870_v59 = vpop.permute.xlu1 %869 }
 0x917   : > { %689 = vst.msk [vmem:[#allocation4 + $0x10] sm:$0xff] %vm431_vm0, %v685_v52  ;;  %v1396_v52 = vld [vmem:[#allocation3 + $0x60] sm:$0xff] }
 0x91a   : > { %v859_v12 = vld [vmem:[#allocation4 + $0x8] sm:$0xff]  ;;  %v875_v16 = vpop.permute.xlu1 %874 }
 0x91b   : > { %v883_v0 = vmul.f32 %v870_v59, %v859_v12 }
 0x91d   : > { %v966_v8 = vadd.f32 %v956_v29, %v883_v0  ;;  %v1400_v0 = vmul.f32 %v3312_v28, %v1396_v52 }
 0x91e   : > { %v860_v34 = vld [vmem:[#allocation4 + $0x10] sm:$0xff]  ;;  %v954_v6 = vpop.permute.xlu1 %953 }
 0x91f   : > { %971 = vst.msk [vmem:[#allocation4 + $0x8] sm:$0xff] %vm969_vm2, %v966_v8  ;;  %v884_v43 = vmul.f32 %v875_v16, %v860_v34  ;;  %v1399_v8 = vld [vmem:[#allocation3 + $0x78] sm:$0xff] }
 0x920   : > { %v1403_v48 = vmul.f32 %v3301_v20, %v1399_v8 }
 0x922   : > { %v958_v63 = vpop.permute.xlu1 %957 }
 0x923   : > { %v967_v9 = vadd.f32 %v958_v63, %v884_v43 }
 0x925   : > { %972 = vst.msk [vmem:[#allocation4 + $0x10] sm:$0xff] %vm969_vm2, %v967_v9 }
 0x93c   : > { %v1126_v41 = vpop.xlane.xlu0 %1125 }
 0x93d   : > { %v1134_v4 = vadd.f32 %v1126_v41, %v1118_v7 }
 0x93f   : > { %1138 = vst.msk [vmem:[#allocation3 + $0x48] sm:$0xff] %vm355_vm1, %v1134_v4 }
 0x940   : > { %v1129_v23 = vpop.xlane.xlu0 %1128 }
 0x941   : > { %v1135_v27 = vadd.f32 %v1129_v23, %v1119_v39  ;;  %v1142_v39 = vld [vmem:[#allocation4 + $0x8] sm:$0xff] }
 0x943   : > { %1139 = vst.msk [vmem:[#allocation3 + $0x50] sm:$0xff] %vm355_vm1, %v1135_v27  ;;  %v1143_v27 = vld [vmem:[#allocation4 + $0x10] sm:$0xff] }
 0x946   : > { %v1616_v33 = vld [vmem:[#allocation3 + $0x48] sm:$0xff] }
 0x947   : > { %1626 = vperm.xlu0 %2147, %v1616_v33  }
 0x948   : > { %v593_v30 = vpop.permute.xlu0 %592 }
 0x949   : > { %v610_v21 = vmul.f32 %v2251_v38, %v593_v30 }
 0x94a   : > { %v1617_v44 = vld [vmem:[#allocation3 + $0x50] sm:$0xff] }
 0x94b   : > { %v683_v11 = vadd.f32 %v3502_v5, %v610_v21 }
 0x94c   : > { %v608_v55 = vpop.permute.xlu0 %607 }
 0x94d   : > { %687 = vst.msk [vmem:[#allocation4] sm:$0xff] %vm431_vm0, %v683_v11  ;;  %v613_v50 = vmul.f32 %v2251_v38, %v608_v55 }
 0x94f   : > { %v686_v62 = vadd.f32 %v3503_v22, %v613_v50 }
 0x950   : > { %v865_v32 = vpop.permute.xlu0 %864 }
 0x951   : > { %690 = vst.msk [vmem:[#allocation4 + $0x18] sm:$0xff] %vm431_vm0, %v686_v62 }
 0x953   : > { %v1123_v25 = vpop.xlane.xlu1 %1122 }
 0x954   : > { %v858_v45 = vld [vmem:[#allocation4] sm:$0xff]  ;;  %v1133_v57 = vadd.f32 %v1123_v25, %v1117_v61  ;;  %v880_v15 = vpop.permute.xlu0 %879 }
 0x955   : > { %v882_v31 = vmul.f32 %v865_v32, %v858_v45 }
 0x956   : > { %1137 = vst.msk [vmem:[#allocation3 + $0x40] sm:$0xff] %vm355_vm1, %v1133_v57 }
 0x957   : > { %v965_v10 = vadd.f32 %v954_v6, %v882_v31  ;;  %v1132_v47 = vpop.xlane.xlu1 %1131 }
 0x958   : > { %v861_v58 = vld [vmem:[#allocation4 + $0x18] sm:$0xff]  ;;  %v1136_v36 = vadd.f32 %v1132_v47, %v1120_v53  ;;  %v1148_v35 = vpop.permute.xlu0 %1147 }
 0x959   : > { %970 = vst.msk [vmem:[#allocation4] sm:$0xff] %vm969_vm2, %v965_v10  ;;  %v885_v19 = vmul.f32 %v880_v15, %v861_v58 }
 0x95a   : > { %1140 = vst.msk [vmem:[#allocation3 + $0x58] sm:$0xff] %vm355_vm1, %v1136_v36 }
 0x95b   : > { %v968_v17 = vadd.f32 %v960_v2, %v885_v19  ;;  %v1397_v2 = vld [vmem:[#allocation3 + $0x68] sm:$0xff] }
 0x95c   : > { %v1158_v18 = vpop.permute.xlu0 %1157  ;;  %v1401_v28 = vmul.f32 %v3295_v60, %v1397_v2 }
 0x95d   : > { %973 = vst.msk [vmem:[#allocation4 + $0x18] sm:$0xff] %vm969_vm2, %v968_v17  ;;  %v1615_v13 = vld [vmem:[#allocation3 + $0x40] sm:$0xff]  ;;  %v1167_v30 = vmul.f32 %v1158_v18, %v1143_v27 }
 0x95e   : > { %1621 = vperm.xlu1 %2148, %v1615_v13  }
 0x960   : > { %v1141_v24 = vld [vmem:[#allocation4] sm:$0xff]  ;;  %v1163_v51 = vpop.permute.xlu0 %1162 }
 0x961   : > { %v1618_v26 = vld [vmem:[#allocation3 + $0x58] sm:$0xff]  ;;  %v1165_v14 = vmul.f32 %v1148_v35, %v1141_v24 }
 0x962   : > { %1636 = vperm.xlu0 %2147, %v1618_v26   ;;  %1631 = vperm.xlu1 %2148, %v1617_v44  }
 0x964   : > { %v1237_v49 = vpop.permute.xlu0 %1236  ;;  %v1144_v12 = vld [vmem:[#allocation4 + $0x18] sm:$0xff] }
 0x965   : > { %v1248_v1 = vadd.f32 %v1237_v49, %v1165_v14  ;;  %v1168_v34 = vmul.f32 %v1163_v51, %v1144_v12 }
 0x966   : > { %v1412_v54 = vpop.xlane.xlu1 %1411 }
 0x967   : > { %1253 = vst.msk [vmem:[#allocation4] sm:$0xff] %vm1252_vm3, %v1248_v1  ;;  %v1418_v59 = vadd.f32 %v1412_v54, %v1402_v56 }
 0x968   : > { %v1239_v16 = vpop.permute.xlu0 %1238 }
 0x969   : > { %1422 = vst.msk [vmem:[#allocation3 + $0x70] sm:$0xff] %vm355_vm1, %v1418_v59 }
 0x96a   : > { %v1406_v29 = vpop.xlane.xlu1 %1405 }
 0x96b   : > { %v1416_v6 = vadd.f32 %v1406_v29, %v1400_v0 }
 0x96c   : > { %v1243_v43 = vpop.permute.xlu0 %1242 }
 0x96d   : > { %1420 = vst.msk [vmem:[#allocation3 + $0x60] sm:$0xff] %vm355_vm1, %v1416_v6  ;;  %v1251_v63 = vadd.f32 %v1243_v43, %v1168_v34 }
 0x96e   : > { %v1415_v9 = vpop.xlane.xlu1 %1414  ;;  %v1424_v13 = vld [vmem:[#allocation4] sm:$0xff] }
 0x96f   : > { %1256 = vst.msk [vmem:[#allocation4 + $0x18] sm:$0xff] %vm1252_vm3, %v1251_v63  ;;  %v1419_v3 = vadd.f32 %v1415_v9, %v1403_v48 }
 0x970   : > { %v1649_v7 = vld [vmem:[#allocation3 + $0x70] sm:$0xff]  ;;  %v1436_v40 = vpop.permute.xlu0 %1435 }
 0x971   : > { %1423 = vst.msk [vmem:[#allocation3 + $0x78] sm:$0xff] %vm355_vm1, %v1419_v3  ;;  %1663 = vperm.xlu1 %2148, %v1649_v7  }
 0x972   : > { %v1409_v41 = vpop.xlane.xlu1 %1408 }
 0x973   : > { %v1417_v37 = vadd.f32 %v1409_v41, %v1401_v28 }
 0x974   : > { %v1647_v4 = vld [vmem:[#allocation3 + $0x60] sm:$0xff]  ;;  %v1446_v25 = vpop.permute.xlu0 %1445 }
 0x975   : > { %1421 = vst.msk [vmem:[#allocation3 + $0x68] sm:$0xff] %vm355_vm1, %v1417_v37  ;;  %1653 = vperm.xlu1 %2148, %v1647_v4  }
 0x976   : > { %v1153_v23 = vpop.permute.xlu1 %1152  ;;  %v1427_v56 = vld [vmem:[#allocation4 + $0x18] sm:$0xff] }
 0x977   : > { %v1166_v20 = vmul.f32 %v1153_v23, %v1142_v39  ;;  %v1451_v8 = vmul.f32 %v1446_v25, %v1427_v56 }
 0x978   : > { %v1650_v33 = vld [vmem:[#allocation3 + $0x78] sm:$0xff] }
 0x979   : > { %v1249_v38 = vadd.f32 %v1239_v16, %v1166_v20  ;;  %1668 = vperm.xlu0 %2147, %v1650_v33  }
 0x97a   : > { %v1241_v21 = vpop.permute.xlu1 %1240 }
 0x97b   : > { %1254 = vst.msk [vmem:[#allocation4 + $0x8] sm:$0xff] %vm1252_vm3, %v1249_v38  ;;  %v1250_v5 = vadd.f32 %v1241_v21, %v1167_v30 }
 0x97c   : > { %v1648_v11 = vld [vmem:[#allocation3 + $0x68] sm:$0xff] }
 0x97d   : > { %1255 = vst.msk [vmem:[#allocation4 + $0x10] sm:$0xff] %vm1252_vm3, %v1250_v5  ;;  %1658 = vperm.xlu0 %2147, %v1648_v11  }
 0x97e   : > { %v1431_v62 = vpop.permute.xlu1 %1430 }
 0x97f   : > { %v1448_v26 = vmul.f32 %v1431_v62, %v1424_v13 }
 0x981   : > { %v1563_v46 = vpop.permute.xlu0 %1562 }
 0x982   : > { %v1441_v32 = vpop.permute.xlu1 %1440  ;;  %2219 = vrcp.f32 %v1563_v46  ;;  %v1425_v51 = vld [vmem:[#allocation4 + $0x8] sm:$0xff] }
 0x983   : > { %v1449_v49 = vmul.f32 %v1436_v40, %v1425_v51 }
 0x984   : > { %v1426_v44 = vld [vmem:[#allocation4 + $0x10] sm:$0xff] }
 0x985   : > { %v1450_v59 = vmul.f32 %v1441_v32, %v1426_v44 }
 0x988   : > { %v1558_v61 = vpop.permute.xlu1 %1557 }
 0x989   : > { %2221 = vrcp.f32 %v1558_v61 }
 0x98c   : > { %v1568_v45 = vpop.permute.xlu1 %1567  ;;  %v1573_v57 = vpop.permute.xlu0 %1572 }
 0x98d   : > { %2223 = vrcp.f32 %v1573_v57  ;;  %v2220_v1 = vpop.eup %2219 }
 0x98e   : > { %2225 = vrcp.f32 %v1568_v45 }
 0x990   : > { %v1590_v15 = vpop.permute.xlu1 %1589  ;;  %v1595_v31 = vpop.permute.xlu0 %1594 }
 0x991   : > { %2227 = vrcp.f32 %v1595_v31 }
 0x992   : > { %2229 = vrcp.f32 %v1590_v15 }
 0x993   : > { %v2222_v52 = vpop.eup %2221 }
 0x994   : > { %v1600_v53 = vpop.permute.xlu1 %1599  ;;  %v1605_v10 = vpop.permute.xlu0 %1604 }
 0x995   : > { %2231 = vrcp.f32 %v1605_v10 }
 0x996   : > { %2233 = vrcp.f32 %v1600_v53 }
 0x997   : > { %v2224_v16 = vpop.eup %2223 }
 0x998   : > { %v2226_v29 = vpop.eup %2225 }
 0x99b   : > { %v2228_v6 = vpop.eup %2227 }
 0x99c   : > { %v2230_v63 = vpop.eup %2229 }
 0x99f   : > { %v2232_v9 = vpop.eup %2231 }
 0x9a0   : > { %v2234_v2 = vpop.eup %2233 }
 0x9ad   : > { %v2045_v60 = vpop.f32.mrb[12].mxu0 }
 0x9ae   : > { %v1500_v55 = vpop.f32.mrb[13].mxu0 }
 0x9af   : > { %v2046_v50 = vpop.f32.mrb[14].mxu0  ;;  %1519 = vrot.lane.b32.xlu1 %v1500_v55, %s2471_s13 }
 0x9b0   : > { %v1503_v22 = vpop.f32.mrb[15].mxu0 }
 0x9b1   : > { %1521 = vrot.lane.b32.xlu0 %v1503_v22, %s2471_s13 }
 0x9b3   : > { %1523 = vrot.lane.b32.xlu1 %v2045_v60, %s2471_s13 }
 0x9b5   : > { %1525 = vrot.lane.b32.xlu0 %v2046_v50, %s2471_s13 }
 0x9c6   : > { %v1627_v58 = vpop.permute.xlu0 %1626 }
 0x9c7   : > { %2235 = vrcp.f32 %v1627_v58 }
 0x9d1   : > { %v2236_v3 = vpop.eup %2235 }
 0x9dd   : > { %v1622_v47 = vpop.permute.xlu1 %1621 }
 0x9de   : > { %2237 = vrcp.f32 %v1622_v47 }
 0x9e1   : > { %v1632_v36 = vpop.permute.xlu1 %1631  ;;  %v1637_v35 = vpop.permute.xlu0 %1636 }
 0x9e2   : > { %2239 = vrcp.f32 %v1637_v35 }
 0x9e3   : > { %2241 = vrcp.f32 %v1632_v36 }
 0x9e8   : > { %v2238_v28 = vpop.eup %2237 }
 0x9ec   : > { %v2240_v4 = vpop.eup %2239 }
 0x9ed   : > { %v2242_v20 = vpop.eup %2241 }
 0x9f0   : > { %v1664_v19 = vpop.permute.xlu1 %1663 }
 0x9f1   : > { %2243 = vrcp.f32 %v1664_v19 }
 0x9f4   : > { %v1654_v18 = vpop.permute.xlu1 %1653 }
 0x9f5   : > { %2245 = vrcp.f32 %v1654_v18 }
 0x9f8   : > { %v1669_v17 = vpop.permute.xlu0 %1668 }
 0x9fb   : > { %v2244_v30 = vpop.eup %2243 }
 0x9fc   : > { %v1659_v24 = vpop.permute.xlu0 %1658 }
 0x9fd   : > { %2247 = vrcp.f32 %v1659_v24 }
 0x9fe   : > { %2249 = vrcp.f32 %v1669_v17 }
 0x9ff   : > { %v2246_v11 = vpop.eup %2245 }
 0xa07   : > { %v2248_v22 = vpop.eup %2247 }
 0xa08   : > { %v2250_v25 = vpop.eup %2249 }
 0xa21   : > { %v1520_v42 = vpop.permute.xlu1 %1519 }
 0xa22   : > { %v1531_v14 = vadd.f32 %v1520_v42, %v1448_v26 }
 0xa23   : > { %v1522_v54 = vpop.permute.xlu0 %1521 }
 0xa24   : > { %1536 = vst.msk [vmem:[#allocation4] sm:$0xff] %vm1535_vm4, %v1531_v14  ;;  %v1532_v12 = vadd.f32 %v1522_v54, %v1449_v49 }
 0xa25   : > { %v1524_v0 = vpop.permute.xlu1 %1523 }
 0xa26   : > { %1537 = vst.msk [vmem:[#allocation4 + $0x8] sm:$0xff] %vm1535_vm4, %v1532_v12  ;;  %v1533_v34 = vadd.f32 %v1524_v0, %v1450_v59 }
 0xa27   : > { %v1526_v43 = vpop.permute.xlu0 %1525 }
 0xa28   : > { %1538 = vst.msk [vmem:[#allocation4 + $0x10] sm:$0xff] %vm1535_vm4, %v1533_v34  ;;  %v1534_v48 = vadd.f32 %v1526_v43, %v1451_v8 }
 0xa2a   : > { %1539 = vst.msk [vmem:[#allocation4 + $0x18] sm:$0xff] %vm1535_vm4, %v1534_v48 }
 0xa2b   : > { %v1547_v7 = vld [vmem:[#allocation4] sm:$0xff] }
 0xa2c   : > { %v1576_v41 = vmul.f32 %v2222_v52, %v1547_v7  ;;  %v1608_v37 = vmul.f32 %v2230_v63, %v1547_v7  ;;  %v1640_v23 = vmul.f32 %v2238_v28, %v1547_v7  ;;  %v1672_v40 = vmul.f32 %v2246_v11, %v1547_v7 }
 0xa2d   : > { %v1548_v39 = vld [vmem:[#allocation4 + $0x8] sm:$0xff] }
 0xa2e   : > { %v1578_v27 = vmul.f32 %v2220_v1, %v1548_v39  ;;  %v1610_v33 = vmul.f32 %v2228_v6, %v1548_v39  ;;  %v1642_v21 = vmul.f32 %v2236_v3, %v1548_v39  ;;  %v1679_v5 = vsel %vm431_vm0, %v1576_v41, %v1608_v37 }
 0xa2f   : > { %v1549_v38 = vld [vmem:[#allocation4 + $0x10] sm:$0xff]  ;;  %v1684_v61 = vsel %vm1683_vm5, %v1679_v5, %v1640_v23  ;;  %v1674_v15 = vmul.f32 %v2248_v22, %v1548_v39 }
 0xa30   : > { %v1580_v60 = vmul.f32 %v2226_v29, %v1549_v38  ;;  %v1612_v55 = vmul.f32 %v2234_v2, %v1549_v38  ;;  %v1644_v50 = vmul.f32 %v2242_v20, %v1549_v38  ;;  %v1680_v32 = vsel %vm431_vm0, %v1578_v27, %v1610_v33 }
 0xa31   : > { %v1550_v62 = vld [vmem:[#allocation4 + $0x18] sm:$0xff]  ;;  %v1676_v31 = vmul.f32 %v2244_v30, %v1549_v38  ;;  %v1685_v47 = vsel %vm1683_vm5, %v1680_v32, %v1642_v21  ;;  %v1689_v35 = vsel %vm1688_vm6, %v1684_v61, %v1672_v40 }
 0xa32   : > { %v1582_v46 = vmul.f32 %v2224_v16, %v1550_v62  ;;  %v1614_v45 = vmul.f32 %v2232_v9, %v1550_v62  ;;  %v1646_v57 = vmul.f32 %v2240_v4, %v1550_v62  ;;  %v1678_v53 = vmul.f32 %v2250_v25, %v1550_v62 }
 0xa33   : > { %v1681_v10 = vsel %vm431_vm0, %v1580_v60, %v1612_v55  ;;  %v1690_v19 = vsel %vm1688_vm6, %v1685_v47, %v1674_v15 }
 0xa34   : > { %v1682_v58 = vsel %vm431_vm0, %v1582_v46, %v1614_v45  ;;  %v1686_v36 = vsel %vm1683_vm5, %v1681_v10, %v1644_v50  ;;  %v1943_v18 = vpack.c.bf16 %v1690_v19, %v1689_v35 }
 0xa35   : > { %v1687_v17 = vsel %vm1683_vm5, %v1682_v58, %v1646_v57  ;;  %v1691_v13 = vsel %vm1688_vm6, %v1686_v36, %v1676_v31 }
 0xa36   : > { %v1692_v24 = vsel %vm1688_vm6, %v1687_v17, %v1678_v53  ;;  %1944 = vst [vmem:[%s345_s24] sm:$0xff] %v1943_v18  }
 0xa37   : > { %v1948_v51 = vpack.c.bf16 %v1692_v24, %v1691_v13 }
 0xa39   : > { %1950 = vst [vmem:[%s345_s24 + $0x8] sm:$0xff] %v1948_v51  }
 0xa3a   : > { %2383 = shalt.err (!%p2380_p12)
}
 0xa3b   : > { %s2384_s14 = scalar_lea.hbm %s3388_s0, 256  ;;  %s2388_s7 = scalar_lea.hbm %s3445_s4, 512 }
 0xa3c   : > { %p2385_p4 = scmp.ne.s32.totalorder %s3388_s0, %s2384_s14  ;;  %p2389_p1 = scmp.lt.u32.totalorder %s3388_s0, %s3445_s4 }
 0xa3d   : > { %p2390_p7 = scmp.lt.u32.totalorder %s2388_s7, %s2384_s14  ;;  %p2392_p11 = scmp.lt.u32.totalorder %s2384_s14, %s3388_s0 }
 0xa3e   : > { %p2386_p2 = pnand %p2385_p4, %p3504_p0 }
 0xa3f   : > { %p2391_p13 = por %p2390_p7, %p2389_p1 }
 0xa40   : > { %p2387_p9 = pneg %p2386_p2 }
 0xa41   : > { %p2393_p5 = por %p2392_p11, %p2391_p13 }
 0xa43   : > { %p2394_p10 = pnand %p2393_p5, %p2387_p9 }
 0xa45   : > { %2397 = shalt.err (!%p2394_p10)
}
 0xa46   : > { %s2475_s19 = smov 4  }
 0xa47   : > { %2065 = dma.vmem_to_hbm [thread:$0]  (%p3504_p0), %s3390_s28, 256, %s3388_s0, %s1714_s1, %s2472_s22, %s2472_s22, %s2475_s19  }
 0xa48 PF: > { %s1744_s21 = sand.u32 1, %s2440_s15   ;;  %p3505_p3 = scmp.ne.s32.totalorder %s3472_s8, 0 }
 0xa49   : > { %p3506_p8 = scmp.ge.s32.totalorder %s2460_s20, 2  ;;  %s1745_s13 = scalar_lea.sflag [#allocation7], %s1744_s21 }
 0xa4b   : > { %p2082_p6 = pnand %p3506_p8, %p3505_p3 }
 0xa4d   : > { %2435 = dma.done.wait (!%p2082_p6), %s1745_s13, 256  }
 0xa4e   : > { %2437 = vsyncadd (!%p2082_p6), %s1745_s13, 4294967040  ;;  %s24_s20 = sadd.s32 1, %s2460_s20   ;;  %s3507_s6 = sld [smem:[#allocation18_spill]] }
 0xa4f   : > { %p21_p12 = scmp.ge.s32.totalorder %s24_s20, 4   ;;  %s3508_s17 = sld [smem:[#allocation21_spill]] }
 0xa50   : > { %s3509_s18 = sld [smem:[#allocation19_spill]]  ;;  %s3510_s19 = sld [smem:[#allocation20_spill]] }
 0xa51   : > { %s3511_s15 = smov %s2444_s16  ;;  %23 = sbr.rel (!%p21_p12) target bundleno = 12 (0xc), region = 124 }
 0xa54   : > { %s3512_s16 = smov %s3507_s6 }
 0xa58   :  { %1750 = vsyncpa [#allocation6], 1 }
 0xa59   :  { %1752 = vsyncpa [#allocation6 + $0x1], 1 }
 0xa5a   :  { %1753 = vsyncpa [#allocation9], 1 }
 0xa5b   :  { %1755 = vsyncpa [#allocation9 + $0x1], 1 }
 0xa5c   :  { %1756 = vsyncpa [#allocation12], 1 }
 0xa5d   :  { %1757 = vsyncpa [#allocation7], 1 }
 0xa5e   :  { %1759 = vsyncpa [#allocation7 + $0x1], 1 }

</bundles_post_ra>
